<compile_context>
chip_gen: v7x
topology: tpu7x:2x2x1
jax: 0.10.0
libtpu: 0.0.40
codegen_flags: <defaults>
</compile_context>

<pallas_src>
import jax
import jax.numpy as jnp
import numpy as np
from jax import lax
from jax.experimental import pallas as pl
from jax.experimental.pallas import tpu as pltpu


def _round_up(x, m):
    return ((x + m - 1) // m) * m


# ------------------------------ fused kernel ---------------------------------
def make_fused_kernel(T, Bp, num_layers):
    """Fused (LSTM stack + classification head) kernel for static T, padded batch Bp, num_layers."""

    def kernel(*refs):
        # refs layout:
        #   x_ref, [wih_l, whh_l, b_l] * num_layers, w1, b1, w2, b2, out_ref, seq_scratch, gx_scratch
        x_ref = refs[0]
        layer_refs = refs[1:1 + 3 * num_layers]
        w1_ref, b1_ref, w2_ref, b2_ref, out_ref, seq_ref, gx_ref = refs[1 + 3 * num_layers:]

        h_last = None
        for l in range(num_layers):
            wih_ref = layer_refs[3 * l]      # (D_in, 4H)   gates i|f|g|o lane-stacked
            whh_ref = layer_refs[3 * l + 1]  # (H,    4H)
            b_ref = layer_refs[3 * l + 2]    # (1,    4H)   pre-combined b_ih + b_hh
            H = whh_ref.shape[0]

            # Layer input: original features for layer 0, previous layer's sequence otherwise.
            x_cur = x_ref[...] if l == 0 else seq_ref[...]            # (T*Bp, D_in)

            # Hoisted, gate-fused input projection: ONE matmul for all timesteps & gates.
            # Stashed in VMEM scratch so the recurrence streams one (Bp, 4H) slice per step.
            gx_ref[...] = (jnp.dot(x_cur, wih_ref[...], preferred_element_type=jnp.float32)
                           + b_ref[...])                              # (T*Bp, 4H)
            whh = whh_ref[...]                                        # (H, 4H), ~4 vregs

            h = jnp.zeros((Bp, H), jnp.float32)
            c = jnp.zeros((Bp, H), jnp.float32)

            # Serial recurrence, fully unrolled (T small & static); ONE fused MXU op per step.
            for t in range(T):
                lo = t * Bp                                           # static slice start
                z = gx_ref[lo:lo + Bp, :] + jnp.dot(
                    h, whh, preferred_element_type=jnp.float32)       # (Bp, 4H) = one full f32 vreg
                i_g = jax.nn.sigmoid(z[:, 0 * H:1 * H])
                f_g = jax.nn.sigmoid(z[:, 1 * H:2 * H])
                g_g = jnp.tanh(z[:, 2 * H:3 * H])
                o_g = jax.nn.sigmoid(z[:, 3 * H:4 * H])
                c = f_g * c + i_g * g_g
                h = o_g * jnp.tanh(c)
                if l < num_layers - 1:
                    # Keep the whole sequence in VMEM scratch for the next layer (never hits HBM).
                    seq_ref[lo:lo + Bp, :] = h
            h_last = h                                                # (Bp, H) at t = T-1

        # Classification head, fused: Linear -> ReLU -> Linear -> Softmax(dim=1).
        # Head weights are lane-padded; padded class lanes carry a -1e30 bias -> exp() == 0 exactly,
        # so the softmax over the real lanes is unchanged.
        emb = jnp.dot(h_last, w1_ref[...], preferred_element_type=jnp.float32) + b1_ref[...]
        emb = jnp.maximum(emb, 0.0)
        logits = jnp.dot(emb, w2_ref[...], preferred_element_type=jnp.float32) + b2_ref[...]
        m = jnp.max(logits, axis=1, keepdims=True)
        e = jnp.exp(logits - m)
        out_ref[...] = e / jnp.sum(e, axis=1, keepdims=True)          # lane-dense (Bp, S_pad) store

    return kernel


def lstm_classification_forward(mel, prep, n_speaker):
    """mel: (B, input_size, T) float32 -> softmax probabilities (B, n_speaker)."""
    B, _, T = mel.shape
    num_layers = len(prep["layers"])
    H = prep["layers"][0]["whh"].shape[0]
    S_pad = prep["w2"].shape[1]

    # torch.transpose(mel, 1, 2) -> (B, T, D); go time-major (T, B, D) and pad batch to 8 sublanes.
    x = jnp.transpose(mel, (2, 0, 1)).astype(jnp.float32)             # (T, B, D)
    Bp = _round_up(max(B, 1), 8)
    if Bp > B:
        x = jnp.pad(x, ((0, 0), (0, Bp - B), (0, 0)))
    x_flat = x.reshape(T * Bp, x.shape[-1])                           # row t*Bp + b

    args = [x_flat]
    for lp in prep["layers"]:
        args += [lp["wih"], lp["whh"], lp["b"]]
    args += [prep["w1"], prep["b1"], prep["w2"], prep["b2"]]

    out = pl.pallas_call(
        make_fused_kernel(T, Bp, num_layers),
        out_shape=jax.ShapeDtypeStruct((Bp, S_pad), jnp.float32),
        scratch_shapes=[
            pltpu.VMEM((T * Bp, H), jnp.float32),                     # inter-layer sequence buffer
            pltpu.VMEM((T * Bp, 4 * H), jnp.float32),                 # gate-fused input projection gx
        ],
    )(*args)
    return out[:B, :n_speaker]


forward_jit = jax.jit(lstm_classification_forward, static_argnames=("n_speaker",))


# -------------------------- parameter preparation -----------------------------
def init_params(key, input_size, hidden_size, num_layers, embedding_size, n_speaker):
    """Deterministic init mirroring nn.LSTM / nn.Linear shapes (uniform(-1/sqrt(fan), 1/sqrt(fan)))."""
    params = {"lstm": []}
    k = 1.0 / np.sqrt(hidden_size)
    keys = jax.random.split(key, num_layers * 4 + 4)
    ki = 0
    for layer in range(num_layers):
        d_in = input_size if layer == 0 else hidden_size
        w_ih = jax.random.uniform(keys[ki], (4 * hidden_size, d_in), jnp.float32, -k, k); ki += 1
        w_hh = jax.random.uniform(keys[ki], (4 * hidden_size, hidden_size), jnp.float32, -k, k); ki += 1
        b_ih = jax.random.uniform(keys[ki], (4 * hidden_size,), jnp.float32, -k, k); ki += 1
        b_hh = jax.random.uniform(keys[ki], (4 * hidden_size,), jnp.float32, -k, k); ki += 1
        params["lstm"].append({"w_ih": w_ih, "w_hh": w_hh, "b": b_ih + b_hh})
    kl = 1.0 / np.sqrt(hidden_size)
    params["w1"] = jax.random.uniform(keys[ki], (embedding_size, hidden_size), jnp.float32, -kl, kl); ki += 1
    params["b1"] = jax.random.uniform(keys[ki], (embedding_size,), jnp.float32, -kl, kl); ki += 1
    ke = 1.0 / np.sqrt(embedding_size)
    params["w2"] = jax.random.uniform(keys[ki], (n_speaker, embedding_size), jnp.float32, -ke, ke); ki += 1
    params["b2"] = jax.random.uniform(keys[ki], (n_speaker,), jnp.float32, -ke, ke); ki += 1
    return params


def prepare_params(params):
    """One-time repack: gate-lane-stacked, pre-transposed LSTM weights; lane-padded head weights."""
    layers = []
    for lp in params["lstm"]:
        layers.append({
            # PyTorch gate order i, f, g, o is preserved: transposing (4H, D) -> (D, 4H) keeps gates
            # concatenated along the lane axis in that exact order.
            "wih": jnp.transpose(lp["w_ih"]),                         # (D_in, 4H)
            "whh": jnp.transpose(lp["w_hh"]),                         # (H,    4H)
            "b": lp["b"][None, :],                                    # (1,    4H)  b_ih + b_hh
        })
    H = params["lstm"][0]["w_hh"].shape[1]
    E = params["w1"].shape[0]
    S = params["w2"].shape[0]
    E_pad = _round_up(E, 128)
    S_pad = _round_up(S, 128)
    w1 = jnp.zeros((H, E_pad), jnp.float32).at[:, :E].set(jnp.transpose(params["w1"]))
    b1 = jnp.zeros((1, E_pad), jnp.float32).at[:, :E].set(params["b1"])
    w2 = jnp.zeros((E_pad, S_pad), jnp.float32).at[:E, :S].set(jnp.transpose(params["w2"]))
    # Padded class lanes: bias -1e30 so exp() underflows to exactly 0 and the real-lane softmax is exact.
    b2 = jnp.full((1, S_pad), -1e30, jnp.float32).at[:, :S].set(params["b2"])
    return {"layers": layers, "w1": w1, "b1": b1, "w2": w2, "b2": b2}


# ------------------------------ pure-JAX reference ----------------------------
def reference_forward(mel, params):
    x = jnp.transpose(mel, (0, 2, 1))                                 # (B, T, D)
    for lp in params["lstm"]:
        B = x.shape[0]
        H = lp["w_hh"].shape[1]

        def step(carry, xt):
            h, c = carry
            gates = xt @ lp["w_ih"].T + h @ lp["w_hh"].T + lp["b"]
            i_g = jax.nn.sigmoid(gates[:, 0 * H:1 * H])
            f_g = jax.nn.sigmoid(gates[:, 1 * H:2 * H])
            g_g = jnp.tanh(gates[:, 2 * H:3 * H])
            o_g = jax.nn.sigmoid(gates[:, 3 * H:4 * H])
            c = f_g * c + i_g * g_g
            h = o_g * jnp.tanh(c)
            return (h, c), h

        init = (jnp.zeros((B, H), jnp.float32), jnp.zeros((B, H), jnp.float32))
        (_, _), hs = lax.scan(step, init, jnp.transpose(x, (1, 0, 2)))
        x = jnp.transpose(hs, (1, 0, 2))
    h_last = x[:, -1]
    emb = jnp.maximum(h_last @ params["w1"].T + params["b1"], 0.0)
    logits = emb @ params["w2"].T + params["b2"]
    return jax.nn.softmax(logits, axis=1)


if __name__ == "__main__":
    # small shapes consistent with the module's forward
    B, input_size, T = 2, 16, 8
    hidden_size, num_layers, embedding_size, n_speaker = 32, 3, 24, 10

    key = jax.random.PRNGKey(0)
    k_mel, k_params = jax.random.split(key)
    mel = jax.random.normal(k_mel, (B, input_size, T), jnp.float32)
    params = init_params(k_params, input_size, hidden_size, num_layers,
                         embedding_size, n_speaker)
    prep = prepare_params(params)

    out = jax.block_until_ready(forward_jit(mel, prep, n_speaker=n_speaker))
    ref = jax.block_until_ready(reference_forward(mel, params))

    np.testing.assert_allclose(np.asarray(out), np.asarray(ref), rtol=1e-5, atol=1e-5)
    assert out.shape == (B, n_speaker)

    print("KERNEL_OK")
</pallas_src>

<mosaic_0001>
module attributes {stable_mosaic.version = 11 : i64} {
  func.func @kernel(%arg0: memref<64x16xf32, #tpu.memory_space<vmem>>, %arg1: memref<16x128xf32, #tpu.memory_space<vmem>>, %arg2: memref<32x128xf32, #tpu.memory_space<vmem>>, %arg3: memref<1x128xf32, #tpu.memory_space<vmem>>, %arg4: memref<32x128xf32, #tpu.memory_space<vmem>>, %arg5: memref<32x128xf32, #tpu.memory_space<vmem>>, %arg6: memref<1x128xf32, #tpu.memory_space<vmem>>, %arg7: memref<32x128xf32, #tpu.memory_space<vmem>>, %arg8: memref<32x128xf32, #tpu.memory_space<vmem>>, %arg9: memref<1x128xf32, #tpu.memory_space<vmem>>, %arg10: memref<32x128xf32, #tpu.memory_space<vmem>>, %arg11: memref<1x128xf32, #tpu.memory_space<vmem>>, %arg12: memref<128x128xf32, #tpu.memory_space<vmem>>, %arg13: memref<1x128xf32, #tpu.memory_space<vmem>>, %arg14: memref<8x128xf32, #tpu.memory_space<vmem>>, %arg15: memref<64x32xf32, #tpu.memory_space<vmem>>, %arg16: memref<64x128xf32, #tpu.memory_space<vmem>>) attributes {dimension_semantics = [], scalar_prefetch = 0 : i64, scratch_operands = 2 : i64, tpu.core_type = #tpu.core_type<tc>} {
    %c0 = arith.constant 0 : index
    %c0_0 = arith.constant 0 : index
    %0 = vector.load %arg0[%c0, %c0_0] : memref<64x16xf32, #tpu.memory_space<vmem>>, vector<64x16xf32>
    %c0_1 = arith.constant 0 : index
    %c0_2 = arith.constant 0 : index
    %1 = vector.load %arg1[%c0_1, %c0_2] : memref<16x128xf32, #tpu.memory_space<vmem>>, vector<16x128xf32>
    %cst = arith.constant dense<0.000000e+00> : vector<64x128xf32>
    %2 = tpu.matmul %0, %1, %cst {dimension_numbers = #tpu.dot_dimension_numbers<[1], [0], [0], [1], [0, 0, 1, 1], [], []>} : vector<64x16xf32>, vector<16x128xf32>, vector<64x128xf32> -> vector<64x128xf32>
    %c0_3 = arith.constant 0 : index
    %c0_4 = arith.constant 0 : index
    %3 = vector.load %arg3[%c0_3, %c0_4] : memref<1x128xf32, #tpu.memory_space<vmem>>, vector<1x128xf32>
    %4 = vector.broadcast %3 : vector<1x128xf32> to vector<64x128xf32>
    %5 = arith.addf %2, %4 : vector<64x128xf32>
    %c0_5 = arith.constant 0 : index
    %c0_6 = arith.constant 0 : index
    %6 = vector.load %arg16[%c0_5, %c0_6] : memref<64x128xf32, #tpu.memory_space<vmem>>, vector<64x128xf32>
    tpu.vector_store %arg16[%c0_5, %c0_6], %5 {strides = array<i32>} : memref<64x128xf32, #tpu.memory_space<vmem>>, vector<64x128xf32>,
    %c0_7 = arith.constant 0 : index
    %c0_8 = arith.constant 0 : index
    %7 = vector.load %arg2[%c0_7, %c0_8] : memref<32x128xf32, #tpu.memory_space<vmem>>, vector<32x128xf32>
    %cst_9 = arith.constant 0.000000e+00 : f32
    %8 = vector.broadcast %cst_9 : f32 to vector<8x32xf32>
    %cst_10 = arith.constant 0.000000e+00 : f32
    %9 = vector.broadcast %cst_10 : f32 to vector<8x32xf32>
    %c0_11 = arith.constant 0 : index
    %c0_12 = arith.constant 0 : index
    %10 = vector.load %arg16[%c0_11, %c0_12] : memref<64x128xf32, #tpu.memory_space<vmem>>, vector<8x128xf32>
    %cst_13 = arith.constant dense<0.000000e+00> : vector<8x128xf32>
    %11 = tpu.matmul %8, %7, %cst_13 {dimension_numbers = #tpu.dot_dimension_numbers<[1], [0], [0], [1], [0, 0, 1, 1], [], []>} : vector<8x32xf32>, vector<32x128xf32>, vector<8x128xf32> -> vector<8x128xf32>
    %12 = arith.addf %10, %11 : vector<8x128xf32>
    %13 = vector.extract_strided_slice %12 {offsets = [0, 0], sizes = [8, 32], strides = [1, 1]} : vector<8x128xf32> to vector<8x32xf32>
    %14 = arith.negf %13 : vector<8x32xf32>
    %15 = math.exp %14 : vector<8x32xf32>
    %cst_14 = arith.constant 1.000000e+00 : f32
    %16 = vector.broadcast %cst_14 : f32 to vector<8x32xf32>
    %17 = arith.addf %16, %15 : vector<8x32xf32>
    %18 = arith.divf %16, %17 : vector<8x32xf32>
    %19 = vector.extract_strided_slice %12 {offsets = [0, 32], sizes = [8, 32], strides = [1, 1]} : vector<8x128xf32> to vector<8x32xf32>
    %20 = arith.negf %19 : vector<8x32xf32>
    %21 = math.exp %20 : vector<8x32xf32>
    %cst_15 = arith.constant 1.000000e+00 : f32
    %22 = vector.broadcast %cst_15 : f32 to vector<8x32xf32>
    %23 = arith.addf %22, %21 : vector<8x32xf32>
    %24 = arith.divf %22, %23 : vector<8x32xf32>
    %25 = vector.extract_strided_slice %12 {offsets = [0, 64], sizes = [8, 32], strides = [1, 1]} : vector<8x128xf32> to vector<8x32xf32>
    %26 = math.tanh %25 : vector<8x32xf32>
    %27 = vector.extract_strided_slice %12 {offsets = [0, 96], sizes = [8, 32], strides = [1, 1]} : vector<8x128xf32> to vector<8x32xf32>
    %28 = arith.negf %27 : vector<8x32xf32>
    %29 = math.exp %28 : vector<8x32xf32>
    %cst_16 = arith.constant 1.000000e+00 : f32
    %30 = vector.broadcast %cst_16 : f32 to vector<8x32xf32>
    %31 = arith.addf %30, %29 : vector<8x32xf32>
    %32 = arith.divf %30, %31 : vector<8x32xf32>
    %33 = arith.mulf %24, %9 : vector<8x32xf32>
    %34 = arith.mulf %18, %26 : vector<8x32xf32>
    %35 = arith.addf %33, %34 : vector<8x32xf32>
    %36 = math.tanh %35 : vector<8x32xf32>
    %37 = arith.mulf %32, %36 : vector<8x32xf32>
    %c0_17 = arith.constant 0 : index
    %c0_18 = arith.constant 0 : index
    %38 = vector.load %arg15[%c0_17, %c0_18] : memref<64x32xf32, #tpu.memory_space<vmem>>, vector<8x32xf32>
    tpu.vector_store %arg15[%c0_17, %c0_18], %37 {strides = array<i32>} : memref<64x32xf32, #tpu.memory_space<vmem>>, vector<8x32xf32>,
    %c8 = arith.constant 8 : index
    %c0_19 = arith.constant 0 : index
    %39 = vector.load %arg16[%c8, %c0_19] : memref<64x128xf32, #tpu.memory_space<vmem>>, vector<8x128xf32>
    %cst_20 = arith.constant dense<0.000000e+00> : vector<8x128xf32>
    %40 = tpu.matmul %37, %7, %cst_20 {dimension_numbers = #tpu.dot_dimension_numbers<[1], [0], [0], [1], [0, 0, 1, 1], [], []>} : vector<8x32xf32>, vector<32x128xf32>, vector<8x128xf32> -> vector<8x128xf32>
    %41 = arith.addf %39, %40 : vector<8x128xf32>
    %42 = vector.extract_strided_slice %41 {offsets = [0, 0], sizes = [8, 32], strides = [1, 1]} : vector<8x128xf32> to vector<8x32xf32>
    %43 = arith.negf %42 : vector<8x32xf32>
    %44 = math.exp %43 : vector<8x32xf32>
    %cst_21 = arith.constant 1.000000e+00 : f32
    %45 = vector.broadcast %cst_21 : f32 to vector<8x32xf32>
    %46 = arith.addf %45, %44 : vector<8x32xf32>
    %47 = arith.divf %45, %46 : vector<8x32xf32>
    %48 = vector.extract_strided_slice %41 {offsets = [0, 32], sizes = [8, 32], strides = [1, 1]} : vector<8x128xf32> to vector<8x32xf32>
    %49 = arith.negf %48 : vector<8x32xf32>
    %50 = math.exp %49 : vector<8x32xf32>
    %cst_22 = arith.constant 1.000000e+00 : f32
    %51 = vector.broadcast %cst_22 : f32 to vector<8x32xf32>
    %52 = arith.addf %51, %50 : vector<8x32xf32>
    %53 = arith.divf %51, %52 : vector<8x32xf32>
    %54 = vector.extract_strided_slice %41 {offsets = [0, 64], sizes = [8, 32], strides = [1, 1]} : vector<8x128xf32> to vector<8x32xf32>
    %55 = math.tanh %54 : vector<8x32xf32>
    %56 = vector.extract_strided_slice %41 {offsets = [0, 96], sizes = [8, 32], strides = [1, 1]} : vector<8x128xf32> to vector<8x32xf32>
    %57 = arith.negf %56 : vector<8x32xf32>
    %58 = math.exp %57 : vector<8x32xf32>
    %cst_23 = arith.constant 1.000000e+00 : f32
    %59 = vector.broadcast %cst_23 : f32 to vector<8x32xf32>
    %60 = arith.addf %59, %58 : vector<8x32xf32>
    %61 = arith.divf %59, %60 : vector<8x32xf32>
    %62 = arith.mulf %53, %35 : vector<8x32xf32>
    %63 = arith.mulf %47, %55 : vector<8x32xf32>
    %64 = arith.addf %62, %63 : vector<8x32xf32>
    %65 = math.tanh %64 : vector<8x32xf32>
    %66 = arith.mulf %61, %65 : vector<8x32xf32>
    %c8_24 = arith.constant 8 : index
    %c0_25 = arith.constant 0 : index
    %67 = vector.load %arg15[%c8_24, %c0_25] : memref<64x32xf32, #tpu.memory_space<vmem>>, vector<8x32xf32>
    tpu.vector_store %arg15[%c8_24, %c0_25], %66 {strides = array<i32>} : memref<64x32xf32, #tpu.memory_space<vmem>>, vector<8x32xf32>,
    %c16 = arith.constant 16 : index
    %c0_26 = arith.constant 0 : index
    %68 = vector.load %arg16[%c16, %c0_26] : memref<64x128xf32, #tpu.memory_space<vmem>>, vector<8x128xf32>
    %cst_27 = arith.constant dense<0.000000e+00> : vector<8x128xf32>
    %69 = tpu.matmul %66, %7, %cst_27 {dimension_numbers = #tpu.dot_dimension_numbers<[1], [0], [0], [1], [0, 0, 1, 1], [], []>} : vector<8x32xf32>, vector<32x128xf32>, vector<8x128xf32> -> vector<8x128xf32>
    %70 = arith.addf %68, %69 : vector<8x128xf32>
    %71 = vector.extract_strided_slice %70 {offsets = [0, 0], sizes = [8, 32], strides = [1, 1]} : vector<8x128xf32> to vector<8x32xf32>
    %72 = arith.negf %71 : vector<8x32xf32>
    %73 = math.exp %72 : vector<8x32xf32>
    %cst_28 = arith.constant 1.000000e+00 : f32
    %74 = vector.broadcast %cst_28 : f32 to vector<8x32xf32>
    %75 = arith.addf %74, %73 : vector<8x32xf32>
    %76 = arith.divf %74, %75 : vector<8x32xf32>
    %77 = vector.extract_strided_slice %70 {offsets = [0, 32], sizes = [8, 32], strides = [1, 1]} : vector<8x128xf32> to vector<8x32xf32>
    %78 = arith.negf %77 : vector<8x32xf32>
    %79 = math.exp %78 : vector<8x32xf32>
    %cst_29 = arith.constant 1.000000e+00 : f32
    %80 = vector.broadcast %cst_29 : f32 to vector<8x32xf32>
    %81 = arith.addf %80, %79 : vector<8x32xf32>
    %82 = arith.divf %80, %81 : vector<8x32xf32>
    %83 = vector.extract_strided_slice %70 {offsets = [0, 64], sizes = [8, 32], strides = [1, 1]} : vector<8x128xf32> to vector<8x32xf32>
    %84 = math.tanh %83 : vector<8x32xf32>
    %85 = vector.extract_strided_slice %70 {offsets = [0, 96], sizes = [8, 32], strides = [1, 1]} : vector<8x128xf32> to vector<8x32xf32>
    %86 = arith.negf %85 : vector<8x32xf32>
    %87 = math.exp %86 : vector<8x32xf32>
    %cst_30 = arith.constant 1.000000e+00 : f32
    %88 = vector.broadcast %cst_30 : f32 to vector<8x32xf32>
    %89 = arith.addf %88, %87 : vector<8x32xf32>
    %90 = arith.divf %88, %89 : vector<8x32xf32>
    %91 = arith.mulf %82, %64 : vector<8x32xf32>
    %92 = arith.mulf %76, %84 : vector<8x32xf32>
    %93 = arith.addf %91, %92 : vector<8x32xf32>
    %94 = math.tanh %93 : vector<8x32xf32>
    %95 = arith.mulf %90, %94 : vector<8x32xf32>
    %c16_31 = arith.constant 16 : index
    %c0_32 = arith.constant 0 : index
    %96 = vector.load %arg15[%c16_31, %c0_32] : memref<64x32xf32, #tpu.memory_space<vmem>>, vector<8x32xf32>
    tpu.vector_store %arg15[%c16_31, %c0_32], %95 {strides = array<i32>} : memref<64x32xf32, #tpu.memory_space<vmem>>, vector<8x32xf32>,
    %c24 = arith.constant 24 : index
    %c0_33 = arith.constant 0 : index
    %97 = vector.load %arg16[%c24, %c0_33] : memref<64x128xf32, #tpu.memory_space<vmem>>, vector<8x128xf32>
    %cst_34 = arith.constant dense<0.000000e+00> : vector<8x128xf32>
    %98 = tpu.matmul %95, %7, %cst_34 {dimension_numbers = #tpu.dot_dimension_numbers<[1], [0], [0], [1], [0, 0, 1, 1], [], []>} : vector<8x32xf32>, vector<32x128xf32>, vector<8x128xf32> -> vector<8x128xf32>
    %99 = arith.addf %97, %98 : vector<8x128xf32>
    %100 = vector.extract_strided_slice %99 {offsets = [0, 0], sizes = [8, 32], strides = [1, 1]} : vector<8x128xf32> to vector<8x32xf32>
    %101 = arith.negf %100 : vector<8x32xf32>
    %102 = math.exp %101 : vector<8x32xf32>
    %cst_35 = arith.constant 1.000000e+00 : f32
    %103 = vector.broadcast %cst_35 : f32 to vector<8x32xf32>
    %104 = arith.addf %103, %102 : vector<8x32xf32>
    %105 = arith.divf %103, %104 : vector<8x32xf32>
    %106 = vector.extract_strided_slice %99 {offsets = [0, 32], sizes = [8, 32], strides = [1, 1]} : vector<8x128xf32> to vector<8x32xf32>
    %107 = arith.negf %106 : vector<8x32xf32>
    %108 = math.exp %107 : vector<8x32xf32>
    %cst_36 = arith.constant 1.000000e+00 : f32
    %109 = vector.broadcast %cst_36 : f32 to vector<8x32xf32>
    %110 = arith.addf %109, %108 : vector<8x32xf32>
    %111 = arith.divf %109, %110 : vector<8x32xf32>
    %112 = vector.extract_strided_slice %99 {offsets = [0, 64], sizes = [8, 32], strides = [1, 1]} : vector<8x128xf32> to vector<8x32xf32>
    %113 = math.tanh %112 : vector<8x32xf32>
    %114 = vector.extract_strided_slice %99 {offsets = [0, 96], sizes = [8, 32], strides = [1, 1]} : vector<8x128xf32> to vector<8x32xf32>
    %115 = arith.negf %114 : vector<8x32xf32>
    %116 = math.exp %115 : vector<8x32xf32>
    %cst_37 = arith.constant 1.000000e+00 : f32
    %117 = vector.broadcast %cst_37 : f32 to vector<8x32xf32>
    %118 = arith.addf %117, %116 : vector<8x32xf32>
    %119 = arith.divf %117, %118 : vector<8x32xf32>
    %120 = arith.mulf %111, %93 : vector<8x32xf32>
    %121 = arith.mulf %105, %113 : vector<8x32xf32>
    %122 = arith.addf %120, %121 : vector<8x32xf32>
    %123 = math.tanh %122 : vector<8x32xf32>
    %124 = arith.mulf %119, %123 : vector<8x32xf32>
    %c24_38 = arith.constant 24 : index
    %c0_39 = arith.constant 0 : index
    %125 = vector.load %arg15[%c24_38, %c0_39] : memref<64x32xf32, #tpu.memory_space<vmem>>, vector<8x32xf32>
    tpu.vector_store %arg15[%c24_38, %c0_39], %124 {strides = array<i32>} : memref<64x32xf32, #tpu.memory_space<vmem>>, vector<8x32xf32>,
    %c32 = arith.constant 32 : index
    %c0_40 = arith.constant 0 : index
    %126 = vector.load %arg16[%c32, %c0_40] : memref<64x128xf32, #tpu.memory_space<vmem>>, vector<8x128xf32>
    %cst_41 = arith.constant dense<0.000000e+00> : vector<8x128xf32>
    %127 = tpu.matmul %124, %7, %cst_41 {dimension_numbers = #tpu.dot_dimension_numbers<[1], [0], [0], [1], [0, 0, 1, 1], [], []>} : vector<8x32xf32>, vector<32x128xf32>, vector<8x128xf32> -> vector<8x128xf32>
    %128 = arith.addf %126, %127 : vector<8x128xf32>
    %129 = vector.extract_strided_slice %128 {offsets = [0, 0], sizes = [8, 32], strides = [1, 1]} : vector<8x128xf32> to vector<8x32xf32>
    %130 = arith.negf %129 : vector<8x32xf32>
    %131 = math.exp %130 : vector<8x32xf32>
    %cst_42 = arith.constant 1.000000e+00 : f32
    %132 = vector.broadcast %cst_42 : f32 to vector<8x32xf32>
    %133 = arith.addf %132, %131 : vector<8x32xf32>
    %134 = arith.divf %132, %133 : vector<8x32xf32>
    %135 = vector.extract_strided_slice %128 {offsets = [0, 32], sizes = [8, 32], strides = [1, 1]} : vector<8x128xf32> to vector<8x32xf32>
    %136 = arith.negf %135 : vector<8x32xf32>
    %137 = math.exp %136 : vector<8x32xf32>
    %cst_43 = arith.constant 1.000000e+00 : f32
    %138 = vector.broadcast %cst_43 : f32 to vector<8x32xf32>
    %139 = arith.addf %138, %137 : vector<8x32xf32>
    %140 = arith.divf %138, %139 : vector<8x32xf32>
    %141 = vector.extract_strided_slice %128 {offsets = [0, 64], sizes = [8, 32], strides = [1, 1]} : vector<8x128xf32> to vector<8x32xf32>
    %142 = math.tanh %141 : vector<8x32xf32>
    %143 = vector.extract_strided_slice %128 {offsets = [0, 96], sizes = [8, 32], strides = [1, 1]} : vector<8x128xf32> to vector<8x32xf32>
    %144 = arith.negf %143 : vector<8x32xf32>
    %145 = math.exp %144 : vector<8x32xf32>
    %cst_44 = arith.constant 1.000000e+00 : f32
    %146 = vector.broadcast %cst_44 : f32 to vector<8x32xf32>
    %147 = arith.addf %146, %145 : vector<8x32xf32>
    %148 = arith.divf %146, %147 : vector<8x32xf32>
    %149 = arith.mulf %140, %122 : vector<8x32xf32>
    %150 = arith.mulf %134, %142 : vector<8x32xf32>
    %151 = arith.addf %149, %150 : vector<8x32xf32>
    %152 = math.tanh %151 : vector<8x32xf32>
    %153 = arith.mulf %148, %152 : vector<8x32xf32>
    %c32_45 = arith.constant 32 : index
    %c0_46 = arith.constant 0 : index
    %154 = vector.load %arg15[%c32_45, %c0_46] : memref<64x32xf32, #tpu.memory_space<vmem>>, vector<8x32xf32>
    tpu.vector_store %arg15[%c32_45, %c0_46], %153 {strides = array<i32>} : memref<64x32xf32, #tpu.memory_space<vmem>>, vector<8x32xf32>,
    %c40 = arith.constant 40 : index
    %c0_47 = arith.constant 0 : index
    %155 = vector.load %arg16[%c40, %c0_47] : memref<64x128xf32, #tpu.memory_space<vmem>>, vector<8x128xf32>
    %cst_48 = arith.constant dense<0.000000e+00> : vector<8x128xf32>
    %156 = tpu.matmul %153, %7, %cst_48 {dimension_numbers = #tpu.dot_dimension_numbers<[1], [0], [0], [1], [0, 0, 1, 1], [], []>} : vector<8x32xf32>, vector<32x128xf32>, vector<8x128xf32> -> vector<8x128xf32>
    %157 = arith.addf %155, %156 : vector<8x128xf32>
    %158 = vector.extract_strided_slice %157 {offsets = [0, 0], sizes = [8, 32], strides = [1, 1]} : vector<8x128xf32> to vector<8x32xf32>
    %159 = arith.negf %158 : vector<8x32xf32>
    %160 = math.exp %159 : vector<8x32xf32>
    %cst_49 = arith.constant 1.000000e+00 : f32
    %161 = vector.broadcast %cst_49 : f32 to vector<8x32xf32>
    %162 = arith.addf %161, %160 : vector<8x32xf32>
    %163 = arith.divf %161, %162 : vector<8x32xf32>
    %164 = vector.extract_strided_slice %157 {offsets = [0, 32], sizes = [8, 32], strides = [1, 1]} : vector<8x128xf32> to vector<8x32xf32>
    %165 = arith.negf %164 : vector<8x32xf32>
    %166 = math.exp %165 : vector<8x32xf32>
    %cst_50 = arith.constant 1.000000e+00 : f32
    %167 = vector.broadcast %cst_50 : f32 to vector<8x32xf32>
    %168 = arith.addf %167, %166 : vector<8x32xf32>
    %169 = arith.divf %167, %168 : vector<8x32xf32>
    %170 = vector.extract_strided_slice %157 {offsets = [0, 64], sizes = [8, 32], strides = [1, 1]} : vector<8x128xf32> to vector<8x32xf32>
    %171 = math.tanh %170 : vector<8x32xf32>
    %172 = vector.extract_strided_slice %157 {offsets = [0, 96], sizes = [8, 32], strides = [1, 1]} : vector<8x128xf32> to vector<8x32xf32>
    %173 = arith.negf %172 : vector<8x32xf32>
    %174 = math.exp %173 : vector<8x32xf32>
    %cst_51 = arith.constant 1.000000e+00 : f32
    %175 = vector.broadcast %cst_51 : f32 to vector<8x32xf32>
    %176 = arith.addf %175, %174 : vector<8x32xf32>
    %177 = arith.divf %175, %176 : vector<8x32xf32>
    %178 = arith.mulf %169, %151 : vector<8x32xf32>
    %179 = arith.mulf %163, %171 : vector<8x32xf32>
    %180 = arith.addf %178, %179 : vector<8x32xf32>
    %181 = math.tanh %180 : vector<8x32xf32>
    %182 = arith.mulf %177, %181 : vector<8x32xf32>
    %c40_52 = arith.constant 40 : index
    %c0_53 = arith.constant 0 : index
    %183 = vector.load %arg15[%c40_52, %c0_53] : memref<64x32xf32, #tpu.memory_space<vmem>>, vector<8x32xf32>
    tpu.vector_store %arg15[%c40_52, %c0_53], %182 {strides = array<i32>} : memref<64x32xf32, #tpu.memory_space<vmem>>, vector<8x32xf32>,
    %c48 = arith.constant 48 : index
    %c0_54 = arith.constant 0 : index
    %184 = vector.load %arg16[%c48, %c0_54] : memref<64x128xf32, #tpu.memory_space<vmem>>, vector<8x128xf32>
    %cst_55 = arith.constant dense<0.000000e+00> : vector<8x128xf32>
    %185 = tpu.matmul %182, %7, %cst_55 {dimension_numbers = #tpu.dot_dimension_numbers<[1], [0], [0], [1], [0, 0, 1, 1], [], []>} : vector<8x32xf32>, vector<32x128xf32>, vector<8x128xf32> -> vector<8x128xf32>
    %186 = arith.addf %184, %185 : vector<8x128xf32>
    %187 = vector.extract_strided_slice %186 {offsets = [0, 0], sizes = [8, 32], strides = [1, 1]} : vector<8x128xf32> to vector<8x32xf32>
    %188 = arith.negf %187 : vector<8x32xf32>
    %189 = math.exp %188 : vector<8x32xf32>
    %cst_56 = arith.constant 1.000000e+00 : f32
    %190 = vector.broadcast %cst_56 : f32 to vector<8x32xf32>
    %191 = arith.addf %190, %189 : vector<8x32xf32>
    %192 = arith.divf %190, %191 : vector<8x32xf32>
    %193 = vector.extract_strided_slice %186 {offsets = [0, 32], sizes = [8, 32], strides = [1, 1]} : vector<8x128xf32> to vector<8x32xf32>
    %194 = arith.negf %193 : vector<8x32xf32>
    %195 = math.exp %194 : vector<8x32xf32>
    %cst_57 = arith.constant 1.000000e+00 : f32
    %196 = vector.broadcast %cst_57 : f32 to vector<8x32xf32>
    %197 = arith.addf %196, %195 : vector<8x32xf32>
    %198 = arith.divf %196, %197 : vector<8x32xf32>
    %199 = vector.extract_strided_slice %186 {offsets = [0, 64], sizes = [8, 32], strides = [1, 1]} : vector<8x128xf32> to vector<8x32xf32>
    %200 = math.tanh %199 : vector<8x32xf32>
    %201 = vector.extract_strided_slice %186 {offsets = [0, 96], sizes = [8, 32], strides = [1, 1]} : vector<8x128xf32> to vector<8x32xf32>
    %202 = arith.negf %201 : vector<8x32xf32>
    %203 = math.exp %202 : vector<8x32xf32>
    %cst_58 = arith.constant 1.000000e+00 : f32
    %204 = vector.broadcast %cst_58 : f32 to vector<8x32xf32>
    %205 = arith.addf %204, %203 : vector<8x32xf32>
    %206 = arith.divf %204, %205 : vector<8x32xf32>
    %207 = arith.mulf %198, %180 : vector<8x32xf32>
    %208 = arith.mulf %192, %200 : vector<8x32xf32>
    %209 = arith.addf %207, %208 : vector<8x32xf32>
    %210 = math.tanh %209 : vector<8x32xf32>
    %211 = arith.mulf %206, %210 : vector<8x32xf32>
    %c48_59 = arith.constant 48 : index
    %c0_60 = arith.constant 0 : index
    %212 = vector.load %arg15[%c48_59, %c0_60] : memref<64x32xf32, #tpu.memory_space<vmem>>, vector<8x32xf32>
    tpu.vector_store %arg15[%c48_59, %c0_60], %211 {strides = array<i32>} : memref<64x32xf32, #tpu.memory_space<vmem>>, vector<8x32xf32>,
    %c56 = arith.constant 56 : index
    %c0_61 = arith.constant 0 : index
    %213 = vector.load %arg16[%c56, %c0_61] : memref<64x128xf32, #tpu.memory_space<vmem>>, vector<8x128xf32>
    %cst_62 = arith.constant dense<0.000000e+00> : vector<8x128xf32>
    %214 = tpu.matmul %211, %7, %cst_62 {dimension_numbers = #tpu.dot_dimension_numbers<[1], [0], [0], [1], [0, 0, 1, 1], [], []>} : vector<8x32xf32>, vector<32x128xf32>, vector<8x128xf32> -> vector<8x128xf32>
    %215 = arith.addf %213, %214 : vector<8x128xf32>
    %216 = vector.extract_strided_slice %215 {offsets = [0, 0], sizes = [8, 32], strides = [1, 1]} : vector<8x128xf32> to vector<8x32xf32>
    %217 = arith.negf %216 : vector<8x32xf32>
    %218 = math.exp %217 : vector<8x32xf32>
    %cst_63 = arith.constant 1.000000e+00 : f32
    %219 = vector.broadcast %cst_63 : f32 to vector<8x32xf32>
    %220 = arith.addf %219, %218 : vector<8x32xf32>
    %221 = arith.divf %219, %220 : vector<8x32xf32>
    %222 = vector.extract_strided_slice %215 {offsets = [0, 32], sizes = [8, 32], strides = [1, 1]} : vector<8x128xf32> to vector<8x32xf32>
    %223 = arith.negf %222 : vector<8x32xf32>
    %224 = math.exp %223 : vector<8x32xf32>
    %cst_64 = arith.constant 1.000000e+00 : f32
    %225 = vector.broadcast %cst_64 : f32 to vector<8x32xf32>
    %226 = arith.addf %225, %224 : vector<8x32xf32>
    %227 = arith.divf %225, %226 : vector<8x32xf32>
    %228 = vector.extract_strided_slice %215 {offsets = [0, 64], sizes = [8, 32], strides = [1, 1]} : vector<8x128xf32> to vector<8x32xf32>
    %229 = math.tanh %228 : vector<8x32xf32>
    %230 = vector.extract_strided_slice %215 {offsets = [0, 96], sizes = [8, 32], strides = [1, 1]} : vector<8x128xf32> to vector<8x32xf32>
    %231 = arith.negf %230 : vector<8x32xf32>
    %232 = math.exp %231 : vector<8x32xf32>
    %cst_65 = arith.constant 1.000000e+00 : f32
    %233 = vector.broadcast %cst_65 : f32 to vector<8x32xf32>
    %234 = arith.addf %233, %232 : vector<8x32xf32>
    %235 = arith.divf %233, %234 : vector<8x32xf32>
    %236 = arith.mulf %227, %209 : vector<8x32xf32>
    %237 = arith.mulf %221, %229 : vector<8x32xf32>
    %238 = arith.addf %236, %237 : vector<8x32xf32>
    %239 = math.tanh %238 : vector<8x32xf32>
    %240 = arith.mulf %235, %239 : vector<8x32xf32>
    %c56_66 = arith.constant 56 : index
    %c0_67 = arith.constant 0 : index
    %241 = vector.load %arg15[%c56_66, %c0_67] : memref<64x32xf32, #tpu.memory_space<vmem>>, vector<8x32xf32>
    tpu.vector_store %arg15[%c56_66, %c0_67], %240 {strides = array<i32>} : memref<64x32xf32, #tpu.memory_space<vmem>>, vector<8x32xf32>,
    %c0_68 = arith.constant 0 : index
    %c0_69 = arith.constant 0 : index
    %242 = vector.load %arg15[%c0_68, %c0_69] : memref<64x32xf32, #tpu.memory_space<vmem>>, vector<64x32xf32>
    %c0_70 = arith.constant 0 : index
    %c0_71 = arith.constant 0 : index
    %243 = vector.load %arg4[%c0_70, %c0_71] : memref<32x128xf32, #tpu.memory_space<vmem>>, vector<32x128xf32>
    %cst_72 = arith.constant dense<0.000000e+00> : vector<64x128xf32>
    %244 = tpu.matmul %242, %243, %cst_72 {dimension_numbers = #tpu.dot_dimension_numbers<[1], [0], [0], [1], [0, 0, 1, 1], [], []>} : vector<64x32xf32>, vector<32x128xf32>, vector<64x128xf32> -> vector<64x128xf32>
    %c0_73 = arith.constant 0 : index
    %c0_74 = arith.constant 0 : index
    %245 = vector.load %arg6[%c0_73, %c0_74] : memref<1x128xf32, #tpu.memory_space<vmem>>, vector<1x128xf32>
    %246 = vector.broadcast %245 : vector<1x128xf32> to vector<64x128xf32>
    %247 = arith.addf %244, %246 : vector<64x128xf32>
    %c0_75 = arith.constant 0 : index
    %c0_76 = arith.constant 0 : index
    %248 = vector.load %arg16[%c0_75, %c0_76] : memref<64x128xf32, #tpu.memory_space<vmem>>, vector<64x128xf32>
    tpu.vector_store %arg16[%c0_75, %c0_76], %247 {strides = array<i32>} : memref<64x128xf32, #tpu.memory_space<vmem>>, vector<64x128xf32>,
    %c0_77 = arith.constant 0 : index
    %c0_78 = arith.constant 0 : index
    %249 = vector.load %arg5[%c0_77, %c0_78] : memref<32x128xf32, #tpu.memory_space<vmem>>, vector<32x128xf32>
    %cst_79 = arith.constant 0.000000e+00 : f32
    %250 = vector.broadcast %cst_79 : f32 to vector<8x32xf32>
    %cst_80 = arith.constant 0.000000e+00 : f32
    %251 = vector.broadcast %cst_80 : f32 to vector<8x32xf32>
    %c0_81 = arith.constant 0 : index
    %c0_82 = arith.constant 0 : index
    %252 = vector.load %arg16[%c0_81, %c0_82] : memref<64x128xf32, #tpu.memory_space<vmem>>, vector<8x128xf32>
    %cst_83 = arith.constant dense<0.000000e+00> : vector<8x128xf32>
    %253 = tpu.matmul %250, %249, %cst_83 {dimension_numbers = #tpu.dot_dimension_numbers<[1], [0], [0], [1], [0, 0, 1, 1], [], []>} : vector<8x32xf32>, vector<32x128xf32>, vector<8x128xf32> -> vector<8x128xf32>
    %254 = arith.addf %252, %253 : vector<8x128xf32>
    %255 = vector.extract_strided_slice %254 {offsets = [0, 0], sizes = [8, 32], strides = [1, 1]} : vector<8x128xf32> to vector<8x32xf32>
    %256 = arith.negf %255 : vector<8x32xf32>
    %257 = math.exp %256 : vector<8x32xf32>
    %cst_84 = arith.constant 1.000000e+00 : f32
    %258 = vector.broadcast %cst_84 : f32 to vector<8x32xf32>
    %259 = arith.addf %258, %257 : vector<8x32xf32>
    %260 = arith.divf %258, %259 : vector<8x32xf32>
    %261 = vector.extract_strided_slice %254 {offsets = [0, 32], sizes = [8, 32], strides = [1, 1]} : vector<8x128xf32> to vector<8x32xf32>
    %262 = arith.negf %261 : vector<8x32xf32>
    %263 = math.exp %262 : vector<8x32xf32>
    %cst_85 = arith.constant 1.000000e+00 : f32
    %264 = vector.broadcast %cst_85 : f32 to vector<8x32xf32>
    %265 = arith.addf %264, %263 : vector<8x32xf32>
    %266 = arith.divf %264, %265 : vector<8x32xf32>
    %267 = vector.extract_strided_slice %254 {offsets = [0, 64], sizes = [8, 32], strides = [1, 1]} : vector<8x128xf32> to vector<8x32xf32>
    %268 = math.tanh %267 : vector<8x32xf32>
    %269 = vector.extract_strided_slice %254 {offsets = [0, 96], sizes = [8, 32], strides = [1, 1]} : vector<8x128xf32> to vector<8x32xf32>
    %270 = arith.negf %269 : vector<8x32xf32>
    %271 = math.exp %270 : vector<8x32xf32>
    %cst_86 = arith.constant 1.000000e+00 : f32
    %272 = vector.broadcast %cst_86 : f32 to vector<8x32xf32>
    %273 = arith.addf %272, %271 : vector<8x32xf32>
    %274 = arith.divf %272, %273 : vector<8x32xf32>
    %275 = arith.mulf %266, %251 : vector<8x32xf32>
    %276 = arith.mulf %260, %268 : vector<8x32xf32>
    %277 = arith.addf %275, %276 : vector<8x32xf32>
    %278 = math.tanh %277 : vector<8x32xf32>
    %279 = arith.mulf %274, %278 : vector<8x32xf32>
    %c0_87 = arith.constant 0 : index
    %c0_88 = arith.constant 0 : index
    %280 = vector.load %arg15[%c0_87, %c0_88] : memref<64x32xf32, #tpu.memory_space<vmem>>, vector<8x32xf32>
    tpu.vector_store %arg15[%c0_87, %c0_88], %279 {strides = array<i32>} : memref<64x32xf32, #tpu.memory_space<vmem>>, vector<8x32xf32>,
    %c8_89 = arith.constant 8 : index
    %c0_90 = arith.constant 0 : index
    %281 = vector.load %arg16[%c8_89, %c0_90] : memref<64x128xf32, #tpu.memory_space<vmem>>, vector<8x128xf32>
    %cst_91 = arith.constant dense<0.000000e+00> : vector<8x128xf32>
    %282 = tpu.matmul %279, %249, %cst_91 {dimension_numbers = #tpu.dot_dimension_numbers<[1], [0], [0], [1], [0, 0, 1, 1], [], []>} : vector<8x32xf32>, vector<32x128xf32>, vector<8x128xf32> -> vector<8x128xf32>
    %283 = arith.addf %281, %282 : vector<8x128xf32>
    %284 = vector.extract_strided_slice %283 {offsets = [0, 0], sizes = [8, 32], strides = [1, 1]} : vector<8x128xf32> to vector<8x32xf32>
    %285 = arith.negf %284 : vector<8x32xf32>
    %286 = math.exp %285 : vector<8x32xf32>
    %cst_92 = arith.constant 1.000000e+00 : f32
    %287 = vector.broadcast %cst_92 : f32 to vector<8x32xf32>
    %288 = arith.addf %287, %286 : vector<8x32xf32>
    %289 = arith.divf %287, %288 : vector<8x32xf32>
    %290 = vector.extract_strided_slice %283 {offsets = [0, 32], sizes = [8, 32], strides = [1, 1]} : vector<8x128xf32> to vector<8x32xf32>
    %291 = arith.negf %290 : vector<8x32xf32>
    %292 = math.exp %291 : vector<8x32xf32>
    %cst_93 = arith.constant 1.000000e+00 : f32
    %293 = vector.broadcast %cst_93 : f32 to vector<8x32xf32>
    %294 = arith.addf %293, %292 : vector<8x32xf32>
    %295 = arith.divf %293, %294 : vector<8x32xf32>
    %296 = vector.extract_strided_slice %283 {offsets = [0, 64], sizes = [8, 32], strides = [1, 1]} : vector<8x128xf32> to vector<8x32xf32>
    %297 = math.tanh %296 : vector<8x32xf32>
    %298 = vector.extract_strided_slice %283 {offsets = [0, 96], sizes = [8, 32], strides = [1, 1]} : vector<8x128xf32> to vector<8x32xf32>
    %299 = arith.negf %298 : vector<8x32xf32>
    %300 = math.exp %299 : vector<8x32xf32>
    %cst_94 = arith.constant 1.000000e+00 : f32
    %301 = vector.broadcast %cst_94 : f32 to vector<8x32xf32>
    %302 = arith.addf %301, %300 : vector<8x32xf32>
    %303 = arith.divf %301, %302 : vector<8x32xf32>
    %304 = arith.mulf %295, %277 : vector<8x32xf32>
    %305 = arith.mulf %289, %297 : vector<8x32xf32>
    %306 = arith.addf %304, %305 : vector<8x32xf32>
    %307 = math.tanh %306 : vector<8x32xf32>
    %308 = arith.mulf %303, %307 : vector<8x32xf32>
    %c8_95 = arith.constant 8 : index
    %c0_96 = arith.constant 0 : index
    %309 = vector.load %arg15[%c8_95, %c0_96] : memref<64x32xf32, #tpu.memory_space<vmem>>, vector<8x32xf32>
    tpu.vector_store %arg15[%c8_95, %c0_96], %308 {strides = array<i32>} : memref<64x32xf32, #tpu.memory_space<vmem>>, vector<8x32xf32>,
    %c16_97 = arith.constant 16 : index
    %c0_98 = arith.constant 0 : index
    %310 = vector.load %arg16[%c16_97, %c0_98] : memref<64x128xf32, #tpu.memory_space<vmem>>, vector<8x128xf32>
    %cst_99 = arith.constant dense<0.000000e+00> : vector<8x128xf32>
    %311 = tpu.matmul %308, %249, %cst_99 {dimension_numbers = #tpu.dot_dimension_numbers<[1], [0], [0], [1], [0, 0, 1, 1], [], []>} : vector<8x32xf32>, vector<32x128xf32>, vector<8x128xf32> -> vector<8x128xf32>
    %312 = arith.addf %310, %311 : vector<8x128xf32>
    %313 = vector.extract_strided_slice %312 {offsets = [0, 0], sizes = [8, 32], strides = [1, 1]} : vector<8x128xf32> to vector<8x32xf32>
    %314 = arith.negf %313 : vector<8x32xf32>
    %315 = math.exp %314 : vector<8x32xf32>
    %cst_100 = arith.constant 1.000000e+00 : f32
    %316 = vector.broadcast %cst_100 : f32 to vector<8x32xf32>
    %317 = arith.addf %316, %315 : vector<8x32xf32>
    %318 = arith.divf %316, %317 : vector<8x32xf32>
    %319 = vector.extract_strided_slice %312 {offsets = [0, 32], sizes = [8, 32], strides = [1, 1]} : vector<8x128xf32> to vector<8x32xf32>
    %320 = arith.negf %319 : vector<8x32xf32>
    %321 = math.exp %320 : vector<8x32xf32>
    %cst_101 = arith.constant 1.000000e+00 : f32
    %322 = vector.broadcast %cst_101 : f32 to vector<8x32xf32>
    %323 = arith.addf %322, %321 : vector<8x32xf32>
    %324 = arith.divf %322, %323 : vector<8x32xf32>
    %325 = vector.extract_strided_slice %312 {offsets = [0, 64], sizes = [8, 32], strides = [1, 1]} : vector<8x128xf32> to vector<8x32xf32>
    %326 = math.tanh %325 : vector<8x32xf32>
    %327 = vector.extract_strided_slice %312 {offsets = [0, 96], sizes = [8, 32], strides = [1, 1]} : vector<8x128xf32> to vector<8x32xf32>
    %328 = arith.negf %327 : vector<8x32xf32>
    %329 = math.exp %328 : vector<8x32xf32>
    %cst_102 = arith.constant 1.000000e+00 : f32
    %330 = vector.broadcast %cst_102 : f32 to vector<8x32xf32>
    %331 = arith.addf %330, %329 : vector<8x32xf32>
    %332 = arith.divf %330, %331 : vector<8x32xf32>
    %333 = arith.mulf %324, %306 : vector<8x32xf32>
    %334 = arith.mulf %318, %326 : vector<8x32xf32>
    %335 = arith.addf %333, %334 : vector<8x32xf32>
    %336 = math.tanh %335 : vector<8x32xf32>
    %337 = arith.mulf %332, %336 : vector<8x32xf32>
    %c16_103 = arith.constant 16 : index
    %c0_104 = arith.constant 0 : index
    %338 = vector.load %arg15[%c16_103, %c0_104] : memref<64x32xf32, #tpu.memory_space<vmem>>, vector<8x32xf32>
    tpu.vector_store %arg15[%c16_103, %c0_104], %337 {strides = array<i32>} : memref<64x32xf32, #tpu.memory_space<vmem>>, vector<8x32xf32>,
    %c24_105 = arith.constant 24 : index
    %c0_106 = arith.constant 0 : index
    %339 = vector.load %arg16[%c24_105, %c0_106] : memref<64x128xf32, #tpu.memory_space<vmem>>, vector<8x128xf32>
    %cst_107 = arith.constant dense<0.000000e+00> : vector<8x128xf32>
    %340 = tpu.matmul %337, %249, %cst_107 {dimension_numbers = #tpu.dot_dimension_numbers<[1], [0], [0], [1], [0, 0, 1, 1], [], []>} : vector<8x32xf32>, vector<32x128xf32>, vector<8x128xf32> -> vector<8x128xf32>
    %341 = arith.addf %339, %340 : vector<8x128xf32>
    %342 = vector.extract_strided_slice %341 {offsets = [0, 0], sizes = [8, 32], strides = [1, 1]} : vector<8x128xf32> to vector<8x32xf32>
    %343 = arith.negf %342 : vector<8x32xf32>
    %344 = math.exp %343 : vector<8x32xf32>
    %cst_108 = arith.constant 1.000000e+00 : f32
    %345 = vector.broadcast %cst_108 : f32 to vector<8x32xf32>
    %346 = arith.addf %345, %344 : vector<8x32xf32>
    %347 = arith.divf %345, %346 : vector<8x32xf32>
    %348 = vector.extract_strided_slice %341 {offsets = [0, 32], sizes = [8, 32], strides = [1, 1]} : vector<8x128xf32> to vector<8x32xf32>
    %349 = arith.negf %348 : vector<8x32xf32>
    %350 = math.exp %349 : vector<8x32xf32>
    %cst_109 = arith.constant 1.000000e+00 : f32
    %351 = vector.broadcast %cst_109 : f32 to vector<8x32xf32>
    %352 = arith.addf %351, %350 : vector<8x32xf32>
    %353 = arith.divf %351, %352 : vector<8x32xf32>
    %354 = vector.extract_strided_slice %341 {offsets = [0, 64], sizes = [8, 32], strides = [1, 1]} : vector<8x128xf32> to vector<8x32xf32>
    %355 = math.tanh %354 : vector<8x32xf32>
    %356 = vector.extract_strided_slice %341 {offsets = [0, 96], sizes = [8, 32], strides = [1, 1]} : vector<8x128xf32> to vector<8x32xf32>
    %357 = arith.negf %356 : vector<8x32xf32>
    %358 = math.exp %357 : vector<8x32xf32>
    %cst_110 = arith.constant 1.000000e+00 : f32
    %359 = vector.broadcast %cst_110 : f32 to vector<8x32xf32>
    %360 = arith.addf %359, %358 : vector<8x32xf32>
    %361 = arith.divf %359, %360 : vector<8x32xf32>
    %362 = arith.mulf %353, %335 : vector<8x32xf32>
    %363 = arith.mulf %347, %355 : vector<8x32xf32>
    %364 = arith.addf %362, %363 : vector<8x32xf32>
    %365 = math.tanh %364 : vector<8x32xf32>
    %366 = arith.mulf %361, %365 : vector<8x32xf32>
    %c24_111 = arith.constant 24 : index
    %c0_112 = arith.constant 0 : index
    %367 = vector.load %arg15[%c24_111, %c0_112] : memref<64x32xf32, #tpu.memory_space<vmem>>, vector<8x32xf32>
    tpu.vector_store %arg15[%c24_111, %c0_112], %366 {strides = array<i32>} : memref<64x32xf32, #tpu.memory_space<vmem>>, vector<8x32xf32>,
    %c32_113 = arith.constant 32 : index
    %c0_114 = arith.constant 0 : index
    %368 = vector.load %arg16[%c32_113, %c0_114] : memref<64x128xf32, #tpu.memory_space<vmem>>, vector<8x128xf32>
    %cst_115 = arith.constant dense<0.000000e+00> : vector<8x128xf32>
    %369 = tpu.matmul %366, %249, %cst_115 {dimension_numbers = #tpu.dot_dimension_numbers<[1], [0], [0], [1], [0, 0, 1, 1], [], []>} : vector<8x32xf32>, vector<32x128xf32>, vector<8x128xf32> -> vector<8x128xf32>
    %370 = arith.addf %368, %369 : vector<8x128xf32>
    %371 = vector.extract_strided_slice %370 {offsets = [0, 0], sizes = [8, 32], strides = [1, 1]} : vector<8x128xf32> to vector<8x32xf32>
    %372 = arith.negf %371 : vector<8x32xf32>
    %373 = math.exp %372 : vector<8x32xf32>
    %cst_116 = arith.constant 1.000000e+00 : f32
    %374 = vector.broadcast %cst_116 : f32 to vector<8x32xf32>
    %375 = arith.addf %374, %373 : vector<8x32xf32>
    %376 = arith.divf %374, %375 : vector<8x32xf32>
    %377 = vector.extract_strided_slice %370 {offsets = [0, 32], sizes = [8, 32], strides = [1, 1]} : vector<8x128xf32> to vector<8x32xf32>
    %378 = arith.negf %377 : vector<8x32xf32>
    %379 = math.exp %378 : vector<8x32xf32>
    %cst_117 = arith.constant 1.000000e+00 : f32
    %380 = vector.broadcast %cst_117 : f32 to vector<8x32xf32>
    %381 = arith.addf %380, %379 : vector<8x32xf32>
    %382 = arith.divf %380, %381 : vector<8x32xf32>
    %383 = vector.extract_strided_slice %370 {offsets = [0, 64], sizes = [8, 32], strides = [1, 1]} : vector<8x128xf32> to vector<8x32xf32>
    %384 = math.tanh %383 : vector<8x32xf32>
    %385 = vector.extract_strided_slice %370 {offsets = [0, 96], sizes = [8, 32], strides = [1, 1]} : vector<8x128xf32> to vector<8x32xf32>
    %386 = arith.negf %385 : vector<8x32xf32>
    %387 = math.exp %386 : vector<8x32xf32>
    %cst_118 = arith.constant 1.000000e+00 : f32
    %388 = vector.broadcast %cst_118 : f32 to vector<8x32xf32>
    %389 = arith.addf %388, %387 : vector<8x32xf32>
    %390 = arith.divf %388, %389 : vector<8x32xf32>
    %391 = arith.mulf %382, %364 : vector<8x32xf32>
    %392 = arith.mulf %376, %384 : vector<8x32xf32>
    %393 = arith.addf %391, %392 : vector<8x32xf32>
    %394 = math.tanh %393 : vector<8x32xf32>
    %395 = arith.mulf %390, %394 : vector<8x32xf32>
    %c32_119 = arith.constant 32 : index
    %c0_120 = arith.constant 0 : index
    %396 = vector.load %arg15[%c32_119, %c0_120] : memref<64x32xf32, #tpu.memory_space<vmem>>, vector<8x32xf32>
    tpu.vector_store %arg15[%c32_119, %c0_120], %395 {strides = array<i32>} : memref<64x32xf32, #tpu.memory_space<vmem>>, vector<8x32xf32>,
    %c40_121 = arith.constant 40 : index
    %c0_122 = arith.constant 0 : index
    %397 = vector.load %arg16[%c40_121, %c0_122] : memref<64x128xf32, #tpu.memory_space<vmem>>, vector<8x128xf32>
    %cst_123 = arith.constant dense<0.000000e+00> : vector<8x128xf32>
    %398 = tpu.matmul %395, %249, %cst_123 {dimension_numbers = #tpu.dot_dimension_numbers<[1], [0], [0], [1], [0, 0, 1, 1], [], []>} : vector<8x32xf32>, vector<32x128xf32>, vector<8x128xf32> -> vector<8x128xf32>
    %399 = arith.addf %397, %398 : vector<8x128xf32>
    %400 = vector.extract_strided_slice %399 {offsets = [0, 0], sizes = [8, 32], strides = [1, 1]} : vector<8x128xf32> to vector<8x32xf32>
    %401 = arith.negf %400 : vector<8x32xf32>
    %402 = math.exp %401 : vector<8x32xf32>
    %cst_124 = arith.constant 1.000000e+00 : f32
    %403 = vector.broadcast %cst_124 : f32 to vector<8x32xf32>
    %404 = arith.addf %403, %402 : vector<8x32xf32>
    %405 = arith.divf %403, %404 : vector<8x32xf32>
    %406 = vector.extract_strided_slice %399 {offsets = [0, 32], sizes = [8, 32], strides = [1, 1]} : vector<8x128xf32> to vector<8x32xf32>
    %407 = arith.negf %406 : vector<8x32xf32>
    %408 = math.exp %407 : vector<8x32xf32>
    %cst_125 = arith.constant 1.000000e+00 : f32
    %409 = vector.broadcast %cst_125 : f32 to vector<8x32xf32>
    %410 = arith.addf %409, %408 : vector<8x32xf32>
    %411 = arith.divf %409, %410 : vector<8x32xf32>
    %412 = vector.extract_strided_slice %399 {offsets = [0, 64], sizes = [8, 32], strides = [1, 1]} : vector<8x128xf32> to vector<8x32xf32>
    %413 = math.tanh %412 : vector<8x32xf32>
    %414 = vector.extract_strided_slice %399 {offsets = [0, 96], sizes = [8, 32], strides = [1, 1]} : vector<8x128xf32> to vector<8x32xf32>
    %415 = arith.negf %414 : vector<8x32xf32>
    %416 = math.exp %415 : vector<8x32xf32>
    %cst_126 = arith.constant 1.000000e+00 : f32
    %417 = vector.broadcast %cst_126 : f32 to vector<8x32xf32>
    %418 = arith.addf %417, %416 : vector<8x32xf32>
    %419 = arith.divf %417, %418 : vector<8x32xf32>
    %420 = arith.mulf %411, %393 : vector<8x32xf32>
    %421 = arith.mulf %405, %413 : vector<8x32xf32>
    %422 = arith.addf %420, %421 : vector<8x32xf32>
    %423 = math.tanh %422 : vector<8x32xf32>
    %424 = arith.mulf %419, %423 : vector<8x32xf32>
    %c40_127 = arith.constant 40 : index
    %c0_128 = arith.constant 0 : index
    %425 = vector.load %arg15[%c40_127, %c0_128] : memref<64x32xf32, #tpu.memory_space<vmem>>, vector<8x32xf32>
    tpu.vector_store %arg15[%c40_127, %c0_128], %424 {strides = array<i32>} : memref<64x32xf32, #tpu.memory_space<vmem>>, vector<8x32xf32>,
    %c48_129 = arith.constant 48 : index
    %c0_130 = arith.constant 0 : index
    %426 = vector.load %arg16[%c48_129, %c0_130] : memref<64x128xf32, #tpu.memory_space<vmem>>, vector<8x128xf32>
    %cst_131 = arith.constant dense<0.000000e+00> : vector<8x128xf32>
    %427 = tpu.matmul %424, %249, %cst_131 {dimension_numbers = #tpu.dot_dimension_numbers<[1], [0], [0], [1], [0, 0, 1, 1], [], []>} : vector<8x32xf32>, vector<32x128xf32>, vector<8x128xf32> -> vector<8x128xf32>
    %428 = arith.addf %426, %427 : vector<8x128xf32>
    %429 = vector.extract_strided_slice %428 {offsets = [0, 0], sizes = [8, 32], strides = [1, 1]} : vector<8x128xf32> to vector<8x32xf32>
    %430 = arith.negf %429 : vector<8x32xf32>
    %431 = math.exp %430 : vector<8x32xf32>
    %cst_132 = arith.constant 1.000000e+00 : f32
    %432 = vector.broadcast %cst_132 : f32 to vector<8x32xf32>
    %433 = arith.addf %432, %431 : vector<8x32xf32>
    %434 = arith.divf %432, %433 : vector<8x32xf32>
    %435 = vector.extract_strided_slice %428 {offsets = [0, 32], sizes = [8, 32], strides = [1, 1]} : vector<8x128xf32> to vector<8x32xf32>
    %436 = arith.negf %435 : vector<8x32xf32>
    %437 = math.exp %436 : vector<8x32xf32>
    %cst_133 = arith.constant 1.000000e+00 : f32
    %438 = vector.broadcast %cst_133 : f32 to vector<8x32xf32>
    %439 = arith.addf %438, %437 : vector<8x32xf32>
    %440 = arith.divf %438, %439 : vector<8x32xf32>
    %441 = vector.extract_strided_slice %428 {offsets = [0, 64], sizes = [8, 32], strides = [1, 1]} : vector<8x128xf32> to vector<8x32xf32>
    %442 = math.tanh %441 : vector<8x32xf32>
    %443 = vector.extract_strided_slice %428 {offsets = [0, 96], sizes = [8, 32], strides = [1, 1]} : vector<8x128xf32> to vector<8x32xf32>
    %444 = arith.negf %443 : vector<8x32xf32>
    %445 = math.exp %444 : vector<8x32xf32>
    %cst_134 = arith.constant 1.000000e+00 : f32
    %446 = vector.broadcast %cst_134 : f32 to vector<8x32xf32>
    %447 = arith.addf %446, %445 : vector<8x32xf32>
    %448 = arith.divf %446, %447 : vector<8x32xf32>
    %449 = arith.mulf %440, %422 : vector<8x32xf32>
    %450 = arith.mulf %434, %442 : vector<8x32xf32>
    %451 = arith.addf %449, %450 : vector<8x32xf32>
    %452 = math.tanh %451 : vector<8x32xf32>
    %453 = arith.mulf %448, %452 : vector<8x32xf32>
    %c48_135 = arith.constant 48 : index
    %c0_136 = arith.constant 0 : index
    %454 = vector.load %arg15[%c48_135, %c0_136] : memref<64x32xf32, #tpu.memory_space<vmem>>, vector<8x32xf32>
    tpu.vector_store %arg15[%c48_135, %c0_136], %453 {strides = array<i32>} : memref<64x32xf32, #tpu.memory_space<vmem>>, vector<8x32xf32>,
    %c56_137 = arith.constant 56 : index
    %c0_138 = arith.constant 0 : index
    %455 = vector.load %arg16[%c56_137, %c0_138] : memref<64x128xf32, #tpu.memory_space<vmem>>, vector<8x128xf32>
    %cst_139 = arith.constant dense<0.000000e+00> : vector<8x128xf32>
    %456 = tpu.matmul %453, %249, %cst_139 {dimension_numbers = #tpu.dot_dimension_numbers<[1], [0], [0], [1], [0, 0, 1, 1], [], []>} : vector<8x32xf32>, vector<32x128xf32>, vector<8x128xf32> -> vector<8x128xf32>
    %457 = arith.addf %455, %456 : vector<8x128xf32>
    %458 = vector.extract_strided_slice %457 {offsets = [0, 0], sizes = [8, 32], strides = [1, 1]} : vector<8x128xf32> to vector<8x32xf32>
    %459 = arith.negf %458 : vector<8x32xf32>
    %460 = math.exp %459 : vector<8x32xf32>
    %cst_140 = arith.constant 1.000000e+00 : f32
    %461 = vector.broadcast %cst_140 : f32 to vector<8x32xf32>
    %462 = arith.addf %461, %460 : vector<8x32xf32>
    %463 = arith.divf %461, %462 : vector<8x32xf32>
    %464 = vector.extract_strided_slice %457 {offsets = [0, 32], sizes = [8, 32], strides = [1, 1]} : vector<8x128xf32> to vector<8x32xf32>
    %465 = arith.negf %464 : vector<8x32xf32>
    %466 = math.exp %465 : vector<8x32xf32>
    %cst_141 = arith.constant 1.000000e+00 : f32
    %467 = vector.broadcast %cst_141 : f32 to vector<8x32xf32>
    %468 = arith.addf %467, %466 : vector<8x32xf32>
    %469 = arith.divf %467, %468 : vector<8x32xf32>
    %470 = vector.extract_strided_slice %457 {offsets = [0, 64], sizes = [8, 32], strides = [1, 1]} : vector<8x128xf32> to vector<8x32xf32>
    %471 = math.tanh %470 : vector<8x32xf32>
    %472 = vector.extract_strided_slice %457 {offsets = [0, 96], sizes = [8, 32], strides = [1, 1]} : vector<8x128xf32> to vector<8x32xf32>
    %473 = arith.negf %472 : vector<8x32xf32>
    %474 = math.exp %473 : vector<8x32xf32>
    %cst_142 = arith.constant 1.000000e+00 : f32
    %475 = vector.broadcast %cst_142 : f32 to vector<8x32xf32>
    %476 = arith.addf %475, %474 : vector<8x32xf32>
    %477 = arith.divf %475, %476 : vector<8x32xf32>
    %478 = arith.mulf %469, %451 : vector<8x32xf32>
    %479 = arith.mulf %463, %471 : vector<8x32xf32>
    %480 = arith.addf %478, %479 : vector<8x32xf32>
    %481 = math.tanh %480 : vector<8x32xf32>
    %482 = arith.mulf %477, %481 : vector<8x32xf32>
    %c56_143 = arith.constant 56 : index
    %c0_144 = arith.constant 0 : index
    %483 = vector.load %arg15[%c56_143, %c0_144] : memref<64x32xf32, #tpu.memory_space<vmem>>, vector<8x32xf32>
    tpu.vector_store %arg15[%c56_143, %c0_144], %482 {strides = array<i32>} : memref<64x32xf32, #tpu.memory_space<vmem>>, vector<8x32xf32>,
    %c0_145 = arith.constant 0 : index
    %c0_146 = arith.constant 0 : index
    %484 = vector.load %arg15[%c0_145, %c0_146] : memref<64x32xf32, #tpu.memory_space<vmem>>, vector<64x32xf32>
    %c0_147 = arith.constant 0 : index
    %c0_148 = arith.constant 0 : index
    %485 = vector.load %arg7[%c0_147, %c0_148] : memref<32x128xf32, #tpu.memory_space<vmem>>, vector<32x128xf32>
    %cst_149 = arith.constant dense<0.000000e+00> : vector<64x128xf32>
    %486 = tpu.matmul %484, %485, %cst_149 {dimension_numbers = #tpu.dot_dimension_numbers<[1], [0], [0], [1], [0, 0, 1, 1], [], []>} : vector<64x32xf32>, vector<32x128xf32>, vector<64x128xf32> -> vector<64x128xf32>
    %c0_150 = arith.constant 0 : index
    %c0_151 = arith.constant 0 : index
    %487 = vector.load %arg9[%c0_150, %c0_151] : memref<1x128xf32, #tpu.memory_space<vmem>>, vector<1x128xf32>
    %488 = vector.broadcast %487 : vector<1x128xf32> to vector<64x128xf32>
    %489 = arith.addf %486, %488 : vector<64x128xf32>
    %c0_152 = arith.constant 0 : index
    %c0_153 = arith.constant 0 : index
    %490 = vector.load %arg16[%c0_152, %c0_153] : memref<64x128xf32, #tpu.memory_space<vmem>>, vector<64x128xf32>
    tpu.vector_store %arg16[%c0_152, %c0_153], %489 {strides = array<i32>} : memref<64x128xf32, #tpu.memory_space<vmem>>, vector<64x128xf32>,
    %c0_154 = arith.constant 0 : index
    %c0_155 = arith.constant 0 : index
    %491 = vector.load %arg8[%c0_154, %c0_155] : memref<32x128xf32, #tpu.memory_space<vmem>>, vector<32x128xf32>
    %cst_156 = arith.constant 0.000000e+00 : f32
    %492 = vector.broadcast %cst_156 : f32 to vector<8x32xf32>
    %cst_157 = arith.constant 0.000000e+00 : f32
    %493 = vector.broadcast %cst_157 : f32 to vector<8x32xf32>
    %c0_158 = arith.constant 0 : index
    %c0_159 = arith.constant 0 : index
    %494 = vector.load %arg16[%c0_158, %c0_159] : memref<64x128xf32, #tpu.memory_space<vmem>>, vector<8x128xf32>
    %cst_160 = arith.constant dense<0.000000e+00> : vector<8x128xf32>
    %495 = tpu.matmul %492, %491, %cst_160 {dimension_numbers = #tpu.dot_dimension_numbers<[1], [0], [0], [1], [0, 0, 1, 1], [], []>} : vector<8x32xf32>, vector<32x128xf32>, vector<8x128xf32> -> vector<8x128xf32>
    %496 = arith.addf %494, %495 : vector<8x128xf32>
    %497 = vector.extract_strided_slice %496 {offsets = [0, 0], sizes = [8, 32], strides = [1, 1]} : vector<8x128xf32> to vector<8x32xf32>
    %498 = arith.negf %497 : vector<8x32xf32>
    %499 = math.exp %498 : vector<8x32xf32>
    %cst_161 = arith.constant 1.000000e+00 : f32
    %500 = vector.broadcast %cst_161 : f32 to vector<8x32xf32>
    %501 = arith.addf %500, %499 : vector<8x32xf32>
    %502 = arith.divf %500, %501 : vector<8x32xf32>
    %503 = vector.extract_strided_slice %496 {offsets = [0, 32], sizes = [8, 32], strides = [1, 1]} : vector<8x128xf32> to vector<8x32xf32>
    %504 = arith.negf %503 : vector<8x32xf32>
    %505 = math.exp %504 : vector<8x32xf32>
    %cst_162 = arith.constant 1.000000e+00 : f32
    %506 = vector.broadcast %cst_162 : f32 to vector<8x32xf32>
    %507 = arith.addf %506, %505 : vector<8x32xf32>
    %508 = arith.divf %506, %507 : vector<8x32xf32>
    %509 = vector.extract_strided_slice %496 {offsets = [0, 64], sizes = [8, 32], strides = [1, 1]} : vector<8x128xf32> to vector<8x32xf32>
    %510 = math.tanh %509 : vector<8x32xf32>
    %511 = vector.extract_strided_slice %496 {offsets = [0, 96], sizes = [8, 32], strides = [1, 1]} : vector<8x128xf32> to vector<8x32xf32>
    %512 = arith.negf %511 : vector<8x32xf32>
    %513 = math.exp %512 : vector<8x32xf32>
    %cst_163 = arith.constant 1.000000e+00 : f32
    %514 = vector.broadcast %cst_163 : f32 to vector<8x32xf32>
    %515 = arith.addf %514, %513 : vector<8x32xf32>
    %516 = arith.divf %514, %515 : vector<8x32xf32>
    %517 = arith.mulf %508, %493 : vector<8x32xf32>
    %518 = arith.mulf %502, %510 : vector<8x32xf32>
    %519 = arith.addf %517, %518 : vector<8x32xf32>
    %520 = math.tanh %519 : vector<8x32xf32>
    %521 = arith.mulf %516, %520 : vector<8x32xf32>
    %c8_164 = arith.constant 8 : index
    %c0_165 = arith.constant 0 : index
    %522 = vector.load %arg16[%c8_164, %c0_165] : memref<64x128xf32, #tpu.memory_space<vmem>>, vector<8x128xf32>
    %cst_166 = arith.constant dense<0.000000e+00> : vector<8x128xf32>
    %523 = tpu.matmul %521, %491, %cst_166 {dimension_numbers = #tpu.dot_dimension_numbers<[1], [0], [0], [1], [0, 0, 1, 1], [], []>} : vector<8x32xf32>, vector<32x128xf32>, vector<8x128xf32> -> vector<8x128xf32>
    %524 = arith.addf %522, %523 : vector<8x128xf32>
    %525 = vector.extract_strided_slice %524 {offsets = [0, 0], sizes = [8, 32], strides = [1, 1]} : vector<8x128xf32> to vector<8x32xf32>
    %526 = arith.negf %525 : vector<8x32xf32>
    %527 = math.exp %526 : vector<8x32xf32>
    %cst_167 = arith.constant 1.000000e+00 : f32
    %528 = vector.broadcast %cst_167 : f32 to vector<8x32xf32>
    %529 = arith.addf %528, %527 : vector<8x32xf32>
    %530 = arith.divf %528, %529 : vector<8x32xf32>
    %531 = vector.extract_strided_slice %524 {offsets = [0, 32], sizes = [8, 32], strides = [1, 1]} : vector<8x128xf32> to vector<8x32xf32>
    %532 = arith.negf %531 : vector<8x32xf32>
    %533 = math.exp %532 : vector<8x32xf32>
    %cst_168 = arith.constant 1.000000e+00 : f32
    %534 = vector.broadcast %cst_168 : f32 to vector<8x32xf32>
    %535 = arith.addf %534, %533 : vector<8x32xf32>
    %536 = arith.divf %534, %535 : vector<8x32xf32>
    %537 = vector.extract_strided_slice %524 {offsets = [0, 64], sizes = [8, 32], strides = [1, 1]} : vector<8x128xf32> to vector<8x32xf32>
    %538 = math.tanh %537 : vector<8x32xf32>
    %539 = vector.extract_strided_slice %524 {offsets = [0, 96], sizes = [8, 32], strides = [1, 1]} : vector<8x128xf32> to vector<8x32xf32>
    %540 = arith.negf %539 : vector<8x32xf32>
    %541 = math.exp %540 : vector<8x32xf32>
    %cst_169 = arith.constant 1.000000e+00 : f32
    %542 = vector.broadcast %cst_169 : f32 to vector<8x32xf32>
    %543 = arith.addf %542, %541 : vector<8x32xf32>
    %544 = arith.divf %542, %543 : vector<8x32xf32>
    %545 = arith.mulf %536, %519 : vector<8x32xf32>
    %546 = arith.mulf %530, %538 : vector<8x32xf32>
    %547 = arith.addf %545, %546 : vector<8x32xf32>
    %548 = math.tanh %547 : vector<8x32xf32>
    %549 = arith.mulf %544, %548 : vector<8x32xf32>
    %c16_170 = arith.constant 16 : index
    %c0_171 = arith.constant 0 : index
    %550 = vector.load %arg16[%c16_170, %c0_171] : memref<64x128xf32, #tpu.memory_space<vmem>>, vector<8x128xf32>
    %cst_172 = arith.constant dense<0.000000e+00> : vector<8x128xf32>
    %551 = tpu.matmul %549, %491, %cst_172 {dimension_numbers = #tpu.dot_dimension_numbers<[1], [0], [0], [1], [0, 0, 1, 1], [], []>} : vector<8x32xf32>, vector<32x128xf32>, vector<8x128xf32> -> vector<8x128xf32>
    %552 = arith.addf %550, %551 : vector<8x128xf32>
    %553 = vector.extract_strided_slice %552 {offsets = [0, 0], sizes = [8, 32], strides = [1, 1]} : vector<8x128xf32> to vector<8x32xf32>
    %554 = arith.negf %553 : vector<8x32xf32>
    %555 = math.exp %554 : vector<8x32xf32>
    %cst_173 = arith.constant 1.000000e+00 : f32
    %556 = vector.broadcast %cst_173 : f32 to vector<8x32xf32>
    %557 = arith.addf %556, %555 : vector<8x32xf32>
    %558 = arith.divf %556, %557 : vector<8x32xf32>
    %559 = vector.extract_strided_slice %552 {offsets = [0, 32], sizes = [8, 32], strides = [1, 1]} : vector<8x128xf32> to vector<8x32xf32>
    %560 = arith.negf %559 : vector<8x32xf32>
    %561 = math.exp %560 : vector<8x32xf32>
    %cst_174 = arith.constant 1.000000e+00 : f32
    %562 = vector.broadcast %cst_174 : f32 to vector<8x32xf32>
    %563 = arith.addf %562, %561 : vector<8x32xf32>
    %564 = arith.divf %562, %563 : vector<8x32xf32>
    %565 = vector.extract_strided_slice %552 {offsets = [0, 64], sizes = [8, 32], strides = [1, 1]} : vector<8x128xf32> to vector<8x32xf32>
    %566 = math.tanh %565 : vector<8x32xf32>
    %567 = vector.extract_strided_slice %552 {offsets = [0, 96], sizes = [8, 32], strides = [1, 1]} : vector<8x128xf32> to vector<8x32xf32>
    %568 = arith.negf %567 : vector<8x32xf32>
    %569 = math.exp %568 : vector<8x32xf32>
    %cst_175 = arith.constant 1.000000e+00 : f32
    %570 = vector.broadcast %cst_175 : f32 to vector<8x32xf32>
    %571 = arith.addf %570, %569 : vector<8x32xf32>
    %572 = arith.divf %570, %571 : vector<8x32xf32>
    %573 = arith.mulf %564, %547 : vector<8x32xf32>
    %574 = arith.mulf %558, %566 : vector<8x32xf32>
    %575 = arith.addf %573, %574 : vector<8x32xf32>
    %576 = math.tanh %575 : vector<8x32xf32>
    %577 = arith.mulf %572, %576 : vector<8x32xf32>
    %c24_176 = arith.constant 24 : index
    %c0_177 = arith.constant 0 : index
    %578 = vector.load %arg16[%c24_176, %c0_177] : memref<64x128xf32, #tpu.memory_space<vmem>>, vector<8x128xf32>
    %cst_178 = arith.constant dense<0.000000e+00> : vector<8x128xf32>
    %579 = tpu.matmul %577, %491, %cst_178 {dimension_numbers = #tpu.dot_dimension_numbers<[1], [0], [0], [1], [0, 0, 1, 1], [], []>} : vector<8x32xf32>, vector<32x128xf32>, vector<8x128xf32> -> vector<8x128xf32>
    %580 = arith.addf %578, %579 : vector<8x128xf32>
    %581 = vector.extract_strided_slice %580 {offsets = [0, 0], sizes = [8, 32], strides = [1, 1]} : vector<8x128xf32> to vector<8x32xf32>
    %582 = arith.negf %581 : vector<8x32xf32>
    %583 = math.exp %582 : vector<8x32xf32>
    %cst_179 = arith.constant 1.000000e+00 : f32
    %584 = vector.broadcast %cst_179 : f32 to vector<8x32xf32>
    %585 = arith.addf %584, %583 : vector<8x32xf32>
    %586 = arith.divf %584, %585 : vector<8x32xf32>
    %587 = vector.extract_strided_slice %580 {offsets = [0, 32], sizes = [8, 32], strides = [1, 1]} : vector<8x128xf32> to vector<8x32xf32>
    %588 = arith.negf %587 : vector<8x32xf32>
    %589 = math.exp %588 : vector<8x32xf32>
    %cst_180 = arith.constant 1.000000e+00 : f32
    %590 = vector.broadcast %cst_180 : f32 to vector<8x32xf32>
    %591 = arith.addf %590, %589 : vector<8x32xf32>
    %592 = arith.divf %590, %591 : vector<8x32xf32>
    %593 = vector.extract_strided_slice %580 {offsets = [0, 64], sizes = [8, 32], strides = [1, 1]} : vector<8x128xf32> to vector<8x32xf32>
    %594 = math.tanh %593 : vector<8x32xf32>
    %595 = vector.extract_strided_slice %580 {offsets = [0, 96], sizes = [8, 32], strides = [1, 1]} : vector<8x128xf32> to vector<8x32xf32>
    %596 = arith.negf %595 : vector<8x32xf32>
    %597 = math.exp %596 : vector<8x32xf32>
    %cst_181 = arith.constant 1.000000e+00 : f32
    %598 = vector.broadcast %cst_181 : f32 to vector<8x32xf32>
    %599 = arith.addf %598, %597 : vector<8x32xf32>
    %600 = arith.divf %598, %599 : vector<8x32xf32>
    %601 = arith.mulf %592, %575 : vector<8x32xf32>
    %602 = arith.mulf %586, %594 : vector<8x32xf32>
    %603 = arith.addf %601, %602 : vector<8x32xf32>
    %604 = math.tanh %603 : vector<8x32xf32>
    %605 = arith.mulf %600, %604 : vector<8x32xf32>
    %c32_182 = arith.constant 32 : index
    %c0_183 = arith.constant 0 : index
    %606 = vector.load %arg16[%c32_182, %c0_183] : memref<64x128xf32, #tpu.memory_space<vmem>>, vector<8x128xf32>
    %cst_184 = arith.constant dense<0.000000e+00> : vector<8x128xf32>
    %607 = tpu.matmul %605, %491, %cst_184 {dimension_numbers = #tpu.dot_dimension_numbers<[1], [0], [0], [1], [0, 0, 1, 1], [], []>} : vector<8x32xf32>, vector<32x128xf32>, vector<8x128xf32> -> vector<8x128xf32>
    %608 = arith.addf %606, %607 : vector<8x128xf32>
    %609 = vector.extract_strided_slice %608 {offsets = [0, 0], sizes = [8, 32], strides = [1, 1]} : vector<8x128xf32> to vector<8x32xf32>
    %610 = arith.negf %609 : vector<8x32xf32>
    %611 = math.exp %610 : vector<8x32xf32>
    %cst_185 = arith.constant 1.000000e+00 : f32
    %612 = vector.broadcast %cst_185 : f32 to vector<8x32xf32>
    %613 = arith.addf %612, %611 : vector<8x32xf32>
    %614 = arith.divf %612, %613 : vector<8x32xf32>
    %615 = vector.extract_strided_slice %608 {offsets = [0, 32], sizes = [8, 32], strides = [1, 1]} : vector<8x128xf32> to vector<8x32xf32>
    %616 = arith.negf %615 : vector<8x32xf32>
    %617 = math.exp %616 : vector<8x32xf32>
    %cst_186 = arith.constant 1.000000e+00 : f32
    %618 = vector.broadcast %cst_186 : f32 to vector<8x32xf32>
    %619 = arith.addf %618, %617 : vector<8x32xf32>
    %620 = arith.divf %618, %619 : vector<8x32xf32>
    %621 = vector.extract_strided_slice %608 {offsets = [0, 64], sizes = [8, 32], strides = [1, 1]} : vector<8x128xf32> to vector<8x32xf32>
    %622 = math.tanh %621 : vector<8x32xf32>
    %623 = vector.extract_strided_slice %608 {offsets = [0, 96], sizes = [8, 32], strides = [1, 1]} : vector<8x128xf32> to vector<8x32xf32>
    %624 = arith.negf %623 : vector<8x32xf32>
    %625 = math.exp %624 : vector<8x32xf32>
    %cst_187 = arith.constant 1.000000e+00 : f32
    %626 = vector.broadcast %cst_187 : f32 to vector<8x32xf32>
    %627 = arith.addf %626, %625 : vector<8x32xf32>
    %628 = arith.divf %626, %627 : vector<8x32xf32>
    %629 = arith.mulf %620, %603 : vector<8x32xf32>
    %630 = arith.mulf %614, %622 : vector<8x32xf32>
    %631 = arith.addf %629, %630 : vector<8x32xf32>
    %632 = math.tanh %631 : vector<8x32xf32>
    %633 = arith.mulf %628, %632 : vector<8x32xf32>
    %c40_188 = arith.constant 40 : index
    %c0_189 = arith.constant 0 : index
    %634 = vector.load %arg16[%c40_188, %c0_189] : memref<64x128xf32, #tpu.memory_space<vmem>>, vector<8x128xf32>
    %cst_190 = arith.constant dense<0.000000e+00> : vector<8x128xf32>
    %635 = tpu.matmul %633, %491, %cst_190 {dimension_numbers = #tpu.dot_dimension_numbers<[1], [0], [0], [1], [0, 0, 1, 1], [], []>} : vector<8x32xf32>, vector<32x128xf32>, vector<8x128xf32> -> vector<8x128xf32>
    %636 = arith.addf %634, %635 : vector<8x128xf32>
    %637 = vector.extract_strided_slice %636 {offsets = [0, 0], sizes = [8, 32], strides = [1, 1]} : vector<8x128xf32> to vector<8x32xf32>
    %638 = arith.negf %637 : vector<8x32xf32>
    %639 = math.exp %638 : vector<8x32xf32>
    %cst_191 = arith.constant 1.000000e+00 : f32
    %640 = vector.broadcast %cst_191 : f32 to vector<8x32xf32>
    %641 = arith.addf %640, %639 : vector<8x32xf32>
    %642 = arith.divf %640, %641 : vector<8x32xf32>
    %643 = vector.extract_strided_slice %636 {offsets = [0, 32], sizes = [8, 32], strides = [1, 1]} : vector<8x128xf32> to vector<8x32xf32>
    %644 = arith.negf %643 : vector<8x32xf32>
    %645 = math.exp %644 : vector<8x32xf32>
    %cst_192 = arith.constant 1.000000e+00 : f32
    %646 = vector.broadcast %cst_192 : f32 to vector<8x32xf32>
    %647 = arith.addf %646, %645 : vector<8x32xf32>
    %648 = arith.divf %646, %647 : vector<8x32xf32>
    %649 = vector.extract_strided_slice %636 {offsets = [0, 64], sizes = [8, 32], strides = [1, 1]} : vector<8x128xf32> to vector<8x32xf32>
    %650 = math.tanh %649 : vector<8x32xf32>
    %651 = vector.extract_strided_slice %636 {offsets = [0, 96], sizes = [8, 32], strides = [1, 1]} : vector<8x128xf32> to vector<8x32xf32>
    %652 = arith.negf %651 : vector<8x32xf32>
    %653 = math.exp %652 : vector<8x32xf32>
    %cst_193 = arith.constant 1.000000e+00 : f32
    %654 = vector.broadcast %cst_193 : f32 to vector<8x32xf32>
    %655 = arith.addf %654, %653 : vector<8x32xf32>
    %656 = arith.divf %654, %655 : vector<8x32xf32>
    %657 = arith.mulf %648, %631 : vector<8x32xf32>
    %658 = arith.mulf %642, %650 : vector<8x32xf32>
    %659 = arith.addf %657, %658 : vector<8x32xf32>
    %660 = math.tanh %659 : vector<8x32xf32>
    %661 = arith.mulf %656, %660 : vector<8x32xf32>
    %c48_194 = arith.constant 48 : index
    %c0_195 = arith.constant 0 : index
    %662 = vector.load %arg16[%c48_194, %c0_195] : memref<64x128xf32, #tpu.memory_space<vmem>>, vector<8x128xf32>
    %cst_196 = arith.constant dense<0.000000e+00> : vector<8x128xf32>
    %663 = tpu.matmul %661, %491, %cst_196 {dimension_numbers = #tpu.dot_dimension_numbers<[1], [0], [0], [1], [0, 0, 1, 1], [], []>} : vector<8x32xf32>, vector<32x128xf32>, vector<8x128xf32> -> vector<8x128xf32>
    %664 = arith.addf %662, %663 : vector<8x128xf32>
    %665 = vector.extract_strided_slice %664 {offsets = [0, 0], sizes = [8, 32], strides = [1, 1]} : vector<8x128xf32> to vector<8x32xf32>
    %666 = arith.negf %665 : vector<8x32xf32>
    %667 = math.exp %666 : vector<8x32xf32>
    %cst_197 = arith.constant 1.000000e+00 : f32
    %668 = vector.broadcast %cst_197 : f32 to vector<8x32xf32>
    %669 = arith.addf %668, %667 : vector<8x32xf32>
    %670 = arith.divf %668, %669 : vector<8x32xf32>
    %671 = vector.extract_strided_slice %664 {offsets = [0, 32], sizes = [8, 32], strides = [1, 1]} : vector<8x128xf32> to vector<8x32xf32>
    %672 = arith.negf %671 : vector<8x32xf32>
    %673 = math.exp %672 : vector<8x32xf32>
    %cst_198 = arith.constant 1.000000e+00 : f32
    %674 = vector.broadcast %cst_198 : f32 to vector<8x32xf32>
    %675 = arith.addf %674, %673 : vector<8x32xf32>
    %676 = arith.divf %674, %675 : vector<8x32xf32>
    %677 = vector.extract_strided_slice %664 {offsets = [0, 64], sizes = [8, 32], strides = [1, 1]} : vector<8x128xf32> to vector<8x32xf32>
    %678 = math.tanh %677 : vector<8x32xf32>
    %679 = vector.extract_strided_slice %664 {offsets = [0, 96], sizes = [8, 32], strides = [1, 1]} : vector<8x128xf32> to vector<8x32xf32>
    %680 = arith.negf %679 : vector<8x32xf32>
    %681 = math.exp %680 : vector<8x32xf32>
    %cst_199 = arith.constant 1.000000e+00 : f32
    %682 = vector.broadcast %cst_199 : f32 to vector<8x32xf32>
    %683 = arith.addf %682, %681 : vector<8x32xf32>
    %684 = arith.divf %682, %683 : vector<8x32xf32>
    %685 = arith.mulf %676, %659 : vector<8x32xf32>
    %686 = arith.mulf %670, %678 : vector<8x32xf32>
    %687 = arith.addf %685, %686 : vector<8x32xf32>
    %688 = math.tanh %687 : vector<8x32xf32>
    %689 = arith.mulf %684, %688 : vector<8x32xf32>
    %c56_200 = arith.constant 56 : index
    %c0_201 = arith.constant 0 : index
    %690 = vector.load %arg16[%c56_200, %c0_201] : memref<64x128xf32, #tpu.memory_space<vmem>>, vector<8x128xf32>
    %cst_202 = arith.constant dense<0.000000e+00> : vector<8x128xf32>
    %691 = tpu.matmul %689, %491, %cst_202 {dimension_numbers = #tpu.dot_dimension_numbers<[1], [0], [0], [1], [0, 0, 1, 1], [], []>} : vector<8x32xf32>, vector<32x128xf32>, vector<8x128xf32> -> vector<8x128xf32>
    %692 = arith.addf %690, %691 : vector<8x128xf32>
    %693 = vector.extract_strided_slice %692 {offsets = [0, 0], sizes = [8, 32], strides = [1, 1]} : vector<8x128xf32> to vector<8x32xf32>
    %694 = arith.negf %693 : vector<8x32xf32>
    %695 = math.exp %694 : vector<8x32xf32>
    %cst_203 = arith.constant 1.000000e+00 : f32
    %696 = vector.broadcast %cst_203 : f32 to vector<8x32xf32>
    %697 = arith.addf %696, %695 : vector<8x32xf32>
    %698 = arith.divf %696, %697 : vector<8x32xf32>
    %699 = vector.extract_strided_slice %692 {offsets = [0, 32], sizes = [8, 32], strides = [1, 1]} : vector<8x128xf32> to vector<8x32xf32>
    %700 = arith.negf %699 : vector<8x32xf32>
    %701 = math.exp %700 : vector<8x32xf32>
    %cst_204 = arith.constant 1.000000e+00 : f32
    %702 = vector.broadcast %cst_204 : f32 to vector<8x32xf32>
    %703 = arith.addf %702, %701 : vector<8x32xf32>
    %704 = arith.divf %702, %703 : vector<8x32xf32>
    %705 = vector.extract_strided_slice %692 {offsets = [0, 64], sizes = [8, 32], strides = [1, 1]} : vector<8x128xf32> to vector<8x32xf32>
    %706 = math.tanh %705 : vector<8x32xf32>
    %707 = vector.extract_strided_slice %692 {offsets = [0, 96], sizes = [8, 32], strides = [1, 1]} : vector<8x128xf32> to vector<8x32xf32>
    %708 = arith.negf %707 : vector<8x32xf32>
    %709 = math.exp %708 : vector<8x32xf32>
    %cst_205 = arith.constant 1.000000e+00 : f32
    %710 = vector.broadcast %cst_205 : f32 to vector<8x32xf32>
    %711 = arith.addf %710, %709 : vector<8x32xf32>
    %712 = arith.divf %710, %711 : vector<8x32xf32>
    %713 = arith.mulf %704, %687 : vector<8x32xf32>
    %714 = arith.mulf %698, %706 : vector<8x32xf32>
    %715 = arith.addf %713, %714 : vector<8x32xf32>
    %716 = math.tanh %715 : vector<8x32xf32>
    %717 = arith.mulf %712, %716 : vector<8x32xf32>
    %c0_206 = arith.constant 0 : index
    %c0_207 = arith.constant 0 : index
    %718 = vector.load %arg10[%c0_206, %c0_207] : memref<32x128xf32, #tpu.memory_space<vmem>>, vector<32x128xf32>
    %cst_208 = arith.constant dense<0.000000e+00> : vector<8x128xf32>
    %719 = tpu.matmul %717, %718, %cst_208 {dimension_numbers = #tpu.dot_dimension_numbers<[1], [0], [0], [1], [0, 0, 1, 1], [], []>} : vector<8x32xf32>, vector<32x128xf32>, vector<8x128xf32> -> vector<8x128xf32>
    %c0_209 = arith.constant 0 : index
    %c0_210 = arith.constant 0 : index
    %720 = vector.load %arg11[%c0_209, %c0_210] : memref<1x128xf32, #tpu.memory_space<vmem>>, vector<1x128xf32>
    %721 = vector.broadcast %720 : vector<1x128xf32> to vector<8x128xf32>
    %722 = arith.addf %719, %721 : vector<8x128xf32>
    %cst_211 = arith.constant 0.000000e+00 : f32
    %723 = vector.broadcast %cst_211 : f32 to vector<8x128xf32>
    %724 = arith.maximumf %722, %723 : vector<8x128xf32>
    %c0_212 = arith.constant 0 : index
    %c0_213 = arith.constant 0 : index
    %725 = vector.load %arg12[%c0_212, %c0_213] : memref<128x128xf32, #tpu.memory_space<vmem>>, vector<128x128xf32>
    %cst_214 = arith.constant dense<0.000000e+00> : vector<8x128xf32>
    %726 = tpu.matmul %724, %725, %cst_214 {dimension_numbers = #tpu.dot_dimension_numbers<[1], [0], [0], [1], [0, 0, 1, 1], [], []>} : vector<8x128xf32>, vector<128x128xf32>, vector<8x128xf32> -> vector<8x128xf32>
    %c0_215 = arith.constant 0 : index
    %c0_216 = arith.constant 0 : index
    %727 = vector.load %arg13[%c0_215, %c0_216] : memref<1x128xf32, #tpu.memory_space<vmem>>, vector<1x128xf32>
    %728 = vector.broadcast %727 : vector<1x128xf32> to vector<8x128xf32>
    %729 = arith.addf %726, %728 : vector<8x128xf32>
    %cst_217 = arith.constant dense<0xFF800000> : vector<8xf32>
    %730 = vector.multi_reduction <maximumf>, %729, %cst_217 [1] : vector<8x128xf32> to vector<8xf32>
    %731 = vector.shape_cast %730 : vector<8xf32> to vector<8x1xf32>
    %732 = vector.broadcast %731 : vector<8x1xf32> to vector<8x128xf32>
    %733 = arith.subf %729, %732 : vector<8x128xf32>
    %734 = math.exp %733 : vector<8x128xf32>
    %cst_218 = arith.constant dense<0.000000e+00> : vector<8xf32>
    %735 = vector.multi_reduction <add>, %734, %cst_218 [1] : vector<8x128xf32> to vector<8xf32>
    %736 = vector.shape_cast %735 : vector<8xf32> to vector<8x1xf32>
    %737 = vector.broadcast %736 : vector<8x1xf32> to vector<8x128xf32>
    %738 = arith.divf %734, %737 : vector<8x128xf32>
    %c0_219 = arith.constant 0 : index
    %c0_220 = arith.constant 0 : index
    %739 = vector.load %arg14[%c0_219, %c0_220] : memref<8x128xf32, #tpu.memory_space<vmem>>, vector<8x128xf32>
    tpu.vector_store %arg14[%c0_219, %c0_220], %738 {strides = array<i32>} : memref<8x128xf32, #tpu.memory_space<vmem>>, vector<8x128xf32>,
    return
  }
}

</mosaic_0001>

<bundles_post_ra>
// kernel: lstm_classification_forward.1
= control target key start
LH: loop header
LB: loop body
LE: loop exit
PB: predicated region body
PF: predicated region fallthrough
CT: control target
= control target key end

     0   :  { %19 = vsyncpa [#allocation5], 0  ;;  %s5137_s0 = inlined_call_operand.vmem [shape: f32[64,16], index: 0, kind: input, shape index: {}]   ;;  %s5138_s1 = inlined_call_operand.hbm [shape: f32[16,128], index: 1, kind: input, shape index: {}]   ;;  %s5139_s2 = inlined_call_operand.vmem [shape: f32[32,128], index: 2, kind: input, shape index: {}]   ;;  %s5140_s3 = inlined_call_operand.vmem [shape: f32[1,128], index: 3, kind: input, shape index: {}]   ;;  %s5141_s4 = inlined_call_operand.hbm [shape: f32[32,128], index: 4, kind: input, shape index: {}]   ;;  %s5142_s5 = inlined_call_operand.hbm [shape: f32[32,128], index: 5, kind: input, shape index: {}]   ;;  %s5143_s6 = inlined_call_operand.vmem [shape: f32[1,128], index: 6, kind: input, shape index: {}]   ;;  %s5144_s7 = inlined_call_operand.hbm [shape: f32[32,128], index: 7, kind: input, shape index: {}]   ;;  %s5145_s8 = inlined_call_operand.hbm [shape: f32[32,128], index: 8, kind: input, shape index: {}]   ;;  %s5146_s9 = inlined_call_operand.vmem [shape: f32[1,128], index: 9, kind: input, shape index: {}]   ;;  %s5147_s10 = inlined_call_operand.hbm [shape: f32[32,128], index: 10, kind: input, shape index: {}]   ;;  %s5148_s11 = inlined_call_operand.vmem [shape: f32[1,128], index: 11, kind: input, shape index: {}]   ;;  %s5149_s12 = inlined_call_operand.vmem [shape: f32[128,128], index: 12, kind: input, shape index: {}]   ;;  %s5150_s13 = inlined_call_operand.vmem [shape: f32[1,128], index: 13, kind: input, shape index: {}]   ;;  %s5151_s14 = inlined_call_operand.vmem [shape: f32[8,128], index: 14, kind: output, shape index: {}]  }
   0x1   :  { %20 = vsyncpa [#allocation7], 0 }
   0x2   :  { %21 = vsyncpa [#allocation10], 0 }
   0x3   :  { %22 = vsyncpa [#allocation13], 0  ;;  %s4417_s29 = smov [#allocation6]   ;;  %s4418_s15 = smov [#allocation9]  }
   0x4   :  { %s46_s30 = sshll.u32 %s4417_s29, 4  ;;  %s72_s16 = sshll.u32 %s4418_s15, 4  ;;  %s47_s30 = int_to_ptr.vmem [resolvable:$true] %s46_s30  ;;  %s4505_s16 = int_to_ptr.vmem [resolvable:$true] %s72_s16 }
   0x5   :  { %s4277_s19 = scalar_lea.hbm %s5141_s4, 512 }
   0x6   :  { %p4278_p0 = scmp.ne.s32.totalorder %s5141_s4, %s4277_s19  ;;  %p4281_p1 = scmp.lt.u32.totalorder %s4277_s19, %s5141_s4 }
   0x8   :  { %p4283_p2 = pnand %p4281_p1, %p4278_p0 }
   0xa   :  { %4286 = shalt.err (!%p4283_p2)
}
   0xb   :  { %s4287_s24 = scalar_lea.vmem %s47_s30, 512  ;;  %p4292_p4 = scmp.lt.s32.totalorder %s47_s30, %s47_s30 }
   0xc   :  { %p4288_p3 = scmp.ne.s32.totalorder %s47_s30, %s4287_s24  ;;  %p4293_p5 = scmp.lt.s32.totalorder %s4287_s24, %s4287_s24 }
   0xe   :  { %p4294_p6 = por %p4293_p5, %p4292_p4 }
  0x10   :  { %p4295_p7 = pnand %p4294_p6, %p4288_p3 }
  0x12   :  { %4298 = shalt.err (!%p4295_p7)
}
  0x13   :  { %s4419_s25 = smov 128   ;;  %s4420_s26 = smov 8  }
  0x14   :  { %52 = dma.hbm_to_vmem [thread:$0]  %s5141_s4, 512, %s47_s30, [#allocation7], %s4419_s25, %s4419_s25, %s4420_s26  }
  0x15   :  { %s4299_s17 = scalar_lea.hbm %s5144_s7, 512 }
  0x16   :  { %p4300_p8 = scmp.ne.s32.totalorder %s5144_s7, %s4299_s17  ;;  %p4303_p9 = scmp.lt.u32.totalorder %s4299_s17, %s5144_s7 }
  0x18   :  { %p4305_p10 = pnand %p4303_p9, %p4300_p8 }
  0x1a   :  { %4308 = shalt.err (!%p4305_p10)
}
  0x1b   :  { %s4309_s22 = scalar_lea.vmem %s4505_s16, 512  ;;  %p4314_p12 = scmp.lt.s32.totalorder %s4505_s16, %s4505_s16 }
  0x1c   :  { %p4310_p11 = scmp.ne.s32.totalorder %s4505_s16, %s4309_s22  ;;  %p4315_p13 = scmp.lt.s32.totalorder %s4309_s22, %s4309_s22 }
  0x1e   :  { %p4316_p0 = por %p4315_p13, %p4314_p12 }
  0x20   :  { %p4317_p1 = pnand %p4316_p0, %p4310_p11 }
  0x22   :  { %4320 = shalt.err (!%p4317_p1)
}
  0x23   :  { %78 = dma.hbm_to_vmem [thread:$0]  %s5144_s7, 512, %s4505_s16, [#allocation10], %s4419_s25, %s4419_s25, %s4420_s26  }
  0x24   :  { %s4421_s23 = smov [#allocation4]   ;;  %s4422_s27 = smov [#allocation8]  }
  0x25   :  { %s30_s24 = sshll.u32 %s4421_s23, 4  ;;  %s58_s28 = sshll.u32 %s4422_s27, 4  ;;  %s31_s24 = int_to_ptr.vmem [resolvable:$true] %s30_s24  ;;  %s4542_s28 = int_to_ptr.vmem [resolvable:$true] %s58_s28 }
  0x26   :  { %s4321_s17 = scalar_lea.hbm %s5138_s1, 256 }
  0x27   :  { %p4322_p2 = scmp.ne.s32.totalorder %s5138_s1, %s4321_s17  ;;  %p4325_p3 = scmp.lt.u32.totalorder %s4321_s17, %s5138_s1 }
  0x29   :  { %p4327_p4 = pnand %p4325_p3, %p4322_p2 }
  0x2b   :  { %4330 = shalt.err (!%p4327_p4)
}
  0x2c   :  { %s4331_s7 = scalar_lea.vmem %s31_s24, 256  ;;  %p4336_p6 = scmp.lt.s32.totalorder %s31_s24, %s31_s24 }
  0x2d   :  { %p4332_p5 = scmp.ne.s32.totalorder %s31_s24, %s4331_s7  ;;  %p4337_p7 = scmp.lt.s32.totalorder %s4331_s7, %s4331_s7 }
  0x2f   :  { %p4338_p8 = por %p4337_p7, %p4336_p6 }
  0x31   :  { %p4339_p9 = pnand %p4338_p8, %p4332_p5 }
  0x33   :  { %4342 = shalt.err (!%p4339_p9)
}
  0x34   :  { %36 = dma.hbm_to_vmem [thread:$0]  %s5138_s1, 256, %s31_s24, [#allocation5], %s4419_s25, %s4419_s25, %s4420_s26  }
  0x35   :  { %s4343_s23 = scalar_lea.hbm %s5142_s5, 512 }
  0x36   :  { %p4344_p10 = scmp.ne.s32.totalorder %s5142_s5, %s4343_s23  ;;  %p4347_p11 = scmp.lt.u32.totalorder %s4343_s23, %s5142_s5 }
  0x38   :  { %p4349_p12 = pnand %p4347_p11, %p4344_p10 }
  0x3a   :  { %4352 = shalt.err (!%p4349_p12)
}
  0x3b   :  { %s4353_s18 = scalar_lea.vmem %s4542_s28, 512  ;;  %p4358_p0 = scmp.lt.s32.totalorder %s4542_s28, %s4542_s28 }
  0x3c   :  { %p4354_p13 = scmp.ne.s32.totalorder %s4542_s28, %s4353_s18  ;;  %p4359_p1 = scmp.lt.s32.totalorder %s4353_s18, %s4353_s18 }
  0x3e   :  { %p4360_p2 = por %p4359_p1, %p4358_p0 }
  0x40   :  { %p4361_p3 = pnand %p4360_p2, %p4354_p13 }
  0x42   :  { %4364 = shalt.err (!%p4361_p3)
}
  0x43   :  { %64 = dma.hbm_to_vmem [thread:$0]  %s5142_s5, 512, %s4542_s28, [#allocation7], %s4419_s25, %s4419_s25, %s4420_s26  }
  0x44   :  { %s4423_s19 = smov [#allocation11]   ;;  %s4424_s21 = smov [#allocation12]  }
  0x45   :  { %s84_s20 = sshll.u32 %s4423_s19, 4  ;;  %s98_s7 = sshll.u32 %s4424_s21, 4  ;;  %s85_s20 = int_to_ptr.vmem [resolvable:$true] %s84_s20  ;;  %s4579_s7 = int_to_ptr.vmem [resolvable:$true] %s98_s7 }
  0x46   :  { %s4365_s4 = scalar_lea.hbm %s5145_s8, 512 }
  0x47   :  { %p4366_p4 = scmp.ne.s32.totalorder %s5145_s8, %s4365_s4  ;;  %p4369_p5 = scmp.lt.u32.totalorder %s4365_s4, %s5145_s8 }
  0x49   :  { %p4371_p6 = pnand %p4369_p5, %p4366_p4 }
  0x4b   :  { %4374 = shalt.err (!%p4371_p6)
}
  0x4c   :  { %s4375_s5 = scalar_lea.vmem %s85_s20, 512  ;;  %p4380_p8 = scmp.lt.s32.totalorder %s85_s20, %s85_s20 }
  0x4d   :  { %p4376_p7 = scmp.ne.s32.totalorder %s85_s20, %s4375_s5  ;;  %p4381_p9 = scmp.lt.s32.totalorder %s4375_s5, %s4375_s5 }
  0x4f   :  { %p4382_p10 = por %p4381_p9, %p4380_p8 }
  0x51   :  { %p4383_p11 = pnand %p4382_p10, %p4376_p7 }
  0x53   :  { %4386 = shalt.err (!%p4383_p11)
}
  0x54   :  { %90 = dma.hbm_to_vmem [thread:$0]  %s5145_s8, 512, %s85_s20, [#allocation10], %s4419_s25, %s4419_s25, %s4420_s26  }
  0x55   :  { %s4387_s1 = scalar_lea.hbm %s5147_s10, 512 }
  0x56   :  { %p4388_p12 = scmp.ne.s32.totalorder %s5147_s10, %s4387_s1  ;;  %p4391_p13 = scmp.lt.u32.totalorder %s4387_s1, %s5147_s10 }
  0x58   :  { %p4393_p0 = pnand %p4391_p13, %p4388_p12 }
  0x5a   :  { %4396 = shalt.err (!%p4393_p0)
}
  0x5b   :  { %s4397_s22 = scalar_lea.vmem %s4579_s7, 512  ;;  %p4402_p2 = scmp.lt.s32.totalorder %s4579_s7, %s4579_s7 }
  0x5c   :  { %p4398_p1 = scmp.ne.s32.totalorder %s4579_s7, %s4397_s22  ;;  %p4403_p3 = scmp.lt.s32.totalorder %s4397_s22, %s4397_s22 }
  0x5e   :  { %p4404_p4 = por %p4403_p3, %p4402_p2 }
  0x60   :  { %p4405_p5 = pnand %p4404_p4, %p4398_p1 }
  0x62   :  { %4408 = shalt.err (!%p4405_p5)
}
  0x63   :  { %104 = dma.hbm_to_vmem [thread:$0]  %s5147_s10, 512, %s4579_s7, [#allocation13], %s4419_s25, %s4419_s25, %s4420_s26  }
  0x64   :  { %4409 = dma.done.wait [#allocation5], 256  }
  0x65   :  { %4410 = vsyncadd [#allocation5], 4294967040 }
  0x66   :  { %4411 = dma.done.wait [#allocation7], 1024  }
  0x67   :  { %4412 = vsyncadd [#allocation7], 4294966272 }
  0x68   :  { %4413 = dma.done.wait [#allocation10], 1024  }
  0x69   :  { %4414 = vsyncadd [#allocation10], 4294966272 }
  0x6a   :  { %4415 = dma.done.wait [#allocation13], 512  }
  0x6b   :  { %4416 = vsyncadd [#allocation13], 4294966784  ;;  %v4425_v0 = vmov 0.0|0.0   ;;  %vm4426_vm0 = vmmov 0   ;;  %v4427_v1 = vmov 0.0   ;;  %vm146_vm1 = vcmask 130048  }
  0x6c   :  { %3896 = vmatprep.subr.bf16.mxu1 %v4425_v0  ;;  %3565 = vmatprep.mubr.msk.f32.mxu1 %vm4426_vm0, %v4427_v1  ;;  %v137_v2 = vld [vmem:[#allocation4] sm:$0xff]  ;;  %v138_v3 = vld [vmem:[#allocation4 + $0x8] sm:$0xff]  ;;  %v286_v10 = vld [vmem:[%s5139_s2 + $0x10] sm:$0xff]  ;;  %s4429_s26 = smov 32   ;;  %vm289_vm2 = vcmask 261120  }
  0x6d   :  { %v129_v4 = vld [vmem:[%s5137_s0] sm:$0xff]  ;;  %v3874_v5 = vpack.c.bf16 %v138_v3, %v137_v2  ;;  %v285_v7 = vld [vmem:[%s5139_s2 + $0x8] sm:$0xff]  ;;  %v287_v11 = vld [vmem:[%s5139_s2 + $0x18] sm:$0xff] }
  0x6e   :  { %3512 = vmatprep.mubr.msk.f32.mxu0 %vm146_vm1, %v129_v4  ;;  %v284_v6 = vld [vmem:[%s5139_s2] sm:$0xff]  ;;  %v130_v9 = vld [vmem:[%s5137_s0 + $0x8] sm:$0xff]  ;;  %v131_v12 = vld [vmem:[%s5137_s0 + $0x10] sm:$0xff]  ;;  %v4647_v13 = vpack.c.bf16 %v287_v11, %v286_v10 }
  0x6f   :  { %v4629_v8 = vpack.c.bf16 %v285_v7, %v284_v6  ;;  %3875 = vmatprep.subr.bf16.mxu0 %v3874_v5  ;;  %v132_v14 = vld [vmem:[%s5137_s0 + $0x18] sm:$0xff]  ;;  %v133_v15 = vld [vmem:[%s5137_s0 + $0x20] sm:$0xff]  ;;  %v134_v16 = vld [vmem:[%s5137_s0 + $0x28] sm:$0xff] }
  0x70   :  { %3877 = vmatpush3.bf16.msra.mxu0 %v3874_v5  ;;  %v135_v17 = vld [vmem:[%s5137_s0 + $0x30] sm:$0xff]  ;;  %v136_v18 = vld [vmem:[%s5137_s0 + $0x38] sm:$0xff]  ;;  %v3257_v19 = vld [vmem:[%s5140_s3] ss:$0 sm:$0xff]  ;;  %s4428_s3 = smov 64  }
  0x71   :  { %3898 = vmatpush3.bf16.msra.mxu1 %v4629_v8  ;;  %3878 = vmatprep.subr.bf16.mxu0 %v4425_v0 }
  0x72   :  { %3899 = vmatprep.subr.bf16.mxu1 %v4425_v0 }
  0x73   :  { %3513 = vmatmul.mubr.msk.f32.vlgmr.msra.gmra.mrb[0].mxu0 %vm146_vm1, %v130_v9 }
  0x74   :  { %3880 = vmatpush3.bf16.msra.mxu0 %v4629_v8  ;;  %3515 = vmatprep.mubr.msk.f32.mxu0 %vm146_vm1, %v131_v12 }
  0x75   :  { %3881 = vmatprep.subr.bf16.mxu0 %v4425_v0  ;;  %3901 = vmatpush3.bf16.msra.mxu1 %v4647_v13 }
  0x76   :  { %3908 = vmatprep.subr.bf16.mxu1 %v4425_v0 }
  0x77   :  { %3516 = vmatmul.mubr.msk.f32.gmra.mrb[2].mxu0 %vm146_vm1, %v132_v14 }
  0x78   :  { %3518 = vmatprep.mubr.msk.f32.mxu0 %vm146_vm1, %v133_v15  ;;  %3883 = vmatpush3.bf16.msra.mxu0 %v4647_v13 }
  0x79   :  { %3884 = vmatprep.subr.bf16.mxu0 %v4425_v0 }
  0x7b   :  { %3519 = vmatmul.mubr.msk.f32.gmra.mrb[4].mxu0 %vm146_vm1, %v134_v16 }
  0x7c   :  { %3521 = vmatprep.mubr.msk.f32.mxu0 %vm146_vm1, %v135_v17 }
  0x7f   :  { %3522 = vmatmul.mubr.msk.f32.gmra.mrb[6].mxu0 %vm146_vm1, %v136_v18 }
  0x80   :  { %3532 = vmatprep.mubr.msk.f32.mxu0 %vm4426_vm0, %v4427_v1 }
  0x83   :  { %3533 = vmatmul.mubr.f32.vlgmr.msra.gmra.mrb[8].mxu0 %v4427_v1 }
  0x84   :  { %3886 = vmatpush3.bf16.msra.mxu0 %v4629_v8  ;;  %3543 = vmatprep.mubr.msk.f32.mxu0 %vm4426_vm0, %v4427_v1 }
  0x85   :  { %3887 = vmatprep.subr.bf16.mxu0 %v4425_v0 }
  0x88   :  { %3889 = vmatpush3.bf16.msra.mxu0 %v4647_v13 }
  0x89   :  { %3890 = vmatprep.subr.bf16.mxu0 %v4425_v0 }
 0x146   :  { %v3514_v20 = vpop.f32.mrb[0].mxu0 }
 0x147   :  { %v243_v21 = vadd.f32 %v3514_v20, %v3257_v19  ;;  %v237_v22 = vpop.f32.mrb[1].mxu0 }
 0x148   :  { %v238_v35 = vadd.f32 %v3257_v19, %v237_v22 }
 0x14a   :  { %v3517_v23 = vpop.f32.mrb[2].mxu0 }
 0x14b   :  { %v4688_v24 = vadd.f32 %v3517_v23, %v3257_v19  ;;  %v247_v25 = vpop.f32.mrb[3].mxu0 }
 0x14c   :  { %v4690_v26 = vadd.f32 %v3257_v19, %v247_v25 }
 0x14e   :  { %v3520_v27 = vpop.f32.mrb[4].mxu0 }
 0x14f   :  { %v4692_v28 = vadd.f32 %v3520_v27, %v3257_v19  ;;  %v257_v29 = vpop.f32.mrb[5].mxu0 }
 0x150   :  { %v4694_v30 = vadd.f32 %v3257_v19, %v257_v29 }
 0x152   :  { %v3523_v31 = vpop.f32.mrb[6].mxu0 }
 0x153   :  { %v4696_v32 = vadd.f32 %v3523_v31, %v3257_v19  ;;  %v267_v33 = vpop.f32.mrb[7].mxu0 }
 0x154   :  { %v4698_v34 = vadd.f32 %v3257_v19, %v267_v33 }
 0x156   :  { %v359_v36 = vpop.f32.mrb[8].mxu0 }
 0x157   :  { %v363_v37 = vadd.f32 %v359_v36, %v238_v35  ;;  %v3534_v38 = vpop.f32.mrb[9].mxu0 }
 0x159   :  { %4081 = vtanh.f32 %v363_v37  ;;  %v3266_v40 = vmul.f32 -1.442695, %v363_v37 }
 0x15b   :  { %4083 = vpow2.f32 %v3266_v40 }
 0x163   :  { %v4082_v39 = vpop.eup %4081 }
 0x164   :  { %373 = vrot.lane.b32.xlu0 %v4082_v39, %s4428_s3 }
 0x165   :  { %v4084_v41 = vpop.eup %4083 }
 0x166   :  { %v367_v42 = vadd.f32 1.0, %v4084_v41 }
 0x168   :  { %4085 = vrcp.f32 %v367_v42 }
 0x172   :  { %v4086_v43 = vpop.eup %4085 }
 0x173   :  { %v371_v46 = vmul.f32 0.0, %v4086_v43 }
 0x1d6   :  { %v374_v44 = vpop.permute.xlu0 %373 }
 0x1d7   :  { %v376_v45 = vmul.f32 %v4086_v43, %v374_v44 }
 0x1d9   :  { %378 = vrot.lane.b32.xlu0 %v376_v45, %s4429_s26 }
 0x24b   :  { %v379_v47 = vpop.permute.xlu0 %378 }
 0x24c   :  { %v381_v48 = vadd.f32 %v379_v47, %v371_v46 }
 0x24e   :  { %4087 = vtanh.f32 %v381_v48 }
 0x258   :  { %v4088_v49 = vpop.eup %4087 }
 0x259   :  { %384 = vrot.lane.b32.xlu1 %v4088_v49, %s4428_s3 }
 0x2cb   :  { %v385_v50 = vpop.permute.xlu1 %384 }
 0x2cc   :  { %v387_v51 = vmul.f32 %v4086_v43, %v385_v50 }
 0x2ce   :  { %389 = vrot.lane.b32.xlu1 %v387_v51, %s4429_s26 }
 0x340   :  { %v390_v52 = vpop.permute.xlu1 %389 }
 0x341   :  { %392 = vst.msk [vmem:[#allocation2] sm:$0xff] %vm289_vm2, %v390_v52  ;;  %3544 = vmatmul.mubr.msk.f32.vlgmr.msra.gmra.mrb[10].mxu0 %vm289_vm2, %v390_v52 }
 0x342   :  { %3892 = vmatpush3.bf16.msra.mxu0 %v4629_v8  ;;  %3554 = vmatprep.mubr.msk.f32.mxu0 %vm4426_vm0, %v4427_v1 }
 0x343   :  { %3893 = vmatprep.subr.bf16.mxu0 %v4425_v0 }
 0x346   :  { %3895 = vmatpush3.bf16.msra.mxu0 %v4647_v13 }
 0x347   :  { %3902 = vmatprep.subr.bf16.mxu0 %v4425_v0 }
 0x414   :  { %v462_v53 = vpop.f32.mrb[10].mxu0 }
 0x415   :  { %v466_v54 = vadd.f32 %v462_v53, %v243_v21  ;;  %v3545_v55 = vpop.f32.mrb[11].mxu0 }
 0x417   :  { %4089 = vtanh.f32 %v466_v54  ;;  %v3268_v57 = vmul.f32 -1.442695, %v466_v54 }
 0x419   :  { %4091 = vpow2.f32 %v3268_v57 }
 0x421   :  { %v4090_v56 = vpop.eup %4089 }
 0x422   :  { %476 = vrot.lane.b32.xlu0 %v4090_v56, %s4428_s3 }
 0x423   :  { %v4092_v58 = vpop.eup %4091 }
 0x424   :  { %v470_v59 = vadd.f32 1.0, %v4092_v58 }
 0x426   :  { %4093 = vrcp.f32 %v470_v59 }
 0x430   :  { %v4094_v60 = vpop.eup %4093 }
 0x431   :  { %v474_v63 = vmul.f32 %v4094_v60, %v381_v48 }
 0x494   :  { %v477_v61 = vpop.permute.xlu0 %476 }
 0x495   :  { %v479_v62 = vmul.f32 %v4094_v60, %v477_v61 }
 0x497   :  { %481 = vrot.lane.b32.xlu1 %v479_v62, %s4429_s26 }
 0x509   :  { %v482_v2 = vpop.permute.xlu1 %481 }
 0x50a   :  { %v484_v3 = vadd.f32 %v482_v2, %v474_v63 }
 0x50c   :  { %4095 = vtanh.f32 %v484_v3 }
 0x516   :  { %v4096_v4 = vpop.eup %4095 }
 0x517   :  { %487 = vrot.lane.b32.xlu0 %v4096_v4, %s4428_s3 }
 0x589   :  { %v488_v5 = vpop.permute.xlu0 %487 }
 0x58a   :  { %v490_v6 = vmul.f32 %v4094_v60, %v488_v5 }
 0x58c   :  { %492 = vrot.lane.b32.xlu1 %v490_v6, %s4429_s26 }
 0x5fe   :  { %v493_v7 = vpop.permute.xlu1 %492 }
 0x5ff   :  { %495 = vst.msk [vmem:[#allocation2 + $0x8] sm:$0xff] %vm289_vm2, %v493_v7  ;;  %3555 = vmatmul.mubr.msk.f32.vlgmr.msra.gmra.mrb[12].mxu0 %vm289_vm2, %v493_v7 }
 0x600   :  { %3904 = vmatpush3.bf16.msra.mxu0 %v4629_v8  ;;  %3576 = vmatprep.mubr.msk.f32.mxu0 %vm4426_vm0, %v4427_v1 }
 0x601   :  { %3905 = vmatprep.subr.bf16.mxu0 %v4425_v0 }
 0x604   :  { %3907 = vmatpush3.bf16.msra.mxu0 %v4647_v13 }
 0x605   :  { %3914 = vmatprep.subr.bf16.mxu0 %v4425_v0 }
 0x6d2   :  { %v565_v9 = vpop.f32.mrb[12].mxu0 }
 0x6d3   :  { %v569_v10 = vadd.f32 %v565_v9, %v4690_v26  ;;  %v3556_v11 = vpop.f32.mrb[13].mxu0 }
 0x6d5   :  { %4097 = vtanh.f32 %v569_v10  ;;  %v3270_v14 = vmul.f32 -1.442695, %v569_v10 }
 0x6d7   :  { %4099 = vpow2.f32 %v3270_v14 }
 0x6df   :  { %v4098_v12 = vpop.eup %4097 }
 0x6e0   :  { %579 = vrot.lane.b32.xlu0 %v4098_v12, %s4428_s3 }
 0x6e1   :  { %v4100_v15 = vpop.eup %4099 }
 0x6e2   :  { %v573_v16 = vadd.f32 1.0, %v4100_v15  ;;  %v1123_v15 = vld [vmem:[#allocation6 + $0x8] sm:$0xff] }
 0x6e4   :  { %4101 = vrcp.f32 %v573_v16 }
 0x6ee   :  { %v4102_v17 = vpop.eup %4101 }
 0x6ef   :  { %v577_v20 = vmul.f32 %v4102_v17, %v484_v3 }
 0x752   :  { %v580_v18 = vpop.permute.xlu0 %579 }
 0x753   :  { %v582_v19 = vmul.f32 %v4102_v17, %v580_v18 }
 0x755   :  { %584 = vrot.lane.b32.xlu1 %v582_v19, %s4429_s26 }
 0x7c7   :  { %v585_v21 = vpop.permute.xlu1 %584 }
 0x7c8   :  { %v587_v22 = vadd.f32 %v585_v21, %v577_v20  ;;  %v1124_v20 = vld [vmem:[#allocation6 + $0x10] sm:$0xff]  ;;  %v1125_v21 = vld [vmem:[#allocation6 + $0x18] sm:$0xff] }
 0x7ca   :  { %4103 = vtanh.f32 %v587_v22 }
 0x7d4   :  { %v4104_v23 = vpop.eup %4103 }
 0x7d5   :  { %590 = vrot.lane.b32.xlu0 %v4104_v23, %s4428_s3 }
 0x847   :  { %v591_v25 = vpop.permute.xlu0 %590 }
 0x848   :  { %v593_v26 = vmul.f32 %v4102_v17, %v591_v25  ;;  %v1114_v25 = vld [vmem:[#allocation2] sm:$0xff] }
 0x84a   :  { %595 = vrot.lane.b32.xlu1 %v593_v26, %s4429_s26  ;;  %v1115_v26 = vld [vmem:[#allocation2 + $0x8] sm:$0xff] }
 0x8bc   :  { %v596_v27 = vpop.permute.xlu1 %595 }
 0x8bd   :  { %598 = vst.msk [vmem:[#allocation2 + $0x10] sm:$0xff] %vm289_vm2, %v596_v27  ;;  %3566 = vmatmul.mubr.msk.f32.vlgmr.msra.gmra.mrb[0].mxu1 %vm289_vm2, %v596_v27 }
 0x8be   :  { %3910 = vmatpush3.bf16.msra.mxu1 %v4629_v8  ;;  %3587 = vmatprep.mubr.msk.f32.mxu1 %vm4426_vm0, %v4427_v1 }
 0x8bf   :  { %3911 = vmatprep.subr.bf16.mxu1 %v4425_v0 }
 0x8c2   :  { %3913 = vmatpush3.bf16.msra.mxu1 %v4647_v13 }
 0x8c3   :  { %3920 = vmatprep.subr.bf16.mxu1 %v4425_v0 }
 0x8c4   :  { %v1116_v27 = vld [vmem:[#allocation2 + $0x10] sm:$0xff] }
 0x990   :  { %v668_v29 = vpop.f32.mrb[0].mxu1 }
 0x991   :  { %v672_v31 = vadd.f32 %v668_v29, %v4688_v24  ;;  %v3567_v33 = vpop.f32.mrb[1].mxu1 }
 0x993   :  { %4105 = vtanh.f32 %v672_v31  ;;  %v3272_v36 = vmul.f32 -1.442695, %v672_v31 }
 0x995   :  { %4107 = vpow2.f32 %v3272_v36 }
 0x99d   :  { %v4106_v35 = vpop.eup %4105 }
 0x99e   :  { %682 = vrot.lane.b32.xlu0 %v4106_v35, %s4428_s3 }
 0x99f   :  { %v4108_v37 = vpop.eup %4107 }
 0x9a0   :  { %v676_v38 = vadd.f32 1.0, %v4108_v37 }
 0x9a2   :  { %4109 = vrcp.f32 %v676_v38 }
 0x9ac   :  { %v4110_v39 = vpop.eup %4109 }
 0x9ad   :  { %v680_v42 = vmul.f32 %v4110_v39, %v587_v22  ;;  %v3930_v22 = vpack.c.bf16 %v1125_v21, %v1124_v20 }
 0xa10   :  { %v683_v40 = vpop.permute.xlu0 %682 }
 0xa11   :  { %v685_v41 = vmul.f32 %v4110_v39, %v683_v40 }
 0xa13   :  { %687 = vrot.lane.b32.xlu1 %v685_v41, %s4429_s26 }
 0xa85   :  { %v688_v43 = vpop.permute.xlu1 %687 }
 0xa86   :  { %v690_v44 = vadd.f32 %v688_v43, %v680_v42 }
 0xa88   :  { %4111 = vtanh.f32 %v690_v44 }
 0xa92   :  { %v4112_v24 = vpop.eup %4111 }
 0xa93   :  { %693 = vrot.lane.b32.xlu0 %v4112_v24, %s4428_s3 }
 0xb05   :  { %v694_v45 = vpop.permute.xlu0 %693 }
 0xb06   :  { %v696_v46 = vmul.f32 %v4110_v39, %v694_v45 }
 0xb08   :  { %698 = vrot.lane.b32.xlu1 %v696_v46, %s4429_s26 }
 0xb7a   :  { %v699_v47 = vpop.permute.xlu1 %698 }
 0xb7b   :  { %701 = vst.msk [vmem:[#allocation2 + $0x18] sm:$0xff] %vm289_vm2, %v699_v47  ;;  %3577 = vmatmul.mubr.msk.f32.vlgmr.msra.gmra.mrb[14].mxu0 %vm289_vm2, %v699_v47 }
 0xb7c   :  { %3916 = vmatpush3.bf16.msra.mxu0 %v4629_v8  ;;  %3598 = vmatprep.mubr.msk.f32.mxu0 %vm4426_vm0, %v4427_v1 }
 0xb7d   :  { %3917 = vmatprep.subr.bf16.mxu0 %v4425_v0 }
 0xb80   :  { %3919 = vmatpush3.bf16.msra.mxu0 %v4647_v13 }
 0xb82   :  { %v1117_v29 = vld [vmem:[#allocation2 + $0x18] sm:$0xff] }
 0xc4e   :  { %v771_v48 = vpop.f32.mrb[14].mxu0 }
 0xc4f   :  { %v775_v49 = vadd.f32 %v771_v48, %v4694_v30  ;;  %v3578_v50 = vpop.f32.mrb[15].mxu0 }
 0xc51   :  { %4113 = vtanh.f32 %v775_v49  ;;  %v3274_v52 = vmul.f32 -1.442695, %v775_v49 }
 0xc53   :  { %4115 = vpow2.f32 %v3274_v52 }
 0xc5b   :  { %v4114_v51 = vpop.eup %4113 }
 0xc5c   :  { %785 = vrot.lane.b32.xlu0 %v4114_v51, %s4428_s3 }
 0xc5d   :  { %v4116_v53 = vpop.eup %4115 }
 0xc5e   :  { %v779_v54 = vadd.f32 1.0, %v4116_v53  ;;  %v1270_v53 = vld [vmem:[#allocation8] sm:$0xff] }
 0xc60   :  { %4117 = vrcp.f32 %v779_v54  ;;  %v1271_v54 = vld [vmem:[#allocation8 + $0x8] sm:$0xff] }
 0xc6a   :  { %v4118_v55 = vpop.eup %4117 }
 0xc6b   :  { %v783_v58 = vmul.f32 %v4118_v55, %v690_v44 }
 0xcce   :  { %v786_v56 = vpop.permute.xlu0 %785 }
 0xccf   :  { %v788_v57 = vmul.f32 %v4118_v55, %v786_v56  ;;  %v1272_v56 = vld [vmem:[#allocation8 + $0x10] sm:$0xff] }
 0xcd1   :  { %790 = vrot.lane.b32.xlu1 %v788_v57, %s4429_s26  ;;  %v1273_v57 = vld [vmem:[#allocation8 + $0x18] sm:$0xff] }
 0xd43   :  { %v791_v59 = vpop.permute.xlu1 %790 }
 0xd44   :  { %v793_v60 = vadd.f32 %v791_v59, %v783_v58  ;;  %v4797_v58 = vpack.c.bf16 %v1273_v57, %v1272_v56 }
 0xd46   :  { %4119 = vtanh.f32 %v793_v60 }
 0xd50   :  { %v4120_v30 = vpop.eup %4119 }
 0xd51   :  { %796 = vrot.lane.b32.xlu0 %v4120_v30, %s4428_s3 }
 0xdc3   :  { %v797_v61 = vpop.permute.xlu0 %796 }
 0xdc4   :  { %v799_v62 = vmul.f32 %v4118_v55, %v797_v61  ;;  %v4793_v55 = vpack.c.bf16 %v1271_v54, %v1270_v53 }
 0xdc6   :  { %801 = vrot.lane.b32.xlu1 %v799_v62, %s4429_s26 }
 0xe38   :  { %v802_v63 = vpop.permute.xlu1 %801 }
 0xe39   :  { %804 = vst.msk [vmem:[#allocation2 + $0x20] sm:$0xff] %vm289_vm2, %v802_v63  ;;  %3588 = vmatmul.mubr.msk.f32.vlgmr.msra.gmra.mrb[2].mxu1 %vm289_vm2, %v802_v63 }
 0xe3a   :  { %3922 = vmatpush3.bf16.msra.mxu1 %v4629_v8  ;;  %3609 = vmatprep.mubr.msk.f32.mxu1 %vm4426_vm0, %v4427_v1 }
 0xe3b   :  { %3923 = vmatprep.subr.bf16.mxu1 %v4425_v0 }
 0xe3e   :  { %3925 = vmatpush3.bf16.msra.mxu1 %v4647_v13 }
 0xe3f   :  { %3934 = vmatprep.subr.bf16.mxu1 %v4425_v0 }
 0xe40   :  { %v1118_v31 = vld [vmem:[#allocation2 + $0x20] sm:$0xff] }
 0xf0c   :  { %v874_v2 = vpop.f32.mrb[2].mxu1 }
 0xf0d   :  { %v878_v3 = vadd.f32 %v874_v2, %v4692_v28  ;;  %v3589_v4 = vpop.f32.mrb[3].mxu1  ;;  %v1122_v28 = vld [vmem:[#allocation6] sm:$0xff] }
 0xf0e   :  { %v3926_v16 = vpack.c.bf16 %v1123_v15, %v1122_v28 }
 0xf0f   :  { %4121 = vtanh.f32 %v878_v3  ;;  %v3276_v6 = vmul.f32 -1.442695, %v878_v3  ;;  %v4822_v3 = vld [vmem:[%s5143_s6] ss:$0 sm:$0xff] }
 0xf10   :  { %3927 = vmatprep.subr.bf16.mxu0 %v3926_v16 }
 0xf11   :  { %4123 = vpow2.f32 %v3276_v6 }
 0xf19   :  { %v4122_v5 = vpop.eup %4121 }
 0xf1a   :  { %888 = vrot.lane.b32.xlu0 %v4122_v5, %s4428_s3 }
 0xf1b   :  { %v4124_v8 = vpop.eup %4123 }
 0xf1c   :  { %v882_v7 = vadd.f32 1.0, %v4124_v8 }
 0xf1e   :  { %4125 = vrcp.f32 %v882_v7 }
 0xf28   :  { %v4126_v9 = vpop.eup %4125 }
 0xf29   :  { %v886_v13 = vmul.f32 %v4126_v9, %v793_v60 }
 0xf8c   :  { %v889_v10 = vpop.permute.xlu0 %888 }
 0xf8d   :  { %v891_v11 = vmul.f32 %v4126_v9, %v889_v10 }
 0xf8f   :  { %893 = vrot.lane.b32.xlu1 %v891_v11, %s4429_s26 }
0x1001   :  { %v894_v12 = vpop.permute.xlu1 %893 }
0x1002   :  { %v896_v14 = vadd.f32 %v894_v12, %v886_v13 }
0x1004   :  { %4127 = vtanh.f32 %v896_v14 }
0x100e   :  { %v4128_v17 = vpop.eup %4127 }
0x100f   :  { %899 = vrot.lane.b32.xlu0 %v4128_v17, %s4428_s3 }
0x1081   :  { %v900_v18 = vpop.permute.xlu0 %899 }
0x1082   :  { %v902_v19 = vmul.f32 %v4126_v9, %v900_v18 }
0x1084   :  { %904 = vrot.lane.b32.xlu1 %v902_v19, %s4429_s26 }
0x10f6   :  { %v905_v23 = vpop.permute.xlu1 %904 }
0x10f7   :  { %907 = vst.msk [vmem:[#allocation2 + $0x28] sm:$0xff] %vm289_vm2, %v905_v23  ;;  %3599 = vmatmul.mubr.msk.f32.vlgmr.msra.gmra.mrb[16].mxu0 %vm289_vm2, %v905_v23 }
0x10f8   :  { %3929 = vmatpush3.bf16.msra.mxu0 %v3926_v16  ;;  %3620 = vmatprep.mubr.msk.f32.mxu0 %vm289_vm2, %v1114_v25 }
0x10f9   :  { %3931 = vmatprep.subr.bf16.mxu0 %v3930_v22 }
0x10fc   :  { %3933 = vmatpush3.bf16.msra.mxu0 %v3930_v22 }
0x10fd   :  { %3946 = vmatprep.subr.bf16.mxu0 %v4425_v0 }
0x10fe   :  { %v1119_v33 = vld [vmem:[#allocation2 + $0x28] sm:$0xff] }
0x10ff   :  { %3621 = vmatmul.mubr.msk.f32.vlgmr.msra.gmra.mrb[18].mxu0 %vm289_vm2, %v1115_v26 }
0x1100   :  { %3623 = vmatprep.mubr.msk.f32.mxu0 %vm289_vm2, %v1116_v27  ;;  %3948 = vmatpush3.bf16.msra.mxu0 %v4793_v55 }
0x1101   :  { %3949 = vmatprep.subr.bf16.mxu0 %v4425_v0 }
0x1103   :  { %3624 = vmatmul.mubr.msk.f32.gmra.mrb[20].mxu0 %vm289_vm2, %v1117_v29 }
0x1104   :  { %3626 = vmatprep.mubr.msk.f32.mxu0 %vm289_vm2, %v1118_v31  ;;  %3951 = vmatpush3.bf16.msra.mxu0 %v4797_v58 }
0x1105   :  { %3958 = vmatprep.subr.bf16.mxu0 %v4425_v0 }
0x1107   :  { %3627 = vmatmul.mubr.msk.f32.gmra.mrb[22].mxu0 %vm289_vm2, %v1119_v33 }
0x11ca   :  { %v977_v35 = vpop.f32.mrb[16].mxu0 }
0x11cb   :  { %v981_v36 = vadd.f32 %v977_v35, %v4698_v34  ;;  %v3600_v37 = vpop.f32.mrb[17].mxu0 }
0x11cd   :  { %4129 = vtanh.f32 %v981_v36  ;;  %v3278_v24 = vmul.f32 -1.442695, %v981_v36 }
0x11cf   :  { %4131 = vpow2.f32 %v3278_v24 }
0x11d2   :  { %v4777_v38 = vpop.f32.mrb[18].mxu0 }
0x11d3   :  { %v1223_v39 = vpop.f32.mrb[19].mxu0 }
0x11d4   :  { %v1224_v4 = vadd.f32 %v4822_v3, %v1223_v39  ;;  %v1229_v39 = vadd.f32 %v4777_v38, %v4822_v3 }
0x11d6   :  { %v4779_v40 = vpop.f32.mrb[20].mxu0 }
0x11d7   :  { %v4130_v41 = vpop.eup %4129  ;;  %v4781_v42 = vpop.f32.mrb[21].mxu0 }
0x11d8   :  { %991 = vrot.lane.b32.xlu0 %v4130_v41, %s4428_s3 }
0x11d9   :  { %v4132_v45 = vpop.eup %4131 }
0x11da   :  { %v4784_v43 = vpop.f32.mrb[22].mxu0  ;;  %v985_v34 = vadd.f32 1.0, %v4132_v45 }
0x11db   :  { %v4786_v44 = vpop.f32.mrb[23].mxu0 }
0x11dc   :  { %4133 = vrcp.f32 %v985_v34 }
0x11e6   :  { %v4134_v46 = vpop.eup %4133 }
0x11e7   :  { %v989_v49 = vmul.f32 %v4134_v46, %v896_v14 }
0x124a   :  { %v992_v47 = vpop.permute.xlu0 %991 }
0x124b   :  { %v994_v48 = vmul.f32 %v4134_v46, %v992_v47 }
0x124d   :  { %996 = vrot.lane.b32.xlu1 %v994_v48, %s4429_s26 }
0x12bf   :  { %v997_v50 = vpop.permute.xlu1 %996 }
0x12c0   :  { %v4789_v51 = vadd.f32 %v997_v50, %v989_v49 }
0x12c2   :  { %4135 = vtanh.f32 %v4789_v51 }
0x12cc   :  { %v4136_v52 = vpop.eup %4135 }
0x12cd   :  { %1002 = vrot.lane.b32.xlu0 %v4136_v52, %s4428_s3 }
0x133f   :  { %v1003_v59 = vpop.permute.xlu0 %1002 }
0x1340   :  { %v1005_v60 = vmul.f32 %v4134_v46, %v1003_v59 }
0x1342   :  { %1007 = vrot.lane.b32.xlu1 %v1005_v60, %s4429_s26 }
0x13b4   :  { %v1008_v30 = vpop.permute.xlu1 %1007 }
0x13b5   :  { %1010 = vst.msk [vmem:[#allocation2 + $0x30] sm:$0xff] %vm289_vm2, %v1008_v30  ;;  %3610 = vmatmul.mubr.msk.f32.vlgmr.msra.gmra.mrb[4].mxu1 %vm289_vm2, %v1008_v30 }
0x13b6   :  { %3936 = vmatpush3.bf16.msra.mxu1 %v4793_v55  ;;  %3640 = vmatprep.mubr.msk.f32.mxu1 %vm4426_vm0, %v4427_v1 }
0x13b7   :  { %3937 = vmatprep.subr.bf16.mxu1 %v4425_v0 }
0x13ba   :  { %3939 = vmatpush3.bf16.msra.mxu1 %v4797_v58 }
0x13bb   :  { %3940 = vmatprep.subr.bf16.mxu1 %v4425_v0 }
0x13bc   :  { %v1120_v61 = vld [vmem:[#allocation2 + $0x30] sm:$0xff] }
0x13bd   :  { %3641 = vmatmul.mubr.f32.vlgmr.msra.gmra.mrb[6].mxu1 %v4427_v1  ;;  %3629 = vmatprep.mubr.msk.f32.mxu0 %vm289_vm2, %v1120_v61 }
0x13be   :  { %3942 = vmatpush3.bf16.msra.mxu1 %v4793_v55  ;;  %3651 = vmatprep.mubr.msk.f32.mxu1 %vm4426_vm0, %v4427_v1 }
0x13bf   :  { %3943 = vmatprep.subr.bf16.mxu1 %v4425_v0 }
0x13c2   :  { %3945 = vmatpush3.bf16.msra.mxu1 %v4797_v58 }
0x13c3   :  { %3952 = vmatprep.subr.bf16.mxu1 %v4425_v0 }
0x1488   :  { %v1080_v62 = vpop.f32.mrb[4].mxu1 }
0x1489   :  { %v1084_v63 = vadd.f32 %v1080_v62, %v4696_v32  ;;  %v3611_v2 = vpop.f32.mrb[5].mxu1 }
0x148b   :  { %v3280_v18 = vmul.f32 -1.442695, %v1084_v63 }
0x1490   :  { %v1341_v5 = vpop.f32.mrb[6].mxu1 }
0x1491   :  { %v1345_v6 = vadd.f32 %v1341_v5, %v1224_v4  ;;  %v3642_v8 = vpop.f32.mrb[7].mxu1 }
0x1493   :  { %4137 = vtanh.f32 %v1345_v6  ;;  %v3290_v9 = vmul.f32 -1.442695, %v1345_v6 }
0x1495   :  { %4139 = vpow2.f32 %v3290_v9 }
0x149d   :  { %v4138_v7 = vpop.eup %4137 }
0x149e   :  { %1355 = vrot.lane.b32.xlu0 %v4138_v7, %s4428_s3 }
0x149f   :  { %v4140_v10 = vpop.eup %4139 }
0x14a0   :  { %v1349_v11 = vadd.f32 1.0, %v4140_v10 }
0x14a2   :  { %4141 = vrcp.f32 %v1349_v11 }
0x14ac   :  { %v4142_v32 = vpop.eup %4141 }
0x14ad   :  { %v1353_v14 = vmul.f32 0.0, %v4142_v32 }
0x1510   :  { %v1356_v13 = vpop.permute.xlu0 %1355 }
0x1511   :  { %v1358_v12 = vmul.f32 %v4142_v32, %v1356_v13 }
0x1513   :  { %1360 = vrot.lane.b32.xlu1 %v1358_v12, %s4429_s26 }
0x1585   :  { %v1361_v28 = vpop.permute.xlu1 %1360 }
0x1586   :  { %v1363_v15 = vadd.f32 %v1361_v28, %v1353_v14 }
0x1588   :  { %4143 = vtanh.f32 %v1363_v15 }
0x1589   :  { %4145 = vtanh.f32 %v1084_v63  ;;  %v1234_v63 = vadd.f32 %v4822_v3, %v4781_v42 }
0x158a   :  { %4147 = vpow2.f32 %v3280_v18 }
0x1592   :  { %v4144_v16 = vpop.eup %4143 }
0x1593   :  { %1366 = vrot.lane.b32.xlu0 %v4144_v16, %s4428_s3  ;;  %v4146_v17 = vpop.eup %4145 }
0x1594   :  { %v4148_v19 = vpop.eup %4147 }
0x1595   :  { %v1088_v20 = vadd.f32 1.0, %v4148_v19 }
0x1597   :  { %1094 = vrot.lane.b32.xlu0 %v4146_v17, %s4428_s3  ;;  %4149 = vrcp.f32 %v1088_v20  ;;  %v1239_v17 = vadd.f32 %v4779_v40, %v4822_v3 }
0x15a1   :  { %v4150_v23 = vpop.eup %4149 }
0x15a2   :  { %v1092_v29 = vmul.f32 %v4150_v23, %v4789_v51 }
0x1605   :  { %v1367_v21 = vpop.permute.xlu0 %1366 }
0x1606   :  { %v1369_v22 = vmul.f32 %v4142_v32, %v1367_v21 }
0x1608   :  { %1371 = vrot.lane.b32.xlu1 %v1369_v22, %s4429_s26 }
0x1609   :  { %v1095_v25 = vpop.permute.xlu0 %1094 }
0x160a   :  { %v1097_v26 = vmul.f32 %v4150_v23, %v1095_v25 }
0x160c   :  { %1099 = vrot.lane.b32.xlu0 %v1097_v26, %s4429_s26 }
0x167a   :  { %v1372_v27 = vpop.permute.xlu1 %1371 }
0x167b   :  { %1374 = vst.msk [vmem:[#allocation2] sm:$0xff] %vm289_vm2, %v1372_v27  ;;  %3652 = vmatmul.mubr.msk.f32.vlgmr.msra.gmra.mrb[8].mxu1 %vm289_vm2, %v1372_v27 }
0x167c   :  { %3954 = vmatpush3.bf16.msra.mxu1 %v4793_v55  ;;  %3673 = vmatprep.mubr.msk.f32.mxu1 %vm4426_vm0, %v4427_v1 }
0x167d   :  { %3955 = vmatprep.subr.bf16.mxu1 %v4425_v0 }
0x167e   :  { %v1100_v31 = vpop.permute.xlu0 %1099 }
0x167f   :  { %v1102_v33 = vadd.f32 %v1100_v31, %v1092_v29 }
0x1680   :  { %3957 = vmatpush3.bf16.msra.mxu1 %v4797_v58 }
0x1681   :  { %4151 = vtanh.f32 %v1102_v33  ;;  %3964 = vmatprep.subr.bf16.mxu1 %v4425_v0 }
0x168b   :  { %v4152_v35 = vpop.eup %4151 }
0x168c   :  { %1105 = vrot.lane.b32.xlu0 %v4152_v35, %s4428_s3 }
0x16fe   :  { %v1106_v36 = vpop.permute.xlu0 %1105 }
0x16ff   :  { %v1108_v37 = vmul.f32 %v4150_v23, %v1106_v36 }
0x1701   :  { %1110 = vrot.lane.b32.xlu0 %v1108_v37, %s4429_s26 }
0x174e   :  { %v1444_v41 = vpop.f32.mrb[8].mxu1 }
0x174f   :  { %v1448_v24 = vadd.f32 %v1444_v41, %v1229_v39  ;;  %v3653_v45 = vpop.f32.mrb[9].mxu1  ;;  %v1244_v41 = vadd.f32 %v4822_v3, %v4786_v44 }
0x1751   :  { %4153 = vtanh.f32 %v1448_v24  ;;  %v3292_v48 = vmul.f32 -1.442695, %v1448_v24 }
0x1753   :  { %4155 = vpow2.f32 %v3292_v48 }
0x175b   :  { %v4154_v34 = vpop.eup %4153 }
0x175c   :  { %1458 = vrot.lane.b32.xlu1 %v4154_v34, %s4428_s3 }
0x175d   :  { %v4156_v49 = vpop.eup %4155 }
0x175e   :  { %v1452_v38 = vadd.f32 1.0, %v4156_v49 }
0x1760   :  { %4157 = vrcp.f32 %v1452_v38 }
0x176a   :  { %v4158_v50 = vpop.eup %4157 }
0x176b   :  { %v1456_v53 = vmul.f32 %v4158_v50, %v1363_v15 }
0x1773   :  { %v1111_v46 = vpop.permute.xlu0 %1110 }
0x1774   :  { %1113 = vst.msk [vmem:[#allocation2 + $0x38] sm:$0xff] %vm289_vm2, %v1111_v46 }
0x177b   :  { %v1121_v47 = vld [vmem:[#allocation2 + $0x38] sm:$0xff] }
0x177c   :  { %3630 = vmatmul.mubr.msk.f32.gmra.mrb[24].mxu0 %vm289_vm2, %v1121_v47 }
0x177d   :  { %3662 = vmatprep.mubr.msk.f32.mxu0 %vm4426_vm0, %v4427_v1 }
0x17ce   :  { %v1459_v51 = vpop.permute.xlu1 %1458 }
0x17cf   :  { %v1461_v52 = vmul.f32 %v4158_v50, %v1459_v51 }
0x17d1   :  { %1463 = vrot.lane.b32.xlu1 %v1461_v52, %s4429_s26 }
0x1843   :  { %v1464_v54 = vpop.permute.xlu1 %1463 }
0x1844   :  { %v1466_v56 = vadd.f32 %v1464_v54, %v1456_v53 }
0x1846   :  { %4159 = vtanh.f32 %v1466_v56 }
0x184f   :  { %v4850_v57 = vpop.f32.mrb[24].mxu0 }
0x1850   :  { %v4160_v59 = vpop.eup %4159  ;;  %v4852_v60 = vpop.f32.mrb[25].mxu0 }
0x1851   :  { %1469 = vrot.lane.b32.xlu1 %v4160_v59, %s4428_s3 }
0x18c3   :  { %v1470_v30 = vpop.permute.xlu1 %1469 }
0x18c4   :  { %v1472_v61 = vmul.f32 %v4158_v50, %v1470_v30 }
0x18c6   :  { %1474 = vrot.lane.b32.xlu1 %v1472_v61, %s4429_s26  ;;  %v1249_v61 = vadd.f32 %v4784_v43, %v4822_v3 }
0x1938   :  { %v1475_v62 = vpop.permute.xlu1 %1474 }
0x1939   :  { %1477 = vst.msk [vmem:[#allocation2 + $0x8] sm:$0xff] %vm289_vm2, %v1475_v62  ;;  %3663 = vmatmul.mubr.msk.f32.vlgmr.msra.gmra.mrb[26].mxu0 %vm289_vm2, %v1475_v62 }
0x193a   :  { %3960 = vmatpush3.bf16.msra.mxu0 %v4793_v55  ;;  %3684 = vmatprep.mubr.msk.f32.mxu0 %vm4426_vm0, %v4427_v1 }
0x193b   :  { %3961 = vmatprep.subr.bf16.mxu0 %v4425_v0 }
0x193e   :  { %3963 = vmatpush3.bf16.msra.mxu0 %v4797_v58 }
0x193f   :  { %3970 = vmatprep.subr.bf16.mxu0 %v4425_v0 }
0x1a0c   :  { %v1547_v2 = vpop.f32.mrb[26].mxu0 }
0x1a0d   :  { %v1551_v4 = vadd.f32 %v1547_v2, %v1234_v63  ;;  %v3664_v5 = vpop.f32.mrb[27].mxu0 }
0x1a0f   :  { %4161 = vtanh.f32 %v1551_v4  ;;  %v3294_v8 = vmul.f32 -1.442695, %v1551_v4 }
0x1a11   :  { %4163 = vpow2.f32 %v3294_v8 }
0x1a19   :  { %v4162_v6 = vpop.eup %4161 }
0x1a1a   :  { %1561 = vrot.lane.b32.xlu0 %v4162_v6, %s4428_s3 }
0x1a1b   :  { %v4164_v7 = vpop.eup %4163 }
0x1a1c   :  { %v1555_v9 = vadd.f32 1.0, %v4164_v7 }
0x1a1e   :  { %4165 = vrcp.f32 %v1555_v9 }
0x1a28   :  { %v4166_v10 = vpop.eup %4165 }
0x1a29   :  { %v1559_v13 = vmul.f32 %v4166_v10, %v1466_v56 }
0x1a8c   :  { %v1562_v11 = vpop.permute.xlu0 %1561 }
0x1a8d   :  { %v1564_v32 = vmul.f32 %v4166_v10, %v1562_v11  ;;  %v2104_v11 = vld [vmem:[#allocation9] sm:$0xff] }
0x1a8f   :  { %1566 = vrot.lane.b32.xlu1 %v1564_v32, %s4429_s26  ;;  %v2105_v32 = vld [vmem:[#allocation9 + $0x8] sm:$0xff] }
0x1b01   :  { %v1567_v12 = vpop.permute.xlu1 %1566 }
0x1b02   :  { %v1569_v42 = vadd.f32 %v1567_v12, %v1559_v13  ;;  %v3982_v13 = vpack.c.bf16 %v2105_v32, %v2104_v11 }
0x1b04   :  { %4167 = vtanh.f32 %v1569_v42 }
0x1b0e   :  { %v4168_v14 = vpop.eup %4167 }
0x1b0f   :  { %1572 = vrot.lane.b32.xlu0 %v4168_v14, %s4428_s3 }
0x1b81   :  { %v1573_v28 = vpop.permute.xlu0 %1572 }
0x1b82   :  { %v1575_v15 = vmul.f32 %v4166_v10, %v1573_v28  ;;  %v2106_v28 = vld [vmem:[#allocation9 + $0x10] sm:$0xff] }
0x1b84   :  { %1577 = vrot.lane.b32.xlu1 %v1575_v15, %s4429_s26  ;;  %v2107_v15 = vld [vmem:[#allocation9 + $0x18] sm:$0xff] }
0x1bf6   :  { %v1578_v16 = vpop.permute.xlu1 %1577 }
0x1bf7   :  { %1580 = vst.msk [vmem:[#allocation2 + $0x10] sm:$0xff] %vm289_vm2, %v1578_v16  ;;  %3674 = vmatmul.mubr.msk.f32.vlgmr.msra.gmra.mrb[10].mxu1 %vm289_vm2, %v1578_v16  ;;  %v3986_v16 = vpack.c.bf16 %v2107_v15, %v2106_v28 }
0x1bf8   :  { %3966 = vmatpush3.bf16.msra.mxu1 %v4793_v55  ;;  %3695 = vmatprep.mubr.msk.f32.mxu1 %vm4426_vm0, %v4427_v1 }
0x1bf9   :  { %3967 = vmatprep.subr.bf16.mxu1 %v4425_v0 }
0x1bfc   :  { %3969 = vmatpush3.bf16.msra.mxu1 %v4797_v58 }
0x1bfd   :  { %3976 = vmatprep.subr.bf16.mxu1 %v4425_v0 }
0x1cca   :  { %v1650_v18 = vpop.f32.mrb[10].mxu1 }
0x1ccb   :  { %v1654_v19 = vadd.f32 %v1650_v18, %v1239_v17  ;;  %v3675_v20 = vpop.f32.mrb[11].mxu1  ;;  %v2096_v18 = vld [vmem:[#allocation2] sm:$0xff] }
0x1ccc   :  { %v2098_v20 = vld [vmem:[#allocation2 + $0x10] sm:$0xff] }
0x1ccd   :  { %4169 = vtanh.f32 %v1654_v19  ;;  %v3296_v22 = vmul.f32 -1.442695, %v1654_v19  ;;  %v2097_v19 = vld [vmem:[#allocation2 + $0x8] sm:$0xff] }
0x1ccf   :  { %4171 = vpow2.f32 %v3296_v22 }
0x1cd7   :  { %v4170_v21 = vpop.eup %4169 }
0x1cd8   :  { %1664 = vrot.lane.b32.xlu0 %v4170_v21, %s4428_s3 }
0x1cd9   :  { %v4172_v23 = vpop.eup %4171 }
0x1cda   :  { %v1658_v25 = vadd.f32 1.0, %v4172_v23 }
0x1cdc   :  { %4173 = vrcp.f32 %v1658_v25  ;;  %v1254_v25 = vadd.f32 %v4822_v3, %v4852_v60 }
0x1ce6   :  { %v4174_v26 = vpop.eup %4173 }
0x1ce7   :  { %v1662_v31 = vmul.f32 %v4174_v26, %v1569_v42 }
0x1d4a   :  { %v1665_v27 = vpop.permute.xlu0 %1664 }
0x1d4b   :  { %v1667_v29 = vmul.f32 %v4174_v26, %v1665_v27 }
0x1d4d   :  { %1669 = vrot.lane.b32.xlu1 %v1667_v29, %s4429_s26 }
0x1dbf   :  { %v1670_v33 = vpop.permute.xlu1 %1669 }
0x1dc0   :  { %v1672_v40 = vadd.f32 %v1670_v33, %v1662_v31 }
0x1dc2   :  { %4175 = vtanh.f32 %v1672_v40 }
0x1dcc   :  { %v4176_v35 = vpop.eup %4175 }
0x1dcd   :  { %1675 = vrot.lane.b32.xlu0 %v4176_v35, %s4428_s3 }
0x1e3f   :  { %v1676_v36 = vpop.permute.xlu0 %1675 }
0x1e40   :  { %v1678_v37 = vmul.f32 %v4174_v26, %v1676_v36 }
0x1e42   :  { %1680 = vrot.lane.b32.xlu1 %v1678_v37, %s4429_s26 }
0x1eb4   :  { %v1681_v39 = vpop.permute.xlu1 %1680 }
0x1eb5   :  { %1683 = vst.msk [vmem:[#allocation2 + $0x18] sm:$0xff] %vm289_vm2, %v1681_v39  ;;  %3685 = vmatmul.mubr.msk.f32.vlgmr.msra.gmra.mrb[28].mxu0 %vm289_vm2, %v1681_v39 }
0x1eb6   :  { %3972 = vmatpush3.bf16.msra.mxu0 %v4793_v55  ;;  %3706 = vmatprep.mubr.msk.f32.mxu0 %vm4426_vm0, %v4427_v1 }
0x1eb7   :  { %3973 = vmatprep.subr.bf16.mxu0 %v4425_v0 }
0x1eba   :  { %3975 = vmatpush3.bf16.msra.mxu0 %v4797_v58 }
0x1ebb   :  { %3983 = vmatprep.subr.bf16.mxu0 %v3982_v13 }
0x1ebc   :  { %v2099_v21 = vld [vmem:[#allocation2 + $0x18] sm:$0xff] }
0x1f88   :  { %v1753_v24 = vpop.f32.mrb[28].mxu0 }
0x1f89   :  { %v1757_v45 = vadd.f32 %v1753_v24, %v1244_v41  ;;  %v3686_v34 = vpop.f32.mrb[29].mxu0 }
0x1f8b   :  { %4177 = vtanh.f32 %v1757_v45  ;;  %v3298_v47 = vmul.f32 -1.442695, %v1757_v45 }
0x1f8d   :  { %4179 = vpow2.f32 %v3298_v47 }
0x1f95   :  { %v4178_v46 = vpop.eup %4177 }
0x1f96   :  { %1767 = vrot.lane.b32.xlu0 %v4178_v46, %s4428_s3 }
0x1f97   :  { %v4180_v48 = vpop.eup %4179 }
0x1f98   :  { %v1761_v49 = vadd.f32 1.0, %v4180_v48 }
0x1f9a   :  { %4181 = vrcp.f32 %v1761_v49 }
0x1fa4   :  { %v4182_v38 = vpop.eup %4181 }
0x1fa5   :  { %v1765_v52 = vmul.f32 %v4182_v38, %v1672_v40 }
0x2008   :  { %v1768_v50 = vpop.permute.xlu0 %1767 }
0x2009   :  { %v1770_v51 = vmul.f32 %v4182_v38, %v1768_v50  ;;  %v2252_v50 = vld [vmem:[#allocation11] sm:$0xff] }
0x200b   :  { %1772 = vrot.lane.b32.xlu1 %v1770_v51, %s4429_s26  ;;  %v2253_v51 = vld [vmem:[#allocation11 + $0x8] sm:$0xff] }
0x207d   :  { %v1773_v53 = vpop.permute.xlu1 %1772 }
0x207e   :  { %v1775_v44 = vadd.f32 %v1773_v53, %v1765_v52  ;;  %v4938_v52 = vpack.c.bf16 %v2253_v51, %v2252_v50  ;;  %v2254_v53 = vld [vmem:[#allocation11 + $0x10] sm:$0xff] }
0x2080   :  { %4183 = vtanh.f32 %v1775_v44 }
0x208a   :  { %v4184_v54 = vpop.eup %4183 }
0x208b   :  { %1778 = vrot.lane.b32.xlu0 %v4184_v54, %s4428_s3 }
0x20fd   :  { %v1779_v56 = vpop.permute.xlu0 %1778 }
0x20fe   :  { %v1781_v59 = vmul.f32 %v4182_v38, %v1779_v56 }
0x2100   :  { %1783 = vrot.lane.b32.xlu1 %v1781_v59, %s4429_s26 }
0x2172   :  { %v1784_v30 = vpop.permute.xlu1 %1783 }
0x2173   :  { %1786 = vst.msk [vmem:[#allocation2 + $0x20] sm:$0xff] %vm289_vm2, %v1784_v30  ;;  %3696 = vmatmul.mubr.msk.f32.vlgmr.msra.gmra.mrb[12].mxu1 %vm289_vm2, %v1784_v30 }
0x2174   :  { %3978 = vmatpush3.bf16.msra.mxu1 %v4793_v55  ;;  %3717 = vmatprep.mubr.msk.f32.mxu1 %vm4426_vm0, %v4427_v1 }
0x2175   :  { %3979 = vmatprep.subr.bf16.mxu1 %v4425_v0 }
0x2178   :  { %3981 = vmatpush3.bf16.msra.mxu1 %v4797_v58 }
0x2179   :  { %3990 = vmatprep.subr.bf16.mxu1 %v4425_v0 }
0x217a   :  { %v2100_v22 = vld [vmem:[#allocation2 + $0x20] sm:$0xff] }
0x2246   :  { %v1856_v62 = vpop.f32.mrb[12].mxu1 }
0x2247   :  { %v1860_v63 = vadd.f32 %v1856_v62, %v1249_v61  ;;  %v3697_v2 = vpop.f32.mrb[13].mxu1  ;;  %v1259_v62 = vadd.f32 %v4850_v57, %v4822_v3 }
0x2249   :  { %4185 = vtanh.f32 %v1860_v63  ;;  %v3300_v55 = vmul.f32 -1.442695, %v1860_v63 }
0x224b   :  { %4187 = vpow2.f32 %v3300_v55  ;;  %v4968_v55 = vld [vmem:[%s5146_s9] ss:$0 sm:$0xff] }
0x2253   :  { %v4186_v4 = vpop.eup %4185 }
0x2254   :  { %1870 = vrot.lane.b32.xlu0 %v4186_v4, %s4428_s3 }
0x2255   :  { %v4188_v5 = vpop.eup %4187 }
0x2256   :  { %v1864_v6 = vadd.f32 1.0, %v4188_v5 }
0x2258   :  { %4189 = vrcp.f32 %v1864_v6 }
0x2262   :  { %v4190_v8 = vpop.eup %4189 }
0x2263   :  { %v1868_v9 = vmul.f32 %v4190_v8, %v1775_v44  ;;  %v2255_v44 = vld [vmem:[#allocation11 + $0x18] sm:$0xff] }
0x2264   :  { %v4942_v54 = vpack.c.bf16 %v2255_v44, %v2254_v53 }
0x22c6   :  { %v1871_v7 = vpop.permute.xlu0 %1870 }
0x22c7   :  { %v1873_v58 = vmul.f32 %v4190_v8, %v1871_v7 }
0x22c9   :  { %1875 = vrot.lane.b32.xlu1 %v1873_v58, %s4429_s26 }
0x233b   :  { %v1876_v10 = vpop.permute.xlu1 %1875 }
0x233c   :  { %v1878_v43 = vadd.f32 %v1876_v10, %v1868_v9 }
0x233e   :  { %4191 = vtanh.f32 %v1878_v43 }
0x2348   :  { %v4192_v12 = vpop.eup %4191 }
0x2349   :  { %1881 = vrot.lane.b32.xlu0 %v4192_v12, %s4428_s3 }
0x23bb   :  { %v1882_v42 = vpop.permute.xlu0 %1881 }
0x23bc   :  { %v1884_v14 = vmul.f32 %v4190_v8, %v1882_v42 }
0x23be   :  { %1886 = vrot.lane.b32.xlu1 %v1884_v14, %s4429_s26 }
0x2430   :  { %v1887_v17 = vpop.permute.xlu1 %1886 }
0x2431   :  { %1889 = vst.msk [vmem:[#allocation2 + $0x28] sm:$0xff] %vm289_vm2, %v1887_v17  ;;  %3707 = vmatmul.mubr.msk.f32.vlgmr.msra.gmra.mrb[30].mxu0 %vm289_vm2, %v1887_v17 }
0x2432   :  { %3985 = vmatpush3.bf16.msra.mxu0 %v3982_v13  ;;  %3728 = vmatprep.mubr.msk.f32.mxu0 %vm289_vm2, %v2096_v18 }
0x2433   :  { %3987 = vmatprep.subr.bf16.mxu0 %v3986_v16 }
0x2436   :  { %3989 = vmatpush3.bf16.msra.mxu0 %v3986_v16 }
0x2437   :  { %4002 = vmatprep.subr.bf16.mxu0 %v4425_v0 }
0x2438   :  { %v2101_v23 = vld [vmem:[#allocation2 + $0x28] sm:$0xff] }
0x2439   :  { %3729 = vmatmul.mubr.msk.f32.vlgmr.msra.gmra.mrb[32].mxu0 %vm289_vm2, %v2097_v19 }
0x243a   :  { %3731 = vmatprep.mubr.msk.f32.mxu0 %vm289_vm2, %v2098_v20  ;;  %4004 = vmatpush3.bf16.msra.mxu0 %v4938_v52 }
0x243b   :  { %4005 = vmatprep.subr.bf16.mxu0 %v4425_v0 }
0x243d   :  { %3732 = vmatmul.mubr.msk.f32.gmra.mrb[34].mxu0 %vm289_vm2, %v2099_v21 }
0x243e   :  { %3734 = vmatprep.mubr.msk.f32.mxu0 %vm289_vm2, %v2100_v22  ;;  %4007 = vmatpush3.bf16.msra.mxu0 %v4942_v54 }
0x243f   :  { %4014 = vmatprep.subr.bf16.mxu0 %v4425_v0 }
0x2441   :  { %3735 = vmatmul.mubr.msk.f32.gmra.mrb[36].mxu0 %vm289_vm2, %v2101_v23 }
0x2504   :  { %v1959_v26 = vpop.f32.mrb[30].mxu0 }
0x2505   :  { %v1963_v27 = vadd.f32 %v1959_v26, %v1254_v25  ;;  %v3708_v29 = vpop.f32.mrb[31].mxu0 }
0x2507   :  { %4193 = vtanh.f32 %v1963_v27  ;;  %v3302_v41 = vmul.f32 -1.442695, %v1963_v27 }
0x2509   :  { %4195 = vpow2.f32 %v3302_v41 }
0x250c   :  { %v4922_v31 = vpop.f32.mrb[32].mxu0 }
0x250d   :  { %v2205_v33 = vpop.f32.mrb[33].mxu0 }
0x250e   :  { %v2206_v5 = vadd.f32 %v4968_v55, %v2205_v33 }
0x2510   :  { %v4924_v40 = vpop.f32.mrb[34].mxu0 }
0x2511   :  { %v4194_v35 = vpop.eup %4193  ;;  %v4926_v36 = vpop.f32.mrb[35].mxu0 }
0x2512   :  { %1973 = vrot.lane.b32.xlu0 %v4194_v35, %s4428_s3  ;;  %v2211_v35 = vadd.f32 %v4922_v31, %v4968_v55 }
0x2513   :  { %v4196_v60 = vpop.eup %4195 }
0x2514   :  { %v4929_v37 = vpop.f32.mrb[36].mxu0  ;;  %v1967_v24 = vadd.f32 1.0, %v4196_v60 }
0x2515   :  { %v4931_v39 = vpop.f32.mrb[37].mxu0 }
0x2516   :  { %4197 = vrcp.f32 %v1967_v24 }
0x2520   :  { %v4198_v45 = vpop.eup %4197 }
0x2521   :  { %v1971_v47 = vmul.f32 %v4198_v45, %v1878_v43 }
0x2584   :  { %v1974_v34 = vpop.permute.xlu0 %1973 }
0x2585   :  { %v1976_v46 = vmul.f32 %v4198_v45, %v1974_v34 }
0x2587   :  { %1978 = vrot.lane.b32.xlu1 %v1976_v46, %s4429_s26 }
0x25f9   :  { %v1979_v48 = vpop.permute.xlu1 %1978 }
0x25fa   :  { %v4934_v49 = vadd.f32 %v1979_v48, %v1971_v47 }
0x25fc   :  { %4199 = vtanh.f32 %v4934_v49 }
0x2606   :  { %v4200_v38 = vpop.eup %4199 }
0x2607   :  { %1984 = vrot.lane.b32.xlu0 %v4200_v38, %s4428_s3 }
0x2679   :  { %v1985_v56 = vpop.permute.xlu0 %1984 }
0x267a   :  { %v1987_v59 = vmul.f32 %v4198_v45, %v1985_v56 }
0x267c   :  { %1989 = vrot.lane.b32.xlu1 %v1987_v59, %s4429_s26 }
0x26ee   :  { %v1990_v30 = vpop.permute.xlu1 %1989 }
0x26ef   :  { %1992 = vst.msk [vmem:[#allocation2 + $0x30] sm:$0xff] %vm289_vm2, %v1990_v30  ;;  %3718 = vmatmul.mubr.msk.f32.vlgmr.msra.gmra.mrb[14].mxu1 %vm289_vm2, %v1990_v30 }
0x26f0   :  { %3992 = vmatpush3.bf16.msra.mxu1 %v4938_v52  ;;  %3748 = vmatprep.mubr.msk.f32.mxu1 %vm4426_vm0, %v4427_v1 }
0x26f1   :  { %3993 = vmatprep.subr.bf16.mxu1 %v4425_v0 }
0x26f4   :  { %3995 = vmatpush3.bf16.msra.mxu1 %v4942_v54 }
0x26f5   :  { %3996 = vmatprep.subr.bf16.mxu1 %v4425_v0 }
0x26f6   :  { %v2102_v61 = vld [vmem:[#allocation2 + $0x30] sm:$0xff] }
0x26f7   :  { %3749 = vmatmul.mubr.f32.vlgmr.msra.gmra.mrb[16].mxu1 %v4427_v1  ;;  %3737 = vmatprep.mubr.msk.f32.mxu0 %vm289_vm2, %v2102_v61 }
0x26f8   :  { %3998 = vmatpush3.bf16.msra.mxu1 %v4938_v52  ;;  %3759 = vmatprep.mubr.msk.f32.mxu1 %vm4426_vm0, %v4427_v1 }
0x26f9   :  { %3999 = vmatprep.subr.bf16.mxu1 %v4425_v0 }
0x26fc   :  { %4001 = vmatpush3.bf16.msra.mxu1 %v4942_v54 }
0x26fd   :  { %4008 = vmatprep.subr.bf16.mxu1 %v4425_v0 }
0x27c2   :  { %v2062_v63 = vpop.f32.mrb[14].mxu1 }
0x27c3   :  { %v2066_v2 = vadd.f32 %v2062_v63, %v1259_v62  ;;  %v3719_v4 = vpop.f32.mrb[15].mxu1 }
0x27c5   :  { %v3304_v28 = vmul.f32 -1.442695, %v2066_v2 }
0x27ca   :  { %v2323_v6 = vpop.f32.mrb[16].mxu1 }
0x27cb   :  { %v2327_v8 = vadd.f32 %v2323_v6, %v2206_v5  ;;  %v3750_v7 = vpop.f32.mrb[17].mxu1 }
0x27cd   :  { %4201 = vtanh.f32 %v2327_v8  ;;  %v3314_v9 = vmul.f32 -1.442695, %v2327_v8 }
0x27cf   :  { %4203 = vpow2.f32 %v3314_v9 }
0x27d7   :  { %v4202_v58 = vpop.eup %4201 }
0x27d8   :  { %2337 = vrot.lane.b32.xlu0 %v4202_v58, %s4428_s3 }
0x27d9   :  { %v4204_v3 = vpop.eup %4203 }
0x27da   :  { %v2331_v57 = vadd.f32 1.0, %v4204_v3 }
0x27dc   :  { %4205 = vrcp.f32 %v2331_v57 }
0x27e6   :  { %v4206_v10 = vpop.eup %4205 }
0x27e7   :  { %v2335_v32 = vmul.f32 0.0, %v4206_v10 }
0x284a   :  { %v2338_v43 = vpop.permute.xlu0 %2337 }
0x284b   :  { %v2340_v11 = vmul.f32 %v4206_v10, %v2338_v43 }
0x284d   :  { %2342 = vrot.lane.b32.xlu1 %v2340_v11, %s4429_s26 }
0x28bf   :  { %v2343_v13 = vpop.permute.xlu1 %2342 }
0x28c0   :  { %v2345_v12 = vadd.f32 %v2343_v13, %v2335_v32 }
0x28c2   :  { %4207 = vtanh.f32 %v2345_v12 }
0x28c3   :  { %4209 = vtanh.f32 %v2066_v2  ;;  %v2216_v2 = vadd.f32 %v4968_v55, %v4926_v36 }
0x28c4   :  { %4211 = vpow2.f32 %v3304_v28 }
0x28cc   :  { %v4208_v42 = vpop.eup %4207 }
0x28cd   :  { %2348 = vrot.lane.b32.xlu0 %v4208_v42, %s4428_s3  ;;  %v4210_v14 = vpop.eup %4209 }
0x28ce   :  { %v4212_v15 = vpop.eup %4211 }
0x28cf   :  { %v2070_v16 = vadd.f32 1.0, %v4212_v15 }
0x28d1   :  { %2076 = vrot.lane.b32.xlu0 %v4210_v14, %s4428_s3  ;;  %4213 = vrcp.f32 %v2070_v16  ;;  %v2221_v14 = vadd.f32 %v4924_v40, %v4968_v55 }
0x28db   :  { %v4214_v19 = vpop.eup %4213 }
0x28dc   :  { %v2074_v23 = vmul.f32 %v4214_v19, %v4934_v49 }
0x293f   :  { %v2349_v17 = vpop.permute.xlu0 %2348 }
0x2940   :  { %v2351_v18 = vmul.f32 %v4206_v10, %v2349_v17 }
0x2942   :  { %2354 = vrot.lane.b32.xlu1 %v2351_v18, %s4429_s26 }
0x2943   :  { %v2077_v20 = vpop.permute.xlu0 %2076 }
0x2944   :  { %v2079_v21 = vmul.f32 %v4214_v19, %v2077_v20 }
0x2946   :  { %2081 = vrot.lane.b32.xlu0 %v2079_v21, %s4429_s26 }
0x29b4   :  { %v2355_v22 = vpop.permute.xlu1 %2354 }
0x29b5   :  { %3760 = vmatmul.mubr.msk.f32.vlgmr.msra.gmra.mrb[18].mxu1 %vm289_vm2, %v2355_v22 }
0x29b6   :  { %4010 = vmatpush3.bf16.msra.mxu1 %v4938_v52  ;;  %3781 = vmatprep.mubr.msk.f32.mxu1 %vm4426_vm0, %v4427_v1 }
0x29b7   :  { %4011 = vmatprep.subr.bf16.mxu1 %v4425_v0 }
0x29b8   :  { %v2082_v25 = vpop.permute.xlu0 %2081 }
0x29b9   :  { %v2084_v26 = vadd.f32 %v2082_v25, %v2074_v23 }
0x29ba   :  { %4013 = vmatpush3.bf16.msra.mxu1 %v4942_v54 }
0x29bb   :  { %4215 = vtanh.f32 %v2084_v26  ;;  %4020 = vmatprep.subr.bf16.mxu1 %v4425_v0 }
0x29c5   :  { %v4216_v27 = vpop.eup %4215 }
0x29c6   :  { %2087 = vrot.lane.b32.xlu0 %v4216_v27, %s4428_s3 }
0x2a38   :  { %v2088_v29 = vpop.permute.xlu0 %2087 }
0x2a39   :  { %v2090_v33 = vmul.f32 %v4214_v19, %v2088_v29 }
0x2a3b   :  { %2092 = vrot.lane.b32.xlu0 %v2090_v33, %s4429_s26 }
0x2a88   :  { %v2424_v41 = vpop.f32.mrb[18].mxu1 }
0x2a89   :  { %v2428_v60 = vadd.f32 %v2424_v41, %v2211_v35  ;;  %v3761_v24 = vpop.f32.mrb[19].mxu1  ;;  %v2226_v41 = vadd.f32 %v4968_v55, %v4931_v39 }
0x2a8b   :  { %4217 = vtanh.f32 %v2428_v60  ;;  %v3316_v47 = vmul.f32 -1.442695, %v2428_v60 }
0x2a8d   :  { %4219 = vpow2.f32 %v3316_v47 }
0x2a95   :  { %v4218_v45 = vpop.eup %4217 }
0x2a96   :  { %2438 = vrot.lane.b32.xlu1 %v4218_v45, %s4428_s3 }
0x2a97   :  { %v4220_v48 = vpop.eup %4219 }
0x2a98   :  { %v2432_v31 = vadd.f32 1.0, %v4220_v48 }
0x2a9a   :  { %4221 = vrcp.f32 %v2432_v31 }
0x2aa4   :  { %v4222_v49 = vpop.eup %4221 }
0x2aa5   :  { %v2436_v51 = vmul.f32 %v4222_v49, %v2345_v12 }
0x2aad   :  { %v2093_v34 = vpop.permute.xlu0 %2092 }
0x2aae   :  { %2095 = vst.msk [vmem:[#allocation2 + $0x38] sm:$0xff] %vm289_vm2, %v2093_v34 }
0x2ab5   :  { %v2103_v46 = vld [vmem:[#allocation2 + $0x38] sm:$0xff] }
0x2ab6   :  { %3738 = vmatmul.mubr.msk.f32.gmra.mrb[38].mxu0 %vm289_vm2, %v2103_v46 }
0x2ab7   :  { %3770 = vmatprep.mubr.msk.f32.mxu0 %vm4426_vm0, %v4427_v1 }
0x2b08   :  { %v2439_v38 = vpop.permute.xlu1 %2438 }
0x2b09   :  { %v2441_v50 = vmul.f32 %v4222_v49, %v2439_v38 }
0x2b0b   :  { %2443 = vrot.lane.b32.xlu1 %v2441_v50, %s4429_s26 }
0x2b7d   :  { %v2444_v53 = vpop.permute.xlu1 %2443 }
0x2b7e   :  { %v2446_v44 = vadd.f32 %v2444_v53, %v2436_v51 }
0x2b80   :  { %4223 = vtanh.f32 %v2446_v44 }
0x2b89   :  { %v4995_v56 = vpop.f32.mrb[38].mxu0 }
0x2b8a   :  { %v4224_v59 = vpop.eup %4223  ;;  %v4997_v30 = vpop.f32.mrb[39].mxu0 }
0x2b8b   :  { %2449 = vrot.lane.b32.xlu1 %v4224_v59, %s4428_s3 }
0x2bfd   :  { %v2450_v61 = vpop.permute.xlu1 %2449 }
0x2bfe   :  { %v2452_v62 = vmul.f32 %v4222_v49, %v2450_v61 }
0x2c00   :  { %2455 = vrot.lane.b32.xlu1 %v2452_v62, %s4429_s26  ;;  %v2231_v62 = vadd.f32 %v4929_v37, %v4968_v55 }
0x2c72   :  { %v2456_v63 = vpop.permute.xlu1 %2455 }
0x2c73   :  { %3771 = vmatmul.mubr.msk.f32.vlgmr.msra.gmra.mrb[40].mxu0 %vm289_vm2, %v2456_v63 }
0x2c74   :  { %4016 = vmatpush3.bf16.msra.mxu0 %v4938_v52  ;;  %3792 = vmatprep.mubr.msk.f32.mxu0 %vm4426_vm0, %v4427_v1 }
0x2c75   :  { %4017 = vmatprep.subr.bf16.mxu0 %v4425_v0 }
0x2c78   :  { %4019 = vmatpush3.bf16.msra.mxu0 %v4942_v54 }
0x2c79   :  { %4026 = vmatprep.subr.bf16.mxu0 %v4425_v0 }
0x2d46   :  { %v2525_v4 = vpop.f32.mrb[40].mxu0 }
0x2d47   :  { %v2529_v5 = vadd.f32 %v2525_v4, %v2216_v2  ;;  %v3772_v6 = vpop.f32.mrb[41].mxu0 }
0x2d49   :  { %4225 = vtanh.f32 %v2529_v5  ;;  %v3318_v7 = vmul.f32 -1.442695, %v2529_v5 }
0x2d4b   :  { %4227 = vpow2.f32 %v3318_v7 }
0x2d53   :  { %v4226_v8 = vpop.eup %4225 }
0x2d54   :  { %2539 = vrot.lane.b32.xlu0 %v4226_v8, %s4428_s3 }
0x2d55   :  { %v4228_v58 = vpop.eup %4227 }
0x2d56   :  { %v2533_v9 = vadd.f32 1.0, %v4228_v58 }
0x2d58   :  { %4229 = vrcp.f32 %v2533_v9 }
0x2d62   :  { %v4230_v3 = vpop.eup %4229 }
0x2d63   :  { %v2537_v43 = vmul.f32 %v4230_v3, %v2446_v44 }
0x2dc6   :  { %v2540_v57 = vpop.permute.xlu0 %2539 }
0x2dc7   :  { %v2542_v10 = vmul.f32 %v4230_v3, %v2540_v57 }
0x2dc9   :  { %2544 = vrot.lane.b32.xlu1 %v2542_v10, %s4429_s26 }
0x2e3b   :  { %v2545_v11 = vpop.permute.xlu1 %2544 }
0x2e3c   :  { %v2547_v36 = vadd.f32 %v2545_v11, %v2537_v43 }
0x2e3e   :  { %4231 = vtanh.f32 %v2547_v36 }
0x2e48   :  { %v4232_v32 = vpop.eup %4231 }
0x2e49   :  { %2550 = vrot.lane.b32.xlu0 %v4232_v32, %s4428_s3 }
0x2ebb   :  { %v2551_v13 = vpop.permute.xlu0 %2550 }
0x2ebc   :  { %v2553_v12 = vmul.f32 %v4230_v3, %v2551_v13 }
0x2ebe   :  { %2556 = vrot.lane.b32.xlu1 %v2553_v12, %s4429_s26 }
0x2f30   :  { %v2557_v42 = vpop.permute.xlu1 %2556 }
0x2f31   :  { %3782 = vmatmul.mubr.msk.f32.vlgmr.msra.gmra.mrb[20].mxu1 %vm289_vm2, %v2557_v42 }
0x2f32   :  { %4022 = vmatpush3.bf16.msra.mxu1 %v4938_v52  ;;  %3803 = vmatprep.mubr.msk.f32.mxu1 %vm4426_vm0, %v4427_v1 }
0x2f33   :  { %4023 = vmatprep.subr.bf16.mxu1 %v4425_v0 }
0x2f36   :  { %4025 = vmatpush3.bf16.msra.mxu1 %v4942_v54 }
0x2f37   :  { %4032 = vmatprep.subr.bf16.mxu1 %v4425_v0 }
0x3004   :  { %v2626_v28 = vpop.f32.mrb[20].mxu1 }
0x3005   :  { %v2630_v15 = vadd.f32 %v2626_v28, %v2221_v14  ;;  %v3783_v16 = vpop.f32.mrb[21].mxu1 }
0x3007   :  { %4233 = vtanh.f32 %v2630_v15  ;;  %v3320_v18 = vmul.f32 -1.442695, %v2630_v15 }
0x3009   :  { %4235 = vpow2.f32 %v3320_v18 }
0x3011   :  { %v4234_v17 = vpop.eup %4233 }
0x3012   :  { %2640 = vrot.lane.b32.xlu0 %v4234_v17, %s4428_s3 }
0x3013   :  { %v4236_v19 = vpop.eup %4235 }
0x3014   :  { %v2634_v20 = vadd.f32 1.0, %v4236_v19 }
0x3016   :  { %4237 = vrcp.f32 %v2634_v20 }
0x3020   :  { %v4238_v21 = vpop.eup %4237 }
0x3021   :  { %v2638_v25 = vmul.f32 %v4238_v21, %v2547_v36  ;;  %v2236_v36 = vadd.f32 %v4968_v55, %v4997_v30 }
0x3084   :  { %v2641_v22 = vpop.permute.xlu0 %2640 }
0x3085   :  { %v2643_v23 = vmul.f32 %v4238_v21, %v2641_v22 }
0x3087   :  { %2645 = vrot.lane.b32.xlu1 %v2643_v23, %s4429_s26 }
0x30f9   :  { %v2646_v26 = vpop.permute.xlu1 %2645 }
0x30fa   :  { %v2648_v40 = vadd.f32 %v2646_v26, %v2638_v25  ;;  %v2241_v26 = vadd.f32 %v4995_v56, %v4968_v55  ;;  %v3059_v56 = vld [vmem:[#allocation12] sm:$0xff] }
0x30fc   :  { %4239 = vtanh.f32 %v2648_v40 }
0x3106   :  { %v4240_v27 = vpop.eup %4239 }
0x3107   :  { %2651 = vrot.lane.b32.xlu0 %v4240_v27, %s4428_s3 }
0x3179   :  { %v2652_v29 = vpop.permute.xlu0 %2651 }
0x317a   :  { %v2654_v33 = vmul.f32 %v4238_v21, %v2652_v29 }
0x317c   :  { %2657 = vrot.lane.b32.xlu1 %v2654_v33, %s4429_s26 }
0x31ee   :  { %v2658_v35 = vpop.permute.xlu1 %2657 }
0x31ef   :  { %3793 = vmatmul.mubr.msk.f32.vlgmr.msra.gmra.mrb[42].mxu0 %vm289_vm2, %v2658_v35 }
0x31f0   :  { %4028 = vmatpush3.bf16.msra.mxu0 %v4938_v52  ;;  %3814 = vmatprep.mubr.msk.f32.mxu0 %vm4426_vm0, %v4427_v1 }
0x31f1   :  { %4029 = vmatprep.subr.bf16.mxu0 %v4425_v0 }
0x31f4   :  { %4031 = vmatpush3.bf16.msra.mxu0 %v4942_v54 }
0x31f5   :  { %4038 = vmatprep.subr.bf16.mxu0 %v4425_v0 }
0x32c2   :  { %v2727_v60 = vpop.f32.mrb[42].mxu0 }
0x32c3   :  { %v2731_v24 = vadd.f32 %v2727_v60, %v2226_v41  ;;  %v3794_v45 = vpop.f32.mrb[43].mxu0 }
0x32c5   :  { %4241 = vtanh.f32 %v2731_v24  ;;  %v3322_v46 = vmul.f32 -1.442695, %v2731_v24 }
0x32c7   :  { %4243 = vpow2.f32 %v3322_v46 }
0x32cf   :  { %v4242_v34 = vpop.eup %4241 }
0x32d0   :  { %2741 = vrot.lane.b32.xlu0 %v4242_v34, %s4428_s3 }
0x32d1   :  { %v4244_v47 = vpop.eup %4243 }
0x32d2   :  { %v2735_v48 = vadd.f32 1.0, %v4244_v47  ;;  %v3060_v47 = vld [vmem:[#allocation12 + $0x8] sm:$0xff] }
0x32d4   :  { %4245 = vrcp.f32 %v2735_v48  ;;  %v3061_v48 = vld [vmem:[#allocation12 + $0x10] sm:$0xff] }
0x32de   :  { %v4246_v31 = vpop.eup %4245 }
0x32df   :  { %v2739_v50 = vmul.f32 %v4246_v31, %v2648_v40 }
0x3342   :  { %v2742_v49 = vpop.permute.xlu0 %2741 }
0x3343   :  { %v2744_v38 = vmul.f32 %v4246_v31, %v2742_v49  ;;  %v3062_v49 = vld [vmem:[#allocation12 + $0x18] sm:$0xff] }
0x3345   :  { %2746 = vrot.lane.b32.xlu1 %v2744_v38, %s4429_s26  ;;  %v4042_v38 = vpack.c.bf16 %v3062_v49, %v3061_v48 }
0x33b7   :  { %v2747_v51 = vpop.permute.xlu1 %2746 }
0x33b8   :  { %v2749_v39 = vadd.f32 %v2747_v51, %v2739_v50  ;;  %v3146_v51 = vld [vmem:[%s5149_s12] sm:$0xff] }
0x33ba   :  { %4247 = vtanh.f32 %v2749_v39 }
0x33c4   :  { %v4248_v53 = vpop.eup %4247 }
0x33c5   :  { %2752 = vrot.lane.b32.xlu0 %v4248_v53, %s4428_s3  ;;  %v3148_v53 = vld [vmem:[%s5149_s12 + $0x10] sm:$0xff] }
0x3437   :  { %v2753_v44 = vpop.permute.xlu0 %2752 }
0x3438   :  { %v2755_v59 = vmul.f32 %v4246_v31, %v2753_v44  ;;  %v4039_v31 = vpack.c.bf16 %v3060_v47, %v3059_v56 }
0x343a   :  { %2758 = vrot.lane.b32.xlu1 %v2755_v59, %s4429_s26  ;;  %v3149_v59 = vld [vmem:[%s5149_s12 + $0x18] sm:$0xff] }
0x34ac   :  { %v2759_v61 = vpop.permute.xlu1 %2758 }
0x34ad   :  { %3804 = vmatmul.mubr.msk.f32.vlgmr.msra.gmra.mrb[22].mxu1 %vm289_vm2, %v2759_v61  ;;  %v4048_v61 = vpack.c.bf16 %v3149_v59, %v3148_v53 }
0x34ae   :  { %4034 = vmatpush3.bf16.msra.mxu1 %v4938_v52  ;;  %3825 = vmatprep.mubr.msk.f32.mxu1 %vm4426_vm0, %v4427_v1 }
0x34af   :  { %4035 = vmatprep.subr.bf16.mxu1 %v4425_v0 }
0x34b2   :  { %4037 = vmatpush3.bf16.msra.mxu1 %v4942_v54 }
0x34b3   :  { %4044 = vmatprep.subr.bf16.mxu1 %v4425_v0 }
0x3580   :  { %v2828_v63 = vpop.f32.mrb[22].mxu1 }
0x3581   :  { %v2832_v2 = vadd.f32 %v2828_v63, %v2231_v62  ;;  %v3805_v4 = vpop.f32.mrb[23].mxu1  ;;  %v3150_v62 = vld [vmem:[%s5149_s12 + $0x20] sm:$0xff]  ;;  %v3151_v63 = vld [vmem:[%s5149_s12 + $0x28] sm:$0xff] }
0x3582   :  { %v3152_v4 = vld [vmem:[%s5149_s12 + $0x30] sm:$0xff] }
0x3583   :  { %4249 = vtanh.f32 %v2832_v2  ;;  %v3324_v52 = vmul.f32 -1.442695, %v2832_v2  ;;  %v4051_v2 = vpack.c.bf16 %v3151_v63, %v3150_v62 }
0x3585   :  { %4251 = vpow2.f32 %v3324_v52 }
0x358d   :  { %v4250_v5 = vpop.eup %4249 }
0x358e   :  { %2842 = vrot.lane.b32.xlu0 %v4250_v5, %s4428_s3  ;;  %v3153_v5 = vld [vmem:[%s5149_s12 + $0x38] sm:$0xff] }
0x358f   :  { %v4252_v6 = vpop.eup %4251 }
0x3590   :  { %v2836_v8 = vadd.f32 1.0, %v4252_v6 }
0x3592   :  { %4253 = vrcp.f32 %v2836_v8  ;;  %v4054_v8 = vpack.c.bf16 %v3153_v5, %v3152_v4 }
0x359c   :  { %v4254_v7 = vpop.eup %4253 }
0x359d   :  { %v2840_v9 = vmul.f32 %v4254_v7, %v2749_v39  ;;  %v3147_v39 = vld [vmem:[%s5149_s12 + $0x8] sm:$0xff] }
0x359e   :  { %v4045_v44 = vpack.c.bf16 %v3147_v39, %v3146_v51 }
0x3600   :  { %v2843_v58 = vpop.permute.xlu0 %2842 }
0x3601   :  { %v2845_v54 = vmul.f32 %v4254_v7, %v2843_v58  ;;  %v3155_v58 = vld [vmem:[%s5149_s12 + $0x48] sm:$0xff] }
0x3603   :  { %2847 = vrot.lane.b32.xlu1 %v2845_v54, %s4429_s26 }
0x3675   :  { %v2848_v3 = vpop.permute.xlu1 %2847 }
0x3676   :  { %v2850_v37 = vadd.f32 %v2848_v3, %v2840_v9  ;;  %v3156_v9 = vld [vmem:[%s5149_s12 + $0x50] sm:$0xff]  ;;  %v3157_v3 = vld [vmem:[%s5149_s12 + $0x58] sm:$0xff] }
0x3678   :  { %4255 = vtanh.f32 %v2850_v37 }
0x3682   :  { %v4256_v57 = vpop.eup %4255 }
0x3683   :  { %2853 = vrot.lane.b32.xlu0 %v4256_v57, %s4428_s3  ;;  %v3158_v57 = vld [vmem:[%s5149_s12 + $0x60] sm:$0xff] }
0x36f5   :  { %v2854_v10 = vpop.permute.xlu0 %2853 }
0x36f6   :  { %v2856_v43 = vmul.f32 %v4254_v7, %v2854_v10  ;;  %v3154_v7 = vld [vmem:[%s5149_s12 + $0x40] sm:$0xff]  ;;  %v3159_v10 = vld [vmem:[%s5149_s12 + $0x68] sm:$0xff] }
0x36f7   :  { %v4057_v54 = vpack.c.bf16 %v3155_v58, %v3154_v7 }
0x36f8   :  { %2859 = vrot.lane.b32.xlu1 %v2856_v43, %s4429_s26  ;;  %v4063_v43 = vpack.c.bf16 %v3159_v10, %v3158_v57 }
0x376a   :  { %v2860_v11 = vpop.permute.xlu1 %2859 }
0x376b   :  { %3815 = vmatmul.mubr.msk.f32.vlgmr.msra.gmra.mrb[44].mxu0 %vm289_vm2, %v2860_v11 }
0x376c   :  { %3836 = vmatprep.mubr.msk.f32.mxu0 %vm4426_vm0, %v4427_v1  ;;  %4040 = vmatpush3.bf16.msra.mxu0 %v4039_v31 }
0x376d   :  { %4041 = vmatprep.subr.bf16.mxu0 %v4425_v0 }
0x3770   :  { %4043 = vmatpush3.bf16.msra.mxu0 %v4042_v38 }
0x383e   :  { %v2929_v32 = vpop.f32.mrb[44].mxu0 }
0x383f   :  { %v2933_v13 = vadd.f32 %v2929_v32, %v2236_v36  ;;  %v3816_v12 = vpop.f32.mrb[45].mxu0  ;;  %v3160_v36 = vld [vmem:[%s5149_s12 + $0x70] sm:$0xff]  ;;  %v3161_v32 = vld [vmem:[%s5149_s12 + $0x78] sm:$0xff] }
0x3840   :  { %v3329_v12 = vld [vmem:[%s5148_s11] ss:$0 sm:$0xff] }
0x3841   :  { %4257 = vtanh.f32 %v2933_v13  ;;  %v3326_v14 = vmul.f32 -1.442695, %v2933_v13  ;;  %v4066_v13 = vpack.c.bf16 %v3161_v32, %v3160_v36 }
0x3843   :  { %4259 = vpow2.f32 %v3326_v14 }
0x384b   :  { %v4258_v42 = vpop.eup %4257 }
0x384c   :  { %2943 = vrot.lane.b32.xlu0 %v4258_v42, %s4428_s3 }
0x384d   :  { %v4260_v28 = vpop.eup %4259 }
0x384e   :  { %v2937_v15 = vadd.f32 1.0, %v4260_v28 }
0x3850   :  { %4261 = vrcp.f32 %v2937_v15  ;;  %v3331_v15 = vld [vmem:[%s5150_s13] ss:$0 sm:$0xff] }
0x385a   :  { %v4262_v16 = vpop.eup %4261 }
0x385b   :  { %v2941_v19 = vmul.f32 %v4262_v16, %v2850_v37  ;;  %v4060_v37 = vpack.c.bf16 %v3157_v3, %v3156_v9 }
0x38be   :  { %v2944_v17 = vpop.permute.xlu0 %2943 }
0x38bf   :  { %v2946_v18 = vmul.f32 %v4262_v16, %v2944_v17 }
0x38c1   :  { %2948 = vrot.lane.b32.xlu1 %v2946_v18, %s4429_s26 }
0x3933   :  { %v2949_v20 = vpop.permute.xlu1 %2948 }
0x3934   :  { %v2951_v30 = vadd.f32 %v2949_v20, %v2941_v19 }
0x3936   :  { %4263 = vtanh.f32 %v2951_v30 }
0x3940   :  { %v4264_v21 = vpop.eup %4263 }
0x3941   :  { %2954 = vrot.lane.b32.xlu0 %v4264_v21, %s4428_s3 }
0x39b3   :  { %v2955_v22 = vpop.permute.xlu0 %2954 }
0x39b4   :  { %v2957_v23 = vmul.f32 %v4262_v16, %v2955_v22 }
0x39b6   :  { %2960 = vrot.lane.b32.xlu1 %v2957_v23, %s4429_s26 }
0x3a28   :  { %v2961_v25 = vpop.permute.xlu1 %2960 }
0x3a29   :  { %3826 = vmatmul.mubr.msk.f32.vlgmr.msra.gmra.mrb[24].mxu1 %vm289_vm2, %v2961_v25 }
0x3a2a   :  { %3871 = vmatprep.mubr.msk.f32.mxu1 %vm4426_vm0, %v4427_v1  ;;  %4046 = vmatpush3.bf16.msra.mxu1 %v4045_v44 }
0x3a2b   :  { %4047 = vmatprep.subr.bf16.mxu1 %v4425_v0 }
0x3a2e   :  { %4049 = vmatpush3.bf16.msra.mxu1 %v4048_v61 }
0x3a2f   :  { %4050 = vmatprep.subr.bf16.mxu1 %v4425_v0 }
0x3a32   :  { %4052 = vmatpush3.bf16.msra.mxu1 %v4051_v2 }
0x3a33   :  { %4053 = vmatprep.subr.bf16.mxu1 %v4425_v0 }
0x3a36   :  { %4055 = vmatpush3.bf16.msra.mxu1 %v4054_v8 }
0x3a37   :  { %4056 = vmatprep.subr.bf16.mxu1 %v4425_v0 }
0x3a3a   :  { %4058 = vmatpush3.bf16.msra.mxu1 %v4057_v54 }
0x3a3b   :  { %4059 = vmatprep.subr.bf16.mxu1 %v4425_v0 }
0x3a3e   :  { %4061 = vmatpush3.bf16.msra.mxu1 %v4060_v37 }
0x3a3f   :  { %4062 = vmatprep.subr.bf16.mxu1 %v4425_v0 }
0x3a42   :  { %4064 = vmatpush3.bf16.msra.mxu1 %v4063_v43 }
0x3a43   :  { %4065 = vmatprep.subr.bf16.mxu1 %v4425_v0 }
0x3a46   :  { %4067 = vmatpush3.bf16.msra.mxu1 %v4066_v13 }
0x3afc   :  { %v3030_v40 = vpop.f32.mrb[24].mxu1 }
0x3afd   :  { %v3034_v27 = vadd.f32 %v3030_v40, %v2241_v26  ;;  %v3827_v29 = vpop.f32.mrb[25].mxu1 }
0x3aff   :  { %4265 = vtanh.f32 %v3034_v27  ;;  %v3328_v35 = vmul.f32 -1.442695, %v3034_v27 }
0x3b01   :  { %4267 = vpow2.f32 %v3328_v35 }
0x3b09   :  { %v4266_v33 = vpop.eup %4265 }
0x3b0a   :  { %3044 = vrot.lane.b32.xlu0 %v4266_v33, %s4428_s3 }
0x3b0b   :  { %v4268_v41 = vpop.eup %4267 }
0x3b0c   :  { %v3038_v60 = vadd.f32 1.0, %v4268_v41 }
0x3b0e   :  { %4269 = vrcp.f32 %v3038_v60 }
0x3b18   :  { %v4270_v24 = vpop.eup %4269 }
0x3b19   :  { %v3042_v1 = vmul.f32 %v4270_v24, %v2951_v30 }
0x3b7c   :  { %v3045_v45 = vpop.permute.xlu0 %3044 }
0x3b7d   :  { %v3047_v34 = vmul.f32 %v4270_v24, %v3045_v45 }
0x3b7f   :  { %3049 = vrot.lane.b32.xlu1 %v3047_v34, %s4429_s26 }
0x3bf1   :  { %v3050_v46 = vpop.permute.xlu1 %3049 }
0x3bf2   :  { %v3052_v55 = vadd.f32 %v3050_v46, %v3042_v1 }
0x3bf4   :  { %4271 = vtanh.f32 %v3052_v55 }
0x3bfe   :  { %v4272_v50 = vpop.eup %4271 }
0x3bff   :  { %3055 = vrot.lane.b32.xlu0 %v4272_v50, %s4428_s3 }
0x3c71   :  { %v3056_v52 = vpop.permute.xlu0 %3055 }
0x3c72   :  { %v3058_v6 = vmul.f32 %v4270_v24, %v3056_v52 }
0x3c74   :  { %3071 = vrot.lane.b32.xlu1 %v3058_v6, %s4429_s26 }
0x3ce6   :  { %v3072_v11 = vpop.permute.xlu1 %3071 }
0x3ce7   :  { %3837 = vmatmul.mubr.msk.f32.vlgmr.msra.gmra.mrb[46].mxu0 %vm289_vm2, %v3072_v11 }
0x3dba   :  { %v3141_v42 = vpop.f32.mrb[46].mxu0 }
0x3dbb   :  { %v3142_v14 = vadd.f32 %v3329_v12, %v3141_v42  ;;  %v3838_v0 = vpop.f32.mrb[47].mxu0 }
0x3dbd   :  { %v3145_v28 = vmax.f32 %v3142_v14, 0.0 }
0x3dbf   :  { %3872 = vmatmul.mubr.f32.vlgmr.msra.gmra.mrb[26].mxu1 %v3145_v28 }
0x3e92   :  { %v3235_v16 = vpop.f32.mrb[26].mxu1 }
0x3e93   :  { %v3236_v17 = vadd.f32 %v3331_v15, %v3235_v16  ;;  %v3873_v18 = vpop.f32.mrb[27].mxu1 }
0x3e95   :  { %3239 = vmax.xlane.f32.xlu0 %v3236_v17 }
0x3f22   :  { %v3240_v19 = vpop.xlane.xlu0 %3239 }
0x3f23   :  { %v3241_v20 = vsub.f32 %v3236_v17, %v3240_v19 }
0x3f25   :  { %v3242_v30 = vmul.f32 1.442695, %v3241_v20 }
0x3f27   :  { %4273 = vpow2.f32 %v3242_v30 }
0x3f31   :  { %v4274_v21 = vpop.eup %4273 }
0x3f32   :  { %3244 = vadd.xlane.f32.xlu1 %v4274_v21 }
0x3fbf   :  { %v3245_v22 = vpop.xlane.xlu1 %3244 }
0x3fc0   :  { %4275 = vrcp.f32 %v3245_v22 }
0x3fca   :  { %v4276_v23 = vpop.eup %4275 }
0x3fcb   :  { %v3247_v25 = vmul.f32 %v4276_v23, %v4274_v21 }
0x3fcd   :  { %3248 = vst [vmem:[%s5151_s14] sm:$0xff] %v3247_v25 }
0x3fce   :  { %3253 = vsyncpa [#allocation5], 1 }
0x3fcf   :  { %3254 = vsyncpa [#allocation7], 1 }
0x3fd0   :  { %3255 = vsyncpa [#allocation10], 1 }
0x3fd1   :  { %3256 = vsyncpa [#allocation13], 1 }

</bundles_post_ra>
